<compile_context>
chip_gen: v5e
topology: v5e:2x2
jax: 0.10.0
libtpu: 0.0.40
codegen_flags: <defaults>
</compile_context>

<pallas_src>
import jax
import jax.numpy as jnp
from jax.experimental import pallas as pl
from jax.experimental.pallas import tpu as pltpu

C = 128  # lane-dense channel width carried through the whole network


def _largest_divisor_leq(n, cap):
    for d in range(min(n, cap), 0, -1):
        if n % d == 0:
            return d
    return 1


def _batch_block(B, cap):
    # Largest divisor of B that is <= cap, but keep >= 2 grid steps when B allows it
    # so both v7x TensorCores have work (dimension_semantics=("parallel",)).
    if B <= 1:
        return 1
    return _largest_divisor_leq(B, min(cap, max(1, B // 2)))


# ---------------------------------------------------------------------------
# XLA-side im2col: fold the 5x5 taps x real channels into a dense contraction dim
# ---------------------------------------------------------------------------

def _im2col_5x5(x, k_pad):
    """x: (B, H, W, Cin) real channels -> (B, H*W, k_pad) bf16.
    K order = (ky*5 + kx)*Cin + ci  (tap-major, channel-minor), zero-padded to k_pad."""
    B, H, W, Cin = x.shape
    xp = jnp.pad(x, ((0, 0), (2, 2), (2, 2), (0, 0)))
    cols = [xp[:, ky:ky + H, kx:kx + W, :] for ky in range(5) for kx in range(5)]
    col = jnp.stack(cols, axis=3).reshape(B, H * W, 25 * Cin)
    col = jnp.pad(col, ((0, 0), (0, 0), (0, k_pad - 25 * Cin)))
    return col.astype(jnp.bfloat16)


# ---------------------------------------------------------------------------
# Fused (dense-K conv matmul) + MaxPool2d(2) + bias kernel, batch-blocked
# ---------------------------------------------------------------------------

def _make_conv_pool_kernel(bb, H, W, K):
    Ho, Wo = H // 2, W // 2
    M = H * W

    def kernel(x_ref, w_ref, b_ref, o_ref, hp_ref):
        # x_ref : (bb, M, K)      bf16  im2col rows (h*W + w), dense folded K
        # w_ref : (K, C)          bf16
        # b_ref : (1, C)          f32
        # o_ref : (bb, Ho*Wo, C)  bf16  pooled output, row = ho*Wo + wo
        # hp_ref: (bb*Ho*W, C)    f32   scratch for the h-pooled rows
        x2 = x_ref[...].reshape(bb * M, K)
        h = jnp.dot(x2, w_ref[...], preferred_element_type=jnp.float32)   # (bb*M, C)

        # MaxPool2d(2): pool along h via a leading-dim split + elementwise max ...
        h4 = h.reshape(bb * Ho, 2, W, C)
        hp_ref[...] = jnp.maximum(h4[:, 0], h4[:, 1]).reshape(bb * Ho * W, C)
        # ... then along w via stride-2 sublane reads from VMEM scratch.
        n = bb * Ho * Wo
        ev = hp_ref[pl.ds(0, n, stride=2), :]
        od = hp_ref[pl.ds(1, n, stride=2), :]
        pooled = jnp.maximum(ev, od) + b_ref[...]      # bias after pool (commutes with max)
        o_ref[...] = pooled.astype(o_ref.dtype).reshape(bb, Ho * Wo, C)

    return kernel


def conv5x5_pool2(xcol, w_packed, b_packed, *, H, W, bb):
    """xcol: (B, H*W, K) bf16 im2col'd -> (B, (H//2)*(W//2), C) bf16."""
    B, M, K = xcol.shape
    Ho, Wo = H // 2, W // 2
    return pl.pallas_call(
        _make_conv_pool_kernel(bb, H, W, K),
        out_shape=jax.ShapeDtypeStruct((B, Ho * Wo, C), jnp.bfloat16),
        grid_spec=pltpu.PrefetchScalarGridSpec(
            num_scalar_prefetch=0,
            grid=(B // bb,),
            in_specs=[
                pl.BlockSpec((bb, M, K), lambda i: (i, 0, 0)),
                pl.BlockSpec((K, C), lambda i: (0, 0)),
                pl.BlockSpec((1, C), lambda i: (0, 0)),
            ],
            out_specs=pl.BlockSpec((bb, Ho * Wo, C), lambda i: (i, 0, 0)),
            scratch_shapes=[pltpu.VMEM((bb * Ho * W, C), jnp.float32)],
        ),
        compiler_params=pltpu.CompilerParams(
            dimension_semantics=("parallel",)),
    )(xcol, w_packed, b_packed)


# ---------------------------------------------------------------------------
# Fused classifier: Linear(1024 -> 64) + Linear(64 -> 10), padded to 128 lanes
# ---------------------------------------------------------------------------

def _classifier_kernel(x_ref, w4_ref, b4_ref, w5_ref, b5_ref, o_ref):
    # x: (bm, 2048) bf16 ; w4: (2048, C) bf16 ; w5: (C, C) bf16 ; biases (1, C) f32
    h = jnp.dot(x_ref[...], w4_ref[...], preferred_element_type=jnp.float32)
    h = h + b4_ref[...]
    y = jnp.dot(h.astype(jnp.bfloat16), w5_ref[...],
                preferred_element_type=jnp.float32)
    o_ref[...] = y + b5_ref[...]


def classifier(x2d, w4p, b4p, w5p, b5p):
    B, K = x2d.shape
    bm = 256 if B % 256 == 0 else B
    return pl.pallas_call(
        _classifier_kernel,
        out_shape=jax.ShapeDtypeStruct((B, C), jnp.float32),
        grid_spec=pltpu.PrefetchScalarGridSpec(
            num_scalar_prefetch=0,
            grid=(B // bm,),
            in_specs=[
                pl.BlockSpec((bm, K), lambda i: (i, 0)),
                pl.BlockSpec((K, C), lambda i: (0, 0)),
                pl.BlockSpec((1, C), lambda i: (0, 0)),
                pl.BlockSpec((C, C), lambda i: (0, 0)),
                pl.BlockSpec((1, C), lambda i: (0, 0)),
            ],
            out_specs=pl.BlockSpec((bm, C), lambda i: (i, 0)),
        ),
        compiler_params=pltpu.CompilerParams(
            dimension_semantics=("parallel",)),
    )(x2d, w4p, b4p, w5p, b5p)


# ---------------------------------------------------------------------------
# Parameters (PyTorch layouts) and one-time packing to kernel layouts
# ---------------------------------------------------------------------------

def init_params(key):
    ks = jax.random.split(key, 10)

    def conv_w(k, co, ci):
        return jax.random.normal(k, (co, ci, 5, 5), jnp.float32) / jnp.sqrt(ci * 25.0)

    def lin_w(k, co, ci):
        return jax.random.normal(k, (co, ci), jnp.float32) / jnp.sqrt(float(ci))

    return {
        "w1": conv_w(ks[0], 32, 3),  "b1": 0.01 * jax.random.normal(ks[1], (32,)),
        "w2": conv_w(ks[2], 32, 32), "b2": 0.01 * jax.random.normal(ks[3], (32,)),
        "w3": conv_w(ks[4], 64, 32), "b3": 0.01 * jax.random.normal(ks[5], (64,)),
        "w4": lin_w(ks[6], 64, 4 * 4 * 64), "b4": 0.01 * jax.random.normal(ks[7], (64,)),
        "w5": lin_w(ks[8], 10, 64),         "b5": 0.01 * jax.random.normal(ks[9], (10,)),
    }


def pack_params(p):
    """One-time packing: OIHW conv weights -> (K, C) dense-K bf16 matching the im2col
    (tap-major, channel-minor) K order; Linear weights pre-transposed / pre-permuted."""
    def pack_conv(w, b, k_pad):
        co, ci = w.shape[0], w.shape[1]
        wt = jnp.transpose(w, (2, 3, 1, 0)).reshape(25 * ci, co)     # rows = tap*ci + c
        wt = jnp.pad(wt, ((0, k_pad - 25 * ci), (0, C - co))).astype(jnp.bfloat16)
        bt = jnp.pad(b, (0, C - co)).reshape(1, C).astype(jnp.float32)
        return wt, bt

    w1, b1 = pack_conv(p["w1"], p["b1"], 128)   # K = 25*3  = 75  -> 128
    w2, b2 = pack_conv(p["w2"], p["b2"], 896)   # K = 25*32 = 800 -> 896
    w3, b3 = pack_conv(p["w3"], p["b3"], 896)

    # Linear(1024 -> 64): PyTorch Flatten order is (c, h, w); our conv-3 activation is
    # (hw, c)-major with c zero-padded to C, so permute/pad the weight ROWS once.
    co4 = p["w4"].shape[0]                   # 64
    w4 = p["w4"].reshape(co4, 64, 16)        # (out, c, hw)
    w4 = jnp.transpose(w4, (2, 1, 0))        # (hw, c, out)
    w4 = jnp.pad(w4, ((0, 0), (0, C - 64), (0, C - co4)))
    w4 = w4.reshape(16 * C, C).astype(jnp.bfloat16)                  # (2048, C)
    b4 = jnp.pad(p["b4"], (0, C - co4)).reshape(1, C).astype(jnp.float32)

    # Linear(64 -> 10)
    o5, i5 = p["w5"].shape
    w5 = jnp.pad(p["w5"].T, ((0, C - i5), (0, C - o5))).astype(jnp.bfloat16)  # (C, C)
    b5 = jnp.pad(p["b5"], (0, C - o5)).reshape(1, C).astype(jnp.float32)

    return {"w1": w1, "b1": b1, "w2": w2, "b2": b2, "w3": w3, "b3": b3,
            "w4": w4, "b4": b4, "w5": w5, "b5": b5}


# ---------------------------------------------------------------------------
# Forward pass (input is NCHW f32, like the PyTorch module)
# ---------------------------------------------------------------------------

def nnmodel_forward(x_nchw, pp):
    B = x_nchw.shape[0]
    x = jnp.transpose(x_nchw, (0, 2, 3, 1))                              # (B,32,32,3)

    c1 = conv5x5_pool2(_im2col_5x5(x, 128), pp["w1"], pp["b1"],
                       H=32, W=32, bb=_batch_block(B, 4))                # (B, 256, C)
    x2 = c1[:, :, :32].reshape(B, 16, 16, 32)

    c2 = conv5x5_pool2(_im2col_5x5(x2, 896), pp["w2"], pp["b2"],
                       H=16, W=16, bb=_batch_block(B, 4))                # (B, 64, C)
    x3 = c2[:, :, :32].reshape(B, 8, 8, 32)

    c3 = conv5x5_pool2(_im2col_5x5(x3, 896), pp["w3"], pp["b3"],
                       H=8, W=8, bb=_batch_block(B, 8))                  # (B, 16, C)

    # Flatten: contiguous reshape only (w4 rows were pre-permuted to this (hw, c) order).
    flat = c3.reshape(B, 16 * C)
    y = classifier(flat, pp["w4"], pp["b4"], pp["w5"], pp["b5"])         # (B, C) f32
    return y[:, :10]


if __name__ == "__main__":
    key = jax.random.PRNGKey(0)
    kp, kx = jax.random.split(key)
    packed = pack_params(init_params(kp))

    # Linear(in_features=4*4*64) forces a 3x32x32 input.
    x = jax.random.normal(kx, (2, 3, 32, 32), jnp.float32)

    fwd = jax.jit(nnmodel_forward)
    out = jax.block_until_ready(fwd(x, packed))
    assert out.shape == (2, 10) and out.dtype == jnp.float32
    print("KERNEL_OK")
</pallas_src>

<mosaic_0001>
module attributes {stable_mosaic.version = 11 : i64} {
  func.func @kernel(%arg0: i32, %arg1: memref<1x1024x128xbf16, #tpu.memory_space<vmem>>, %arg2: memref<128x128xbf16, #tpu.memory_space<vmem>>, %arg3: memref<1x128xf32, #tpu.memory_space<vmem>>, %arg4: memref<1x256x128xbf16, #tpu.memory_space<vmem>>, %arg5: memref<512x128xf32, #tpu.memory_space<vmem>>) attributes {dimension_semantics = [#tpu.dimension_semantics<parallel>], iteration_bounds = array<i64: 2>, scalar_prefetch = 0 : i64, scratch_operands = 1 : i64, tpu.core_type = #tpu.core_type<tc>, window_params = [{transform_indices = @transform_0, window_bounds = array<i64: 1, 1024, 128>}, {pipeline_mode = #tpu.pipeline_mode<synchronous>, transform_indices = @transform_1, window_bounds = array<i64: 128, 128>}, {pipeline_mode = #tpu.pipeline_mode<synchronous>, transform_indices = @transform_2, window_bounds = array<i64: 1, 128>}, {transform_indices = @transform_3, window_bounds = array<i64: 1, 256, 128>}]} {
    %c0 = arith.constant 0 : index
    %c0_0 = arith.constant 0 : index
    %c0_1 = arith.constant 0 : index
    %0 = vector.load %arg1[%c0, %c0_0, %c0_1] : memref<1x1024x128xbf16, #tpu.memory_space<vmem>>, vector<1x1024x128xbf16>
    %1 = vector.shape_cast %0 : vector<1x1024x128xbf16> to vector<1024x128xbf16>
    %c0_2 = arith.constant 0 : index
    %c0_3 = arith.constant 0 : index
    %2 = vector.load %arg2[%c0_2, %c0_3] : memref<128x128xbf16, #tpu.memory_space<vmem>>, vector<128x128xbf16>
    %cst = arith.constant dense<0.000000e+00> : vector<1024x128xf32>
    %3 = tpu.matmul %1, %2, %cst {dimension_numbers = #tpu.dot_dimension_numbers<[1], [0], [0], [1], [0, 0, 1, 1], [], []>} : vector<1024x128xbf16>, vector<128x128xbf16>, vector<1024x128xf32> -> vector<1024x128xf32>
    %4 = vector.shape_cast %3 : vector<1024x128xf32> to vector<16x2x32x128xf32>
    %5 = vector.extract_strided_slice %4 {offsets = [0, 0, 0, 0], sizes = [16, 1, 32, 128], strides = [1, 1, 1, 1]} : vector<16x2x32x128xf32> to vector<16x1x32x128xf32>
    %6 = vector.shape_cast %5 : vector<16x1x32x128xf32> to vector<16x32x128xf32>
    %7 = vector.extract_strided_slice %4 {offsets = [0, 1, 0, 0], sizes = [16, 1, 32, 128], strides = [1, 1, 1, 1]} : vector<16x2x32x128xf32> to vector<16x1x32x128xf32>
    %8 = vector.shape_cast %7 : vector<16x1x32x128xf32> to vector<16x32x128xf32>
    %9 = arith.maximumf %6, %8 : vector<16x32x128xf32>
    %10 = vector.shape_cast %9 : vector<16x32x128xf32> to vector<512x128xf32>
    %c0_4 = arith.constant 0 : index
    %c0_5 = arith.constant 0 : index
    %11 = vector.load %arg5[%c0_4, %c0_5] : memref<512x128xf32, #tpu.memory_space<vmem>>, vector<512x128xf32>
    tpu.vector_store %arg5[%c0_4, %c0_5], %10 {strides = array<i32>} : memref<512x128xf32, #tpu.memory_space<vmem>>, vector<512x128xf32>,
    %c0_6 = arith.constant 0 : index
    %c0_7 = arith.constant 0 : index
    %12 = tpu.strided_load %arg5[%c0_6, %c0_7] {strides = array<i32: 2, 1>} : memref<512x128xf32, #tpu.memory_space<vmem>>, vector<256x128xf32>
    %c1 = arith.constant 1 : index
    %c0_8 = arith.constant 0 : index
    %13 = tpu.strided_load %arg5[%c1, %c0_8] {strides = array<i32: 2, 1>} : memref<512x128xf32, #tpu.memory_space<vmem>>, vector<256x128xf32>
    %14 = arith.maximumf %12, %13 : vector<256x128xf32>
    %c0_9 = arith.constant 0 : index
    %c0_10 = arith.constant 0 : index
    %15 = vector.load %arg3[%c0_9, %c0_10] : memref<1x128xf32, #tpu.memory_space<vmem>>, vector<1x128xf32>
    %16 = vector.broadcast %15 : vector<1x128xf32> to vector<256x128xf32>
    %17 = arith.addf %14, %16 : vector<256x128xf32>
    %18 = arith.truncf %17 : vector<256x128xf32> to vector<256x128xbf16>
    %19 = vector.shape_cast %18 : vector<256x128xbf16> to vector<1x256x128xbf16>
    %c0_11 = arith.constant 0 : index
    %c0_12 = arith.constant 0 : index
    %c0_13 = arith.constant 0 : index
    %20 = vector.load %arg4[%c0_11, %c0_12, %c0_13] : memref<1x256x128xbf16, #tpu.memory_space<vmem>>, vector<1x256x128xbf16>
    tpu.vector_store %arg4[%c0_11, %c0_12, %c0_13], %19 {strides = array<i32>} : memref<1x256x128xbf16, #tpu.memory_space<vmem>>, vector<1x256x128xbf16>,
    return
  }
  func.func @transform_0(%arg0: i32) -> (i32, i32, i32) {
    %c0_i32 = arith.constant 0 : i32
    %c0_i32_0 = arith.constant 0 : i32
    %c0_i32_1 = arith.constant 0 : i32
    return %arg0, %c0_i32, %c0_i32_0 : i32, i32, i32
  }
  func.func @transform_1(%arg0: i32) -> (i32, i32) {
    %c0_i32 = arith.constant 0 : i32
    %c0_i32_0 = arith.constant 0 : i32
    %c0_i32_1 = arith.constant 0 : i32
    return %c0_i32, %c0_i32_0 : i32, i32
  }
  func.func @transform_2(%arg0: i32) -> (i32, i32) {
    %c0_i32 = arith.constant 0 : i32
    %c0_i32_0 = arith.constant 0 : i32
    %c0_i32_1 = arith.constant 0 : i32
    return %c0_i32, %c0_i32_0 : i32, i32
  }
  func.func @transform_3(%arg0: i32) -> (i32, i32, i32) {
    %c0_i32 = arith.constant 0 : i32
    %c0_i32_0 = arith.constant 0 : i32
    %c0_i32_1 = arith.constant 0 : i32
    return %arg0, %c0_i32, %c0_i32_0 : i32, i32, i32
  }
}

module attributes {stable_mosaic.version = 11 : i64} {
  func.func @kernel(%arg0: i32, %arg1: memref<1x256x896xbf16, #tpu.memory_space<vmem>>, %arg2: memref<896x128xbf16, #tpu.memory_space<vmem>>, %arg3: memref<1x128xf32, #tpu.memory_space<vmem>>, %arg4: memref<1x64x128xbf16, #tpu.memory_space<vmem>>, %arg5: memref<128x128xf32, #tpu.memory_space<vmem>>) attributes {dimension_semantics = [#tpu.dimension_semantics<parallel>], iteration_bounds = array<i64: 2>, scalar_prefetch = 0 : i64, scratch_operands = 1 : i64, tpu.core_type = #tpu.core_type<tc>, window_params = [{transform_indices = @transform_0, window_bounds = array<i64: 1, 256, 896>}, {pipeline_mode = #tpu.pipeline_mode<synchronous>, transform_indices = @transform_1, window_bounds = array<i64: 896, 128>}, {pipeline_mode = #tpu.pipeline_mode<synchronous>, transform_indices = @transform_2, window_bounds = array<i64: 1, 128>}, {transform_indices = @transform_3, window_bounds = array<i64: 1, 64, 128>}]} {
    %c0 = arith.constant 0 : index
    %c0_0 = arith.constant 0 : index
    %c0_1 = arith.constant 0 : index
    %0 = vector.load %arg1[%c0, %c0_0, %c0_1] : memref<1x256x896xbf16, #tpu.memory_space<vmem>>, vector<1x256x896xbf16>
    %1 = vector.shape_cast %0 : vector<1x256x896xbf16> to vector<256x896xbf16>
    %c0_2 = arith.constant 0 : index
    %c0_3 = arith.constant 0 : index
    %2 = vector.load %arg2[%c0_2, %c0_3] : memref<896x128xbf16, #tpu.memory_space<vmem>>, vector<896x128xbf16>
    %cst = arith.constant dense<0.000000e+00> : vector<256x128xf32>
    %3 = tpu.matmul %1, %2, %cst {dimension_numbers = #tpu.dot_dimension_numbers<[1], [0], [0], [1], [0, 0, 1, 1], [], []>} : vector<256x896xbf16>, vector<896x128xbf16>, vector<256x128xf32> -> vector<256x128xf32>
    %4 = vector.shape_cast %3 : vector<256x128xf32> to vector<8x2x16x128xf32>
    %5 = vector.extract_strided_slice %4 {offsets = [0, 0, 0, 0], sizes = [8, 1, 16, 128], strides = [1, 1, 1, 1]} : vector<8x2x16x128xf32> to vector<8x1x16x128xf32>
    %6 = vector.shape_cast %5 : vector<8x1x16x128xf32> to vector<8x16x128xf32>
    %7 = vector.extract_strided_slice %4 {offsets = [0, 1, 0, 0], sizes = [8, 1, 16, 128], strides = [1, 1, 1, 1]} : vector<8x2x16x128xf32> to vector<8x1x16x128xf32>
    %8 = vector.shape_cast %7 : vector<8x1x16x128xf32> to vector<8x16x128xf32>
    %9 = arith.maximumf %6, %8 : vector<8x16x128xf32>
    %10 = vector.shape_cast %9 : vector<8x16x128xf32> to vector<128x128xf32>
    %c0_4 = arith.constant 0 : index
    %c0_5 = arith.constant 0 : index
    %11 = vector.load %arg5[%c0_4, %c0_5] : memref<128x128xf32, #tpu.memory_space<vmem>>, vector<128x128xf32>
    tpu.vector_store %arg5[%c0_4, %c0_5], %10 {strides = array<i32>} : memref<128x128xf32, #tpu.memory_space<vmem>>, vector<128x128xf32>,
    %c0_6 = arith.constant 0 : index
    %c0_7 = arith.constant 0 : index
    %12 = tpu.strided_load %arg5[%c0_6, %c0_7] {strides = array<i32: 2, 1>} : memref<128x128xf32, #tpu.memory_space<vmem>>, vector<64x128xf32>
    %c1 = arith.constant 1 : index
    %c0_8 = arith.constant 0 : index
    %13 = tpu.strided_load %arg5[%c1, %c0_8] {strides = array<i32: 2, 1>} : memref<128x128xf32, #tpu.memory_space<vmem>>, vector<64x128xf32>
    %14 = arith.maximumf %12, %13 : vector<64x128xf32>
    %c0_9 = arith.constant 0 : index
    %c0_10 = arith.constant 0 : index
    %15 = vector.load %arg3[%c0_9, %c0_10] : memref<1x128xf32, #tpu.memory_space<vmem>>, vector<1x128xf32>
    %16 = vector.broadcast %15 : vector<1x128xf32> to vector<64x128xf32>
    %17 = arith.addf %14, %16 : vector<64x128xf32>
    %18 = arith.truncf %17 : vector<64x128xf32> to vector<64x128xbf16>
    %19 = vector.shape_cast %18 : vector<64x128xbf16> to vector<1x64x128xbf16>
    %c0_11 = arith.constant 0 : index
    %c0_12 = arith.constant 0 : index
    %c0_13 = arith.constant 0 : index
    %20 = vector.load %arg4[%c0_11, %c0_12, %c0_13] : memref<1x64x128xbf16, #tpu.memory_space<vmem>>, vector<1x64x128xbf16>
    tpu.vector_store %arg4[%c0_11, %c0_12, %c0_13], %19 {strides = array<i32>} : memref<1x64x128xbf16, #tpu.memory_space<vmem>>, vector<1x64x128xbf16>,
    return
  }
  func.func @transform_0(%arg0: i32) -> (i32, i32, i32) {
    %c0_i32 = arith.constant 0 : i32
    %c0_i32_0 = arith.constant 0 : i32
    %c0_i32_1 = arith.constant 0 : i32
    return %arg0, %c0_i32, %c0_i32_0 : i32, i32, i32
  }
  func.func @transform_1(%arg0: i32) -> (i32, i32) {
    %c0_i32 = arith.constant 0 : i32
    %c0_i32_0 = arith.constant 0 : i32
    %c0_i32_1 = arith.constant 0 : i32
    return %c0_i32, %c0_i32_0 : i32, i32
  }
  func.func @transform_2(%arg0: i32) -> (i32, i32) {
    %c0_i32 = arith.constant 0 : i32
    %c0_i32_0 = arith.constant 0 : i32
    %c0_i32_1 = arith.constant 0 : i32
    return %c0_i32, %c0_i32_0 : i32, i32
  }
  func.func @transform_3(%arg0: i32) -> (i32, i32, i32) {
    %c0_i32 = arith.constant 0 : i32
    %c0_i32_0 = arith.constant 0 : i32
    %c0_i32_1 = arith.constant 0 : i32
    return %arg0, %c0_i32, %c0_i32_0 : i32, i32, i32
  }
}

module attributes {stable_mosaic.version = 11 : i64} {
  func.func @kernel(%arg0: i32, %arg1: memref<1x64x896xbf16, #tpu.memory_space<vmem>>, %arg2: memref<896x128xbf16, #tpu.memory_space<vmem>>, %arg3: memref<1x128xf32, #tpu.memory_space<vmem>>, %arg4: memref<1x16x128xbf16, #tpu.memory_space<vmem>>, %arg5: memref<32x128xf32, #tpu.memory_space<vmem>>) attributes {dimension_semantics = [#tpu.dimension_semantics<parallel>], iteration_bounds = array<i64: 2>, scalar_prefetch = 0 : i64, scratch_operands = 1 : i64, tpu.core_type = #tpu.core_type<tc>, window_params = [{transform_indices = @transform_0, window_bounds = array<i64: 1, 64, 896>}, {pipeline_mode = #tpu.pipeline_mode<synchronous>, transform_indices = @transform_1, window_bounds = array<i64: 896, 128>}, {pipeline_mode = #tpu.pipeline_mode<synchronous>, transform_indices = @transform_2, window_bounds = array<i64: 1, 128>}, {transform_indices = @transform_3, window_bounds = array<i64: 1, 16, 128>}]} {
    %c0 = arith.constant 0 : index
    %c0_0 = arith.constant 0 : index
    %c0_1 = arith.constant 0 : index
    %0 = vector.load %arg1[%c0, %c0_0, %c0_1] : memref<1x64x896xbf16, #tpu.memory_space<vmem>>, vector<1x64x896xbf16>
    %1 = vector.shape_cast %0 : vector<1x64x896xbf16> to vector<64x896xbf16>
    %c0_2 = arith.constant 0 : index
    %c0_3 = arith.constant 0 : index
    %2 = vector.load %arg2[%c0_2, %c0_3] : memref<896x128xbf16, #tpu.memory_space<vmem>>, vector<896x128xbf16>
    %cst = arith.constant dense<0.000000e+00> : vector<64x128xf32>
    %3 = tpu.matmul %1, %2, %cst {dimension_numbers = #tpu.dot_dimension_numbers<[1], [0], [0], [1], [0, 0, 1, 1], [], []>} : vector<64x896xbf16>, vector<896x128xbf16>, vector<64x128xf32> -> vector<64x128xf32>
    %4 = vector.shape_cast %3 : vector<64x128xf32> to vector<4x2x8x128xf32>
    %5 = vector.extract_strided_slice %4 {offsets = [0, 0, 0, 0], sizes = [4, 1, 8, 128], strides = [1, 1, 1, 1]} : vector<4x2x8x128xf32> to vector<4x1x8x128xf32>
    %6 = vector.shape_cast %5 : vector<4x1x8x128xf32> to vector<4x8x128xf32>
    %7 = vector.extract_strided_slice %4 {offsets = [0, 1, 0, 0], sizes = [4, 1, 8, 128], strides = [1, 1, 1, 1]} : vector<4x2x8x128xf32> to vector<4x1x8x128xf32>
    %8 = vector.shape_cast %7 : vector<4x1x8x128xf32> to vector<4x8x128xf32>
    %9 = arith.maximumf %6, %8 : vector<4x8x128xf32>
    %10 = vector.shape_cast %9 : vector<4x8x128xf32> to vector<32x128xf32>
    %c0_4 = arith.constant 0 : index
    %c0_5 = arith.constant 0 : index
    %11 = vector.load %arg5[%c0_4, %c0_5] : memref<32x128xf32, #tpu.memory_space<vmem>>, vector<32x128xf32>
    tpu.vector_store %arg5[%c0_4, %c0_5], %10 {strides = array<i32>} : memref<32x128xf32, #tpu.memory_space<vmem>>, vector<32x128xf32>,
    %c0_6 = arith.constant 0 : index
    %c0_7 = arith.constant 0 : index
    %12 = tpu.strided_load %arg5[%c0_6, %c0_7] {strides = array<i32: 2, 1>} : memref<32x128xf32, #tpu.memory_space<vmem>>, vector<16x128xf32>
    %c1 = arith.constant 1 : index
    %c0_8 = arith.constant 0 : index
    %13 = tpu.strided_load %arg5[%c1, %c0_8] {strides = array<i32: 2, 1>} : memref<32x128xf32, #tpu.memory_space<vmem>>, vector<16x128xf32>
    %14 = arith.maximumf %12, %13 : vector<16x128xf32>
    %c0_9 = arith.constant 0 : index
    %c0_10 = arith.constant 0 : index
    %15 = vector.load %arg3[%c0_9, %c0_10] : memref<1x128xf32, #tpu.memory_space<vmem>>, vector<1x128xf32>
    %16 = vector.broadcast %15 : vector<1x128xf32> to vector<16x128xf32>
    %17 = arith.addf %14, %16 : vector<16x128xf32>
    %18 = arith.truncf %17 : vector<16x128xf32> to vector<16x128xbf16>
    %19 = vector.shape_cast %18 : vector<16x128xbf16> to vector<1x16x128xbf16>
    %c0_11 = arith.constant 0 : index
    %c0_12 = arith.constant 0 : index
    %c0_13 = arith.constant 0 : index
    %20 = vector.load %arg4[%c0_11, %c0_12, %c0_13] : memref<1x16x128xbf16, #tpu.memory_space<vmem>>, vector<1x16x128xbf16>
    tpu.vector_store %arg4[%c0_11, %c0_12, %c0_13], %19 {strides = array<i32>} : memref<1x16x128xbf16, #tpu.memory_space<vmem>>, vector<1x16x128xbf16>,
    return
  }
  func.func @transform_0(%arg0: i32) -> (i32, i32, i32) {
    %c0_i32 = arith.constant 0 : i32
    %c0_i32_0 = arith.constant 0 : i32
    %c0_i32_1 = arith.constant 0 : i32
    return %arg0, %c0_i32, %c0_i32_0 : i32, i32, i32
  }
  func.func @transform_1(%arg0: i32) -> (i32, i32) {
    %c0_i32 = arith.constant 0 : i32
    %c0_i32_0 = arith.constant 0 : i32
    %c0_i32_1 = arith.constant 0 : i32
    return %c0_i32, %c0_i32_0 : i32, i32
  }
  func.func @transform_2(%arg0: i32) -> (i32, i32) {
    %c0_i32 = arith.constant 0 : i32
    %c0_i32_0 = arith.constant 0 : i32
    %c0_i32_1 = arith.constant 0 : i32
    return %c0_i32, %c0_i32_0 : i32, i32
  }
  func.func @transform_3(%arg0: i32) -> (i32, i32, i32) {
    %c0_i32 = arith.constant 0 : i32
    %c0_i32_0 = arith.constant 0 : i32
    %c0_i32_1 = arith.constant 0 : i32
    return %arg0, %c0_i32, %c0_i32_0 : i32, i32, i32
  }
}

module attributes {stable_mosaic.version = 11 : i64} {
  func.func @_classifier_kernel(%arg0: i32, %arg1: memref<2x2048xbf16, #tpu.memory_space<vmem>>, %arg2: memref<2048x128xbf16, #tpu.memory_space<vmem>>, %arg3: memref<1x128xf32, #tpu.memory_space<vmem>>, %arg4: memref<128x128xbf16, #tpu.memory_space<vmem>>, %arg5: memref<1x128xf32, #tpu.memory_space<vmem>>, %arg6: memref<2x128xf32, #tpu.memory_space<vmem>>) attributes {dimension_semantics = [#tpu.dimension_semantics<parallel>], iteration_bounds = array<i64: 1>, scalar_prefetch = 0 : i64, scratch_operands = 0 : i64, tpu.core_type = #tpu.core_type<tc>, window_params = [{transform_indices = @transform_0, window_bounds = array<i64: 2, 2048>}, {pipeline_mode = #tpu.pipeline_mode<synchronous>, transform_indices = @transform_1, window_bounds = array<i64: 2048, 128>}, {pipeline_mode = #tpu.pipeline_mode<synchronous>, transform_indices = @transform_2, window_bounds = array<i64: 1, 128>}, {pipeline_mode = #tpu.pipeline_mode<synchronous>, transform_indices = @transform_3, window_bounds = array<i64: 128, 128>}, {pipeline_mode = #tpu.pipeline_mode<synchronous>, transform_indices = @transform_4, window_bounds = array<i64: 1, 128>}, {transform_indices = @transform_5, window_bounds = array<i64: 2, 128>}]} {
    %c0 = arith.constant 0 : index
    %c0_0 = arith.constant 0 : index
    %0 = vector.load %arg1[%c0, %c0_0] : memref<2x2048xbf16, #tpu.memory_space<vmem>>, vector<2x2048xbf16>
    %c0_1 = arith.constant 0 : index
    %c0_2 = arith.constant 0 : index
    %1 = vector.load %arg2[%c0_1, %c0_2] : memref<2048x128xbf16, #tpu.memory_space<vmem>>, vector<2048x128xbf16>
    %cst = arith.constant dense<0.000000e+00> : vector<2x128xf32>
    %2 = tpu.matmul %0, %1, %cst {dimension_numbers = #tpu.dot_dimension_numbers<[1], [0], [0], [1], [0, 0, 1, 1], [], []>} : vector<2x2048xbf16>, vector<2048x128xbf16>, vector<2x128xf32> -> vector<2x128xf32>
    %c0_3 = arith.constant 0 : index
    %c0_4 = arith.constant 0 : index
    %3 = vector.load %arg3[%c0_3, %c0_4] : memref<1x128xf32, #tpu.memory_space<vmem>>, vector<1x128xf32>
    %4 = vector.broadcast %3 : vector<1x128xf32> to vector<2x128xf32>
    %5 = arith.addf %2, %4 : vector<2x128xf32>
    %6 = arith.truncf %5 : vector<2x128xf32> to vector<2x128xbf16>
    %c0_5 = arith.constant 0 : index
    %c0_6 = arith.constant 0 : index
    %7 = vector.load %arg4[%c0_5, %c0_6] : memref<128x128xbf16, #tpu.memory_space<vmem>>, vector<128x128xbf16>
    %cst_7 = arith.constant dense<0.000000e+00> : vector<2x128xf32>
    %8 = tpu.matmul %6, %7, %cst_7 {dimension_numbers = #tpu.dot_dimension_numbers<[1], [0], [0], [1], [0, 0, 1, 1], [], []>} : vector<2x128xbf16>, vector<128x128xbf16>, vector<2x128xf32> -> vector<2x128xf32>
    %c0_8 = arith.constant 0 : index
    %c0_9 = arith.constant 0 : index
    %9 = vector.load %arg5[%c0_8, %c0_9] : memref<1x128xf32, #tpu.memory_space<vmem>>, vector<1x128xf32>
    %10 = vector.broadcast %9 : vector<1x128xf32> to vector<2x128xf32>
    %11 = arith.addf %8, %10 : vector<2x128xf32>
    %c0_10 = arith.constant 0 : index
    %c0_11 = arith.constant 0 : index
    %12 = vector.load %arg6[%c0_10, %c0_11] : memref<2x128xf32, #tpu.memory_space<vmem>>, vector<2x128xf32>
    tpu.vector_store %arg6[%c0_10, %c0_11], %11 {strides = array<i32>} : memref<2x128xf32, #tpu.memory_space<vmem>>, vector<2x128xf32>,
    return
  }
  func.func @transform_0(%arg0: i32) -> (i32, i32) {
    %c0_i32 = arith.constant 0 : i32
    %c0_i32_0 = arith.constant 0 : i32
    return %arg0, %c0_i32 : i32, i32
  }
  func.func @transform_1(%arg0: i32) -> (i32, i32) {
    %c0_i32 = arith.constant 0 : i32
    %c0_i32_0 = arith.constant 0 : i32
    %c0_i32_1 = arith.constant 0 : i32
    return %c0_i32, %c0_i32_0 : i32, i32
  }
  func.func @transform_2(%arg0: i32) -> (i32, i32) {
    %c0_i32 = arith.constant 0 : i32
    %c0_i32_0 = arith.constant 0 : i32
    %c0_i32_1 = arith.constant 0 : i32
    return %c0_i32, %c0_i32_0 : i32, i32
  }
  func.func @transform_3(%arg0: i32) -> (i32, i32) {
    %c0_i32 = arith.constant 0 : i32
    %c0_i32_0 = arith.constant 0 : i32
    %c0_i32_1 = arith.constant 0 : i32
    return %c0_i32, %c0_i32_0 : i32, i32
  }
  func.func @transform_4(%arg0: i32) -> (i32, i32) {
    %c0_i32 = arith.constant 0 : i32
    %c0_i32_0 = arith.constant 0 : i32
    %c0_i32_1 = arith.constant 0 : i32
    return %c0_i32, %c0_i32_0 : i32, i32
  }
  func.func @transform_5(%arg0: i32) -> (i32, i32) {
    %c0_i32 = arith.constant 0 : i32
    %c0_i32_0 = arith.constant 0 : i32
    return %arg0, %c0_i32 : i32, i32
  }
}

</mosaic_0001>

<bundles_post_ra>
// kernel: nnmodel_forward.4
= control target key start
LH: loop header
LB: loop body
LE: loop exit
PB: predicated region body
PF: predicated region fallthrough
CT: control target
= control target key end

     0   :  { %s2047_s12 = smov 0   ;;  %s2241_s0 = inlined_call_operand.vmem [shape: bf16[2,1024,128], index: 0, kind: input, shape index: {}]   ;;  %s2242_s1 = inlined_call_operand.vmem [shape: bf16[128,128], index: 1, kind: input, shape index: {}]   ;;  %s2243_s2 = inlined_call_operand.vmem [shape: f32[1,128], index: 2, kind: input, shape index: {}]   ;;  %s2244_s3 = inlined_call_operand.vmem [shape: bf16[2,256,128], index: 3, kind: output, shape index: {}]  }
   0x1 LB: > { %s1518_s13 = sadd.s32 4294967295, %s2025_s12   ;;  %p1522_p0 = scmp.ge.s32.totalorder %s2025_s12, 1  ;;  %s2025_s12 = sphi %s2047_s12, %s13_s12  }
   0x2   : > { %p137_p1 = scmp.lt.s32.totalorder %s2025_s12, 3 }
   0x4   : > { %p138_p2 = pnand %p1522_p0, %p137_p1 }
   0x5   : > { %p161_p3 = scmp.lt.s32.totalorder (!%p138_p2), %s1518_s13, 1 }
   0x6   : > { %141 = sbr.rel (%p138_p2) target bundleno = 442 (0x1ba), region = 32 }
   0xb   : > { %v1890_v0 = vld [vmem:[%s2242_s1 + $0x38] sm:$0xff]  ;;  %v1889_v1 = vld [vmem:[%s2242_s1 + $0x30] sm:$0xff]  ;;  %v1888_v2 = vld [vmem:[%s2242_s1 + $0x28] sm:$0xff]  ;;  %s2246_s13 = smov (!%p161_p3, %s1518_s13), 1 }
   0xc   : > { %747 = vmatpush.bf16.msra.mxu0 %v1890_v0  ;;  %1986 = vmatpush.bf16.msra.mxu1 %v1890_v0  ;;  %v1887_v3 = vld [vmem:[%s2242_s1 + $0x20] sm:$0xff]  ;;  %v1886_v4 = vld [vmem:[%s2242_s1 + $0x18] sm:$0xff]  ;;  %v1885_v5 = vld [vmem:[%s2242_s1 + $0x10] sm:$0xff]  ;;  %s1817_s28 = sshll.u32 %s2246_s13, 9  ;;  %s1818_s9 = sshll.u32 %s2246_s13, 7 }
   0xd   : > { %1987 = vmatpush.bf16.msra.mxu2 %v1890_v0  ;;  %1988 = vmatpush.bf16.msra.mxu3 %v1890_v0  ;;  %v1884_v6 = vld [vmem:[%s2242_s1 + $0x8] sm:$0xff]  ;;  %v1883_v7 = vld [vmem:[%s2242_s1] sm:$0xff]  ;;  %s2089_s6 = scalar_lea.vmem %s2241_s0, %s1817_s28  ;;  %s2165_s13 = scalar_lea.vmem %s2244_s3, %s1818_s9 }
   0xe   : > { %v1819_v8 = vld [vmem:[%s2089_s6] sm:$0xff]  ;;  %v1820_v12 = vld [vmem:[%s2089_s6 + $0x8] sm:$0xff]  ;;  %v1821_v16 = vld [vmem:[%s2089_s6 + $0x10] sm:$0xff] }
   0xf   : > { %v1835_v9 = vld [vmem:[%s2089_s6 + $0x80] sm:$0xff]  ;;  %v1836_v13 = vld [vmem:[%s2089_s6 + $0x88] sm:$0xff]  ;;  %v1837_v17 = vld [vmem:[%s2089_s6 + $0x90] sm:$0xff] }
  0x10   : > { %748 = vmatpush.bf16.msra.mxu0 %v1889_v1  ;;  %1989 = vmatpush.bf16.msra.mxu1 %v1889_v1  ;;  %v1851_v10 = vld [vmem:[%s2089_s6 + $0x100] sm:$0xff]  ;;  %v1852_v14 = vld [vmem:[%s2089_s6 + $0x108] sm:$0xff]  ;;  %v1853_v18 = vld [vmem:[%s2089_s6 + $0x110] sm:$0xff] }
  0x11   : > { %1990 = vmatpush.bf16.msra.mxu2 %v1889_v1  ;;  %1991 = vmatpush.bf16.msra.mxu3 %v1889_v1  ;;  %v1867_v11 = vld [vmem:[%s2089_s6 + $0x180] sm:$0xff]  ;;  %v1868_v15 = vld [vmem:[%s2089_s6 + $0x188] sm:$0xff]  ;;  %v1869_v19 = vld [vmem:[%s2089_s6 + $0x190] sm:$0xff] }
  0x12   : > { %v1822_v20 = vld [vmem:[%s2089_s6 + $0x18] sm:$0xff]  ;;  %v1823_v24 = vld [vmem:[%s2089_s6 + $0x20] sm:$0xff]  ;;  %v1824_v28 = vld [vmem:[%s2089_s6 + $0x28] sm:$0xff] }
  0x13   : > { %v1838_v21 = vld [vmem:[%s2089_s6 + $0x98] sm:$0xff]  ;;  %v1839_v25 = vld [vmem:[%s2089_s6 + $0xa0] sm:$0xff]  ;;  %v1840_v29 = vld [vmem:[%s2089_s6 + $0xa8] sm:$0xff] }
  0x14   : > { %749 = vmatpush.bf16.msra.mxu0 %v1888_v2  ;;  %1992 = vmatpush.bf16.msra.mxu1 %v1888_v2  ;;  %v1854_v22 = vld [vmem:[%s2089_s6 + $0x118] sm:$0xff]  ;;  %v1855_v26 = vld [vmem:[%s2089_s6 + $0x120] sm:$0xff]  ;;  %v1856_v30 = vld [vmem:[%s2089_s6 + $0x128] sm:$0xff] }
  0x15   : > { %1993 = vmatpush.bf16.msra.mxu2 %v1888_v2  ;;  %1994 = vmatpush.bf16.msra.mxu3 %v1888_v2  ;;  %v1870_v23 = vld [vmem:[%s2089_s6 + $0x198] sm:$0xff]  ;;  %v1871_v27 = vld [vmem:[%s2089_s6 + $0x1a0] sm:$0xff]  ;;  %v1872_v31 = vld [vmem:[%s2089_s6 + $0x1a8] sm:$0xff] }
  0x16   : > { %v1825_v32 = vld [vmem:[%s2089_s6 + $0x30] sm:$0xff]  ;;  %v1826_v36 = vld [vmem:[%s2089_s6 + $0x38] sm:$0xff]  ;;  %v1827_v40 = vld [vmem:[%s2089_s6 + $0x40] sm:$0xff] }
  0x17   : > { %v1841_v33 = vld [vmem:[%s2089_s6 + $0xb0] sm:$0xff]  ;;  %v1842_v37 = vld [vmem:[%s2089_s6 + $0xb8] sm:$0xff]  ;;  %v1843_v41 = vld [vmem:[%s2089_s6 + $0xc0] sm:$0xff] }
  0x18   : > { %750 = vmatpush.bf16.msra.mxu0 %v1887_v3  ;;  %1995 = vmatpush.bf16.msra.mxu1 %v1887_v3  ;;  %v1857_v34 = vld [vmem:[%s2089_s6 + $0x130] sm:$0xff]  ;;  %v1858_v38 = vld [vmem:[%s2089_s6 + $0x138] sm:$0xff]  ;;  %v1859_v44 = vld [vmem:[%s2089_s6 + $0x140] sm:$0xff] }
  0x19   : > { %1996 = vmatpush.bf16.msra.mxu2 %v1887_v3  ;;  %1997 = vmatpush.bf16.msra.mxu3 %v1887_v3  ;;  %v1873_v35 = vld [vmem:[%s2089_s6 + $0x1b0] sm:$0xff]  ;;  %v1874_v39 = vld [vmem:[%s2089_s6 + $0x1b8] sm:$0xff]  ;;  %v1875_v45 = vld [vmem:[%s2089_s6 + $0x1c0] sm:$0xff] }
  0x1a   : > { %v1828_v52 = vld [vmem:[%s2089_s6 + $0x48] sm:$0xff]  ;;  %v1829_v0 = vld [vmem:[%s2089_s6 + $0x50] sm:$0xff] }
  0x1b   : > { %v1844_v53 = vld [vmem:[%s2089_s6 + $0xc8] sm:$0xff]  ;;  %v1845_v1 = vld [vmem:[%s2089_s6 + $0xd0] sm:$0xff] }
  0x1c   : > { %751 = vmatpush.bf16.msra.mxu0 %v1886_v4  ;;  %1998 = vmatpush.bf16.msra.mxu1 %v1886_v4  ;;  %v1860_v56 = vld [vmem:[%s2089_s6 + $0x148] sm:$0xff] }
  0x1d   : > { %1999 = vmatpush.bf16.msra.mxu2 %v1886_v4  ;;  %2000 = vmatpush.bf16.msra.mxu3 %v1886_v4  ;;  %v1876_v57 = vld [vmem:[%s2089_s6 + $0x1c8] sm:$0xff]  ;;  %v1861_v4 = vld [vmem:[%s2089_s6 + $0x150] sm:$0xff] }
  0x20   : > { %752 = vmatpush.bf16.msra.mxu0 %v1885_v5  ;;  %2001 = vmatpush.bf16.msra.mxu1 %v1885_v5 }
  0x21   : > { %2002 = vmatpush.bf16.msra.mxu2 %v1885_v5  ;;  %2003 = vmatpush.bf16.msra.mxu3 %v1885_v5  ;;  %v1877_v5 = vld [vmem:[%s2089_s6 + $0x1d0] sm:$0xff] }
  0x24   : > { %753 = vmatpush.bf16.msra.mxu0 %v1884_v6  ;;  %2004 = vmatpush.bf16.msra.mxu1 %v1884_v6 }
  0x25   : > { %2005 = vmatpush.bf16.msra.mxu2 %v1884_v6  ;;  %2006 = vmatpush.bf16.msra.mxu3 %v1884_v6 }
  0x28   : > { %754 = vmatpush.bf16.msra.mxu0 %v1883_v7  ;;  %2007 = vmatpush.bf16.msra.mxu1 %v1883_v7 }
  0x29   : > { %2008 = vmatpush.bf16.msra.mxu2 %v1883_v7  ;;  %2009 = vmatpush.bf16.msra.mxu3 %v1883_v7 }
  0x2b   : > { %755 = vmatmul.bf16.vlgmr.msra.gmra.mxu0 %v1819_v8  ;;  %835 = vmatmul.bf16.vlgmr.msra.gmra.mxu1 %v1835_v9 }
  0x2c   : > { %915 = vmatmul.bf16.vlgmr.msra.gmra.mxu2 %v1851_v10  ;;  %995 = vmatmul.bf16.vlgmr.msra.gmra.mxu3 %v1867_v11 }
  0x3b   : > { %760 = vmatmul.bf16.gmra.mxu0 %v1820_v12  ;;  %840 = vmatmul.bf16.gmra.mxu1 %v1836_v13 }
  0x3c   : > { %920 = vmatmul.bf16.gmra.mxu2 %v1852_v14  ;;  %1000 = vmatmul.bf16.gmra.mxu3 %v1868_v15 }
  0x4b   : > { %765 = vmatmul.bf16.gmra.mxu0 %v1821_v16  ;;  %845 = vmatmul.bf16.gmra.mxu1 %v1837_v17 }
  0x4c   : > { %925 = vmatmul.bf16.gmra.mxu2 %v1853_v18  ;;  %1005 = vmatmul.bf16.gmra.mxu3 %v1869_v19  ;;  %v1830_v18 = vld [vmem:[%s2089_s6 + $0x58] sm:$0xff] }
  0x4d   : > { %v1846_v19 = vld [vmem:[%s2089_s6 + $0xd8] sm:$0xff] }
  0x5b   : > { %770 = vmatmul.bf16.gmra.mxu0 %v1822_v20  ;;  %850 = vmatmul.bf16.gmra.mxu1 %v1838_v21 }
  0x5c   : > { %930 = vmatmul.bf16.gmra.mxu2 %v1854_v22  ;;  %1010 = vmatmul.bf16.gmra.mxu3 %v1870_v23 }
  0x6b   : > { %775 = vmatmul.bf16.gmra.mxu0 %v1823_v24  ;;  %855 = vmatmul.bf16.gmra.mxu1 %v1839_v25  ;;  %v1862_v24 = vld [vmem:[%s2089_s6 + $0x158] sm:$0xff] }
  0x6c   : > { %935 = vmatmul.bf16.gmra.mxu2 %v1855_v26  ;;  %1015 = vmatmul.bf16.gmra.mxu3 %v1871_v27  ;;  %v1878_v25 = vld [vmem:[%s2089_s6 + $0x1d8] sm:$0xff] }
  0x7b   : > { %780 = vmatmul.bf16.gmra.mxu0 %v1824_v28  ;;  %860 = vmatmul.bf16.gmra.mxu1 %v1840_v29 }
  0x7c   : > { %940 = vmatmul.bf16.gmra.mxu2 %v1856_v30  ;;  %1020 = vmatmul.bf16.gmra.mxu3 %v1872_v31 }
  0x8b   : > { %785 = vmatmul.bf16.gmra.mxu0 %v1825_v32  ;;  %865 = vmatmul.bf16.gmra.mxu1 %v1841_v33 }
  0x8c   : > { %945 = vmatmul.bf16.gmra.mxu2 %v1857_v34  ;;  %1025 = vmatmul.bf16.gmra.mxu3 %v1873_v35 }
  0x9b   : > { %790 = vmatmul.bf16.gmra.mxu0 %v1826_v36  ;;  %870 = vmatmul.bf16.gmra.mxu1 %v1842_v37  ;;  %v1831_v36 = vld [vmem:[%s2089_s6 + $0x60] sm:$0xff] }
  0x9c   : > { %950 = vmatmul.bf16.gmra.mxu2 %v1858_v38  ;;  %1030 = vmatmul.bf16.gmra.mxu3 %v1874_v39  ;;  %v1847_v37 = vld [vmem:[%s2089_s6 + $0xe0] sm:$0xff] }
  0xa8   : > { %v756_v42 = vpop.f32.mrf.mxu0  ;;  %v836_v43 = vpop.f32.mrf.mxu1 }
  0xab   : > { %795 = vmatmul.bf16.gmra.mxu0 %v1827_v40  ;;  %875 = vmatmul.bf16.gmra.mxu1 %v1843_v41 }
  0xac   : > { %955 = vmatmul.bf16.gmra.mxu2 %v1859_v44  ;;  %1035 = vmatmul.bf16.gmra.mxu3 %v1875_v45 }
  0xaf   : > { %v916_v46 = vpop.f32.mrf.mxu2  ;;  %v996_v47 = vpop.f32.mrf.mxu3 }
  0xb0   : > { %v758_v48 = vpop.f32.mrf.mxu0  ;;  %v838_v49 = vpop.f32.mrf.mxu1 }
  0xb7   : > { %v918_v50 = vpop.f32.mrf.mxu2  ;;  %v998_v51 = vpop.f32.mrf.mxu3 }
  0xb8   : > { %v761_v54 = vpop.f32.mrf.mxu0  ;;  %v841_v55 = vpop.f32.mrf.mxu1 }
  0xbb   : > { %800 = vmatmul.bf16.gmra.mxu0 %v1828_v52  ;;  %880 = vmatmul.bf16.gmra.mxu1 %v1844_v53 }
  0xbc   : > { %960 = vmatmul.bf16.gmra.mxu2 %v1860_v56  ;;  %1040 = vmatmul.bf16.gmra.mxu3 %v1876_v57 }
  0xbf   : > { %v921_v58 = vpop.f32.mrf.mxu2  ;;  %v1001_v59 = vpop.f32.mrf.mxu3 }
  0xc0   : > { %v763_v60 = vpop.f32.mrf.mxu0  ;;  %v843_v61 = vpop.f32.mrf.mxu1 }
  0xc7   : > { %v2131_v62 = vpop.f32.mrf.mxu2  ;;  %v2133_v63 = vpop.f32.mrf.mxu3 }
  0xc8   : > { %v766_v2 = vpop.f32.mrf.mxu0  ;;  %v846_v3 = vpop.f32.mrf.mxu1 }
  0xc9   : > { %v1076_v6 = vmax.f32 %v756_v42, %v766_v2  ;;  %v1092_v7 = vmax.f32 %v836_v43, %v846_v3  ;;  %v1863_v42 = vld [vmem:[%s2089_s6 + $0x160] sm:$0xff] }
  0xcb   : > { %1140 = vst [vmem:[#allocation2] sm:$0xff] %v1076_v6  ;;  %805 = vmatmul.bf16.gmra.mxu0 %v1829_v0  ;;  %885 = vmatmul.bf16.gmra.mxu1 %v1845_v1 }
  0xcc   : > { %1156 = vst [vmem:[#allocation2 + $0x80] sm:$0xff] %v1092_v7  ;;  %965 = vmatmul.bf16.gmra.mxu2 %v1861_v4  ;;  %1045 = vmatmul.bf16.gmra.mxu3 %v1877_v5 }
  0xcf   : > { %v926_v8 = vpop.f32.mrf.mxu2  ;;  %v1006_v9 = vpop.f32.mrf.mxu3 }
  0xd0   : > { %v1108_v10 = vmax.f32 %v916_v46, %v926_v8  ;;  %v1124_v11 = vmax.f32 %v996_v47, %v1006_v9  ;;  %v768_v12 = vpop.f32.mrf.mxu0  ;;  %v848_v13 = vpop.f32.mrf.mxu1 }
  0xd1   : > { %v1077_v14 = vmax.f32 %v758_v48, %v768_v12  ;;  %v1093_v15 = vmax.f32 %v838_v49, %v848_v13  ;;  %v1879_v49 = vld [vmem:[%s2089_s6 + $0x1e0] sm:$0xff] }
  0xd2   : > { %1172 = vst [vmem:[#allocation2 + $0x100] sm:$0xff] %v1108_v10 }
  0xd3   : > { %1188 = vst [vmem:[#allocation2 + $0x180] sm:$0xff] %v1124_v11 }
  0xd4   : > { %1141 = vst [vmem:[#allocation2 + $0x8] sm:$0xff] %v1077_v14 }
  0xd5   : > { %1157 = vst [vmem:[#allocation2 + $0x88] sm:$0xff] %v1093_v15 }
  0xd7   : > { %v928_v16 = vpop.f32.mrf.mxu2  ;;  %v1008_v17 = vpop.f32.mrf.mxu3 }
  0xd8   : > { %v1109_v20 = vmax.f32 %v918_v50, %v928_v16  ;;  %v1125_v21 = vmax.f32 %v998_v51, %v1008_v17  ;;  %v771_v22 = vpop.f32.mrf.mxu0  ;;  %v851_v23 = vpop.f32.mrf.mxu1  ;;  %v2156_v51 = vld [vmem:[%s2243_s2] ss:$0 sm:$0xff] }
  0xd9   : > { %v1078_v26 = vmax.f32 %v761_v54, %v771_v22  ;;  %v1094_v27 = vmax.f32 %v841_v55, %v851_v23 }
  0xda   : > { %1173 = vst [vmem:[#allocation2 + $0x108] sm:$0xff] %v1109_v20 }
  0xdb   : > { %1189 = vst [vmem:[#allocation2 + $0x188] sm:$0xff] %v1125_v21  ;;  %810 = vmatmul.bf16.gmra.mxu0 %v1830_v18  ;;  %890 = vmatmul.bf16.gmra.mxu1 %v1846_v19  ;;  %v1204_v38 = vld [vmem:[#allocation2] ss:$2 sm:$0xff]  ;;  %v1268_v39 = vld [vmem:[#allocation2 + $0x1] ss:$2 sm:$0xff] }
  0xdc   : > { %1142 = vst [vmem:[#allocation2 + $0x10] sm:$0xff] %v1078_v26  ;;  %970 = vmatmul.bf16.gmra.mxu2 %v1862_v24  ;;  %1050 = vmatmul.bf16.gmra.mxu3 %v1878_v25  ;;  %v1220_v43 = vld [vmem:[#allocation2 + $0x80] ss:$2 sm:$0xff]  ;;  %v1284_v44 = vld [vmem:[#allocation2 + $0x81] ss:$2 sm:$0xff]  ;;  %v1331_v50 = vmax.f32 %v1204_v38, %v1268_v39  ;;  %v1849_v38 = vld [vmem:[%s2089_s6 + $0xf0] sm:$0xff] }
  0xdd   : > { %1158 = vst [vmem:[#allocation2 + $0x90] sm:$0xff] %v1094_v27  ;;  %v1339_v52 = vmax.f32 %v1220_v43, %v1284_v44  ;;  %v1832_v25 = vld [vmem:[%s2089_s6 + $0x68] sm:$0xff] }
  0xde   : > { %v1848_v26 = vld [vmem:[%s2089_s6 + $0xe8] sm:$0xff] }
  0xdf   : > { %v931_v28 = vpop.f32.mrf.mxu2  ;;  %v1011_v29 = vpop.f32.mrf.mxu3  ;;  %v1375_v1 = vadd.f32 %v2156_v51, %v1339_v52 }
  0xe0   : > { %v1110_v30 = vmax.f32 %v921_v58, %v931_v28  ;;  %v1126_v31 = vmax.f32 %v1001_v59, %v1011_v29  ;;  %v773_v32 = vpop.f32.mrf.mxu0  ;;  %v853_v33 = vpop.f32.mrf.mxu1  ;;  %v1864_v29 = vld [vmem:[%s2089_s6 + $0x168] sm:$0xff] }
  0xe1   : > { %v1079_v34 = vmax.f32 %v763_v60, %v773_v32  ;;  %v1095_v35 = vmax.f32 %v843_v61, %v853_v33  ;;  %v1236_v58 = vld [vmem:[#allocation2 + $0x100] ss:$2 sm:$0xff]  ;;  %v1300_v59 = vld [vmem:[#allocation2 + $0x101] ss:$2 sm:$0xff]  ;;  %v1367_v61 = vadd.f32 %v2156_v51, %v1331_v50 }
  0xe2   : > { %1174 = vst [vmem:[#allocation2 + $0x110] sm:$0xff] %v1110_v30  ;;  %v1347_v5 = vmax.f32 %v1236_v58, %v1300_v59  ;;  %v1880_v30 = vld [vmem:[%s2089_s6 + $0x1e8] sm:$0xff] }
  0xe3   : > { %1190 = vst [vmem:[#allocation2 + $0x190] sm:$0xff] %v1126_v31 }
  0xe4   : > { %1143 = vst [vmem:[#allocation2 + $0x18] sm:$0xff] %v1079_v34  ;;  %v1383_v17 = vadd.f32 %v2156_v51, %v1347_v5 }
  0xe5   : > { %1159 = vst [vmem:[#allocation2 + $0x98] sm:$0xff] %v1095_v35 }
  0xe7   : > { %v933_v40 = vpop.f32.mrf.mxu2  ;;  %v1013_v41 = vpop.f32.mrf.mxu3 }
  0xe8   : > { %v1111_v45 = vmax.f32 %v2131_v62, %v933_v40  ;;  %v1127_v46 = vmax.f32 %v2133_v63, %v1013_v41  ;;  %v2148_v47 = vpop.f32.mrf.mxu0  ;;  %v2150_v48 = vpop.f32.mrf.mxu1  ;;  %v1252_v62 = vld [vmem:[#allocation2 + $0x180] ss:$2 sm:$0xff]  ;;  %v1316_v63 = vld [vmem:[#allocation2 + $0x181] ss:$2 sm:$0xff]  ;;  %v1865_v41 = vld [vmem:[%s2089_s6 + $0x170] sm:$0xff] }
  0xe9   : > { %v1355_v9 = vmax.f32 %v1252_v62, %v1316_v63  ;;  %v1866_v62 = vld [vmem:[%s2089_s6 + $0x178] sm:$0xff] }
  0xea   : > { %1175 = vst [vmem:[#allocation2 + $0x118] sm:$0xff] %v1111_v45  ;;  %v1882_v63 = vld [vmem:[%s2089_s6 + $0x1f8] sm:$0xff] }
  0xeb   : > { %v1206_v53 = vld [vmem:[#allocation2 + $0x10] ss:$2 sm:$0xff]  ;;  %v1270_v54 = vld [vmem:[#allocation2 + $0x11] ss:$2 sm:$0xff]  ;;  %1191 = vst [vmem:[#allocation2 + $0x198] sm:$0xff] %v1127_v46  ;;  %815 = vmatmul.bf16.gmra.mxu0 %v1831_v36  ;;  %895 = vmatmul.bf16.gmra.mxu1 %v1847_v37  ;;  %v1391_v19 = vadd.f32 %v2156_v51, %v1355_v9 }
  0xec   : > { %v1332_v55 = vmax.f32 %v1206_v53, %v1270_v54  ;;  %v1222_v56 = vld [vmem:[#allocation2 + $0x90] ss:$2 sm:$0xff]  ;;  %v1286_v57 = vld [vmem:[#allocation2 + $0x91] ss:$2 sm:$0xff]  ;;  %975 = vmatmul.bf16.gmra.mxu2 %v1863_v42  ;;  %1055 = vmatmul.bf16.gmra.mxu3 %v1879_v49 }
  0xed   : > { %v1340_v60 = vmax.f32 %v1222_v56, %v1286_v57  ;;  %v1833_v37 = vld [vmem:[%s2089_s6 + $0x70] sm:$0xff]  ;;  %v1834_v56 = vld [vmem:[%s2089_s6 + $0x78] sm:$0xff] }
  0xee   : > { %v1368_v0 = vadd.f32 %v2156_v51, %v1332_v55  ;;  %v1881_v42 = vld [vmem:[%s2089_s6 + $0x1f0] sm:$0xff]  ;;  %v1850_v57 = vld [vmem:[%s2089_s6 + $0xf8] sm:$0xff] }
  0xef   : > { %v1376_v2 = vadd.f32 %v2156_v51, %v1340_v60  ;;  %v2168_v3 = vpop.f32.mrf.mxu2  ;;  %v2170_v4 = vpop.f32.mrf.mxu3 }
  0xf0   : > { %v1894_v6 = vpack.c.bf16 %v1368_v0, %v1367_v61  ;;  %v778_v7 = vpop.f32.mrf.mxu0  ;;  %v858_v8 = vpop.f32.mrf.mxu1 }
  0xf1   : > { %v1914_v10 = vpack.c.bf16 %v1376_v2, %v1375_v1  ;;  %v1238_v11 = vld [vmem:[#allocation2 + $0x110] ss:$2 sm:$0xff]  ;;  %v1302_v12 = vld [vmem:[#allocation2 + $0x111] ss:$2 sm:$0xff] }
  0xf2   : > { %1895 = vst [vmem:[%s2165_s13] sm:$0xff] %v1894_v6   ;;  %v1348_v13 = vmax.f32 %v1238_v11, %v1302_v12  ;;  %v1254_v14 = vld [vmem:[#allocation2 + $0x190] ss:$2 sm:$0xff]  ;;  %v1318_v15 = vld [vmem:[#allocation2 + $0x191] ss:$2 sm:$0xff] }
  0xf3   : > { %1974 = vst [vmem:[%s2165_s13 + $0x20] sm:$0xff] %v1914_v10   ;;  %v1356_v16 = vmax.f32 %v1254_v14, %v1318_v15 }
  0xf4   : > { %v1384_v18 = vadd.f32 %v2156_v51, %v1348_v13 }
  0xf5   : > { %v1392_v20 = vadd.f32 %v2156_v51, %v1356_v16 }
  0xf6   : > { %v1934_v21 = vpack.c.bf16 %v1384_v18, %v1383_v17 }
  0xf7   : > { %v1954_v22 = vpack.c.bf16 %v1392_v20, %v1391_v19  ;;  %v938_v23 = vpop.f32.mrf.mxu2  ;;  %v1018_v24 = vpop.f32.mrf.mxu3 }
  0xf8   : > { %1978 = vst [vmem:[%s2165_s13 + $0x40] sm:$0xff] %v1934_v21   ;;  %v781_v27 = vpop.f32.mrf.mxu0  ;;  %v861_v28 = vpop.f32.mrf.mxu1 }
  0xf9   : > { %1982 = vst [vmem:[%s2165_s13 + $0x60] sm:$0xff] %v1954_v22  }
  0xfb   : > { %820 = vmatmul.bf16.gmra.mxu0 %v1832_v25  ;;  %900 = vmatmul.bf16.gmra.mxu1 %v1848_v26 }
  0xfc   : > { %980 = vmatmul.bf16.gmra.mxu2 %v1864_v29  ;;  %1060 = vmatmul.bf16.gmra.mxu3 %v1880_v30 }
  0xff   : > { %v941_v31 = vpop.f32.mrf.mxu2  ;;  %v1021_v32 = vpop.f32.mrf.mxu3 }
 0x100   : > { %v783_v33 = vpop.f32.mrf.mxu0  ;;  %v863_v34 = vpop.f32.mrf.mxu1 }
 0x107   : > { %v2184_v35 = vpop.f32.mrf.mxu2  ;;  %v2186_v36 = vpop.f32.mrf.mxu3 }
 0x108   : > { %v786_v39 = vpop.f32.mrf.mxu0  ;;  %v866_v40 = vpop.f32.mrf.mxu1 }
 0x109   : > { %v1080_v43 = vmax.f32 %v2148_v47, %v786_v39  ;;  %v1096_v44 = vmax.f32 %v2150_v48, %v866_v40 }
 0x10b   : > { %1144 = vst [vmem:[#allocation2 + $0x20] sm:$0xff] %v1080_v43  ;;  %825 = vmatmul.bf16.gmra.mxu0 %v1833_v37  ;;  %905 = vmatmul.bf16.gmra.mxu1 %v1849_v38 }
 0x10c   : > { %1160 = vst [vmem:[#allocation2 + $0xa0] sm:$0xff] %v1096_v44  ;;  %985 = vmatmul.bf16.gmra.mxu2 %v1865_v41  ;;  %1065 = vmatmul.bf16.gmra.mxu3 %v1881_v42 }
 0x10f   : > { %v946_v45 = vpop.f32.mrf.mxu2  ;;  %v1026_v46 = vpop.f32.mrf.mxu3 }
 0x110   : > { %v1112_v49 = vmax.f32 %v2168_v3, %v946_v45  ;;  %v1128_v50 = vmax.f32 %v2170_v4, %v1026_v46  ;;  %v788_v52 = vpop.f32.mrf.mxu0  ;;  %v868_v53 = vpop.f32.mrf.mxu1 }
 0x111   : > { %v1081_v47 = vmax.f32 %v778_v7, %v788_v52  ;;  %v1097_v48 = vmax.f32 %v858_v8, %v868_v53 }
 0x112   : > { %1176 = vst [vmem:[#allocation2 + $0x120] sm:$0xff] %v1112_v49 }
 0x113   : > { %1192 = vst [vmem:[#allocation2 + $0x1a0] sm:$0xff] %v1128_v50 }
 0x114   : > { %1145 = vst [vmem:[#allocation2 + $0x28] sm:$0xff] %v1081_v47 }
 0x115   : > { %1161 = vst [vmem:[#allocation2 + $0xa8] sm:$0xff] %v1097_v48 }
 0x117   : > { %v948_v54 = vpop.f32.mrf.mxu2  ;;  %v1028_v55 = vpop.f32.mrf.mxu3 }
 0x118   : > { %v1113_v58 = vmax.f32 %v938_v23, %v948_v54  ;;  %v1129_v59 = vmax.f32 %v1018_v24, %v1028_v55  ;;  %v791_v60 = vpop.f32.mrf.mxu0  ;;  %v871_v61 = vpop.f32.mrf.mxu1 }
 0x119   : > { %v1082_v0 = vmax.f32 %v781_v27, %v791_v60  ;;  %v1098_v1 = vmax.f32 %v861_v28, %v871_v61 }
 0x11a   : > { %1177 = vst [vmem:[#allocation2 + $0x128] sm:$0xff] %v1113_v58 }
 0x11b   : > { %1193 = vst [vmem:[#allocation2 + $0x1a8] sm:$0xff] %v1129_v59  ;;  %830 = vmatmul.bf16.gmra.mxu0 %v1834_v56  ;;  %910 = vmatmul.bf16.gmra.mxu1 %v1850_v57  ;;  %v1208_v10 = vld [vmem:[#allocation2 + $0x20] ss:$2 sm:$0xff]  ;;  %v1272_v11 = vld [vmem:[#allocation2 + $0x21] ss:$2 sm:$0xff] }
 0x11c   : > { %1146 = vst [vmem:[#allocation2 + $0x30] sm:$0xff] %v1082_v0  ;;  %990 = vmatmul.bf16.gmra.mxu2 %v1866_v62  ;;  %1070 = vmatmul.bf16.gmra.mxu3 %v1882_v63  ;;  %v1224_v14 = vld [vmem:[#allocation2 + $0xa0] ss:$2 sm:$0xff]  ;;  %v1288_v15 = vld [vmem:[#allocation2 + $0xa1] ss:$2 sm:$0xff]  ;;  %v1333_v20 = vmax.f32 %v1208_v10, %v1272_v11 }
 0x11d   : > { %1162 = vst [vmem:[#allocation2 + $0xb0] sm:$0xff] %v1098_v1  ;;  %v1341_v21 = vmax.f32 %v1224_v14, %v1288_v15 }
 0x11e   : > { %v1369_v30 = vadd.f32 %v2156_v51, %v1333_v20 }
 0x11f   : > { %v951_v2 = vpop.f32.mrf.mxu2  ;;  %v1031_v3 = vpop.f32.mrf.mxu3 }
 0x120   : > { %v1114_v4 = vmax.f32 %v941_v31, %v951_v2  ;;  %v1130_v5 = vmax.f32 %v1021_v32, %v1031_v3  ;;  %v793_v6 = vpop.f32.mrf.mxu0  ;;  %v873_v7 = vpop.f32.mrf.mxu1 }
 0x121   : > { %v1083_v8 = vmax.f32 %v783_v33, %v793_v6  ;;  %v1099_v9 = vmax.f32 %v863_v34, %v873_v7  ;;  %v1240_v27 = vld [vmem:[#allocation2 + $0x120] ss:$2 sm:$0xff]  ;;  %v1304_v28 = vld [vmem:[#allocation2 + $0x121] ss:$2 sm:$0xff]  ;;  %v1377_v34 = vadd.f32 %v2156_v51, %v1341_v21 }
 0x122   : > { %1178 = vst [vmem:[#allocation2 + $0x130] sm:$0xff] %v1114_v4  ;;  %v1256_v31 = vld [vmem:[#allocation2 + $0x1a0] ss:$2 sm:$0xff]  ;;  %v1320_v32 = vld [vmem:[#allocation2 + $0x1a1] ss:$2 sm:$0xff]  ;;  %v1349_v38 = vmax.f32 %v1240_v27, %v1304_v28 }
 0x123   : > { %1194 = vst [vmem:[#allocation2 + $0x1b0] sm:$0xff] %v1130_v5  ;;  %v1357_v42 = vmax.f32 %v1256_v31, %v1320_v32 }
 0x124   : > { %1147 = vst [vmem:[#allocation2 + $0x38] sm:$0xff] %v1083_v8  ;;  %v1385_v53 = vadd.f32 %v2156_v51, %v1349_v38 }
 0x125   : > { %1163 = vst [vmem:[#allocation2 + $0xb8] sm:$0xff] %v1099_v9  ;;  %v1393_v48 = vadd.f32 %v2156_v51, %v1357_v42 }
 0x127   : > { %v953_v12 = vpop.f32.mrf.mxu2  ;;  %v1033_v13 = vpop.f32.mrf.mxu3 }
 0x128   : > { %v1115_v16 = vmax.f32 %v2184_v35, %v953_v12  ;;  %v1131_v17 = vmax.f32 %v2186_v36, %v1033_v13  ;;  %v796_v18 = vpop.f32.mrf.mxu0  ;;  %v876_v19 = vpop.f32.mrf.mxu1 }
 0x12a   : > { %1179 = vst [vmem:[#allocation2 + $0x138] sm:$0xff] %v1115_v16 }
 0x12b   : > { %v1210_v22 = vld [vmem:[#allocation2 + $0x30] ss:$2 sm:$0xff]  ;;  %v1274_v23 = vld [vmem:[#allocation2 + $0x31] ss:$2 sm:$0xff]  ;;  %1195 = vst [vmem:[#allocation2 + $0x1b8] sm:$0xff] %v1131_v17 }
 0x12c   : > { %v1334_v24 = vmax.f32 %v1210_v22, %v1274_v23  ;;  %v1226_v25 = vld [vmem:[#allocation2 + $0xb0] ss:$2 sm:$0xff]  ;;  %v1290_v26 = vld [vmem:[#allocation2 + $0xb1] ss:$2 sm:$0xff] }
 0x12d   : > { %v1342_v29 = vmax.f32 %v1226_v25, %v1290_v26 }
 0x12e   : > { %v1370_v33 = vadd.f32 %v2156_v51, %v1334_v24 }
 0x12f   : > { %v1378_v35 = vadd.f32 %v2156_v51, %v1342_v29  ;;  %v956_v36 = vpop.f32.mrf.mxu2  ;;  %v1036_v37 = vpop.f32.mrf.mxu3 }
 0x130   : > { %v1899_v39 = vpack.c.bf16 %v1370_v33, %v1369_v30  ;;  %v798_v40 = vpop.f32.mrf.mxu0  ;;  %v878_v41 = vpop.f32.mrf.mxu1 }
 0x131   : > { %v1919_v43 = vpack.c.bf16 %v1378_v35, %v1377_v34  ;;  %v1242_v44 = vld [vmem:[#allocation2 + $0x130] ss:$2 sm:$0xff]  ;;  %v1306_v45 = vld [vmem:[#allocation2 + $0x131] ss:$2 sm:$0xff] }
 0x132   : > { %1971 = vst [vmem:[%s2165_s13 + $0x8] sm:$0xff] %v1899_v39   ;;  %v1350_v46 = vmax.f32 %v1242_v44, %v1306_v45  ;;  %v1258_v49 = vld [vmem:[#allocation2 + $0x1b0] ss:$2 sm:$0xff]  ;;  %v1322_v50 = vld [vmem:[#allocation2 + $0x1b1] ss:$2 sm:$0xff] }
 0x133   : > { %1975 = vst [vmem:[%s2165_s13 + $0x28] sm:$0xff] %v1919_v43   ;;  %v1358_v52 = vmax.f32 %v1258_v49, %v1322_v50 }
 0x134   : > { %v1386_v47 = vadd.f32 %v2156_v51, %v1350_v46 }
 0x135   : > { %v1394_v54 = vadd.f32 %v2156_v51, %v1358_v52 }
 0x136   : > { %v1939_v55 = vpack.c.bf16 %v1386_v47, %v1385_v53 }
 0x137   : > { %v1959_v56 = vpack.c.bf16 %v1394_v54, %v1393_v48  ;;  %v958_v57 = vpop.f32.mrf.mxu2  ;;  %v1038_v58 = vpop.f32.mrf.mxu3 }
 0x138   : > { %1979 = vst [vmem:[%s2165_s13 + $0x48] sm:$0xff] %v1939_v55   ;;  %v801_v59 = vpop.f32.mrf.mxu0  ;;  %v881_v60 = vpop.f32.mrf.mxu1 }
 0x139   : > { %1983 = vst [vmem:[%s2165_s13 + $0x68] sm:$0xff] %v1959_v56  }
 0x13f   : > { %v961_v61 = vpop.f32.mrf.mxu2  ;;  %v1041_v62 = vpop.f32.mrf.mxu3 }
 0x140   : > { %v803_v63 = vpop.f32.mrf.mxu0  ;;  %v883_v0 = vpop.f32.mrf.mxu1 }
 0x147   : > { %v963_v1 = vpop.f32.mrf.mxu2  ;;  %v1043_v2 = vpop.f32.mrf.mxu3 }
 0x148   : > { %v806_v3 = vpop.f32.mrf.mxu0  ;;  %v886_v4 = vpop.f32.mrf.mxu1 }
 0x149   : > { %v1084_v5 = vmax.f32 %v796_v18, %v806_v3  ;;  %v1100_v6 = vmax.f32 %v876_v19, %v886_v4 }
 0x14b   : > { %1148 = vst [vmem:[#allocation2 + $0x40] sm:$0xff] %v1084_v5 }
 0x14c   : > { %1164 = vst [vmem:[#allocation2 + $0xc0] sm:$0xff] %v1100_v6 }
 0x14f   : > { %v966_v7 = vpop.f32.mrf.mxu2  ;;  %v1046_v8 = vpop.f32.mrf.mxu3 }
 0x150   : > { %v1116_v9 = vmax.f32 %v956_v36, %v966_v7  ;;  %v1132_v10 = vmax.f32 %v1036_v37, %v1046_v8  ;;  %v808_v11 = vpop.f32.mrf.mxu0  ;;  %v888_v12 = vpop.f32.mrf.mxu1 }
 0x151   : > { %v1085_v13 = vmax.f32 %v798_v40, %v808_v11  ;;  %v1101_v14 = vmax.f32 %v878_v41, %v888_v12 }
 0x152   : > { %1180 = vst [vmem:[#allocation2 + $0x140] sm:$0xff] %v1116_v9 }
 0x153   : > { %1196 = vst [vmem:[#allocation2 + $0x1c0] sm:$0xff] %v1132_v10 }
 0x154   : > { %1149 = vst [vmem:[#allocation2 + $0x48] sm:$0xff] %v1085_v13 }
 0x155   : > { %1165 = vst [vmem:[#allocation2 + $0xc8] sm:$0xff] %v1101_v14 }
 0x157   : > { %v968_v15 = vpop.f32.mrf.mxu2  ;;  %v1048_v16 = vpop.f32.mrf.mxu3 }
 0x158   : > { %v1117_v17 = vmax.f32 %v958_v57, %v968_v15  ;;  %v1133_v20 = vmax.f32 %v1038_v58, %v1048_v16  ;;  %v811_v18 = vpop.f32.mrf.mxu0  ;;  %v891_v19 = vpop.f32.mrf.mxu1 }
 0x159   : > { %v1086_v21 = vmax.f32 %v801_v59, %v811_v18  ;;  %v1102_v22 = vmax.f32 %v881_v60, %v891_v19 }
 0x15a   : > { %1181 = vst [vmem:[#allocation2 + $0x148] sm:$0xff] %v1117_v17 }
 0x15b   : > { %1197 = vst [vmem:[#allocation2 + $0x1c8] sm:$0xff] %v1133_v20  ;;  %v1212_v31 = vld [vmem:[#allocation2 + $0x40] ss:$2 sm:$0xff]  ;;  %v1276_v32 = vld [vmem:[#allocation2 + $0x41] ss:$2 sm:$0xff] }
 0x15c   : > { %1150 = vst [vmem:[#allocation2 + $0x50] sm:$0xff] %v1086_v21  ;;  %v1228_v35 = vld [vmem:[#allocation2 + $0xc0] ss:$2 sm:$0xff]  ;;  %v1292_v36 = vld [vmem:[#allocation2 + $0xc1] ss:$2 sm:$0xff]  ;;  %v1335_v41 = vmax.f32 %v1212_v31, %v1276_v32 }
 0x15d   : > { %1166 = vst [vmem:[#allocation2 + $0xd0] sm:$0xff] %v1102_v22  ;;  %v1343_v42 = vmax.f32 %v1228_v35, %v1292_v36 }
 0x15e   : > { %v1371_v47 = vadd.f32 %v2156_v51, %v1335_v41 }
 0x15f   : > { %v971_v23 = vpop.f32.mrf.mxu2  ;;  %v1051_v24 = vpop.f32.mrf.mxu3  ;;  %v1379_v56 = vadd.f32 %v2156_v51, %v1343_v42 }
 0x160   : > { %v1118_v25 = vmax.f32 %v961_v61, %v971_v23  ;;  %v1134_v26 = vmax.f32 %v1041_v62, %v1051_v24  ;;  %v813_v27 = vpop.f32.mrf.mxu0  ;;  %v893_v28 = vpop.f32.mrf.mxu1 }
 0x161   : > { %v1087_v29 = vmax.f32 %v803_v63, %v813_v27  ;;  %v1103_v30 = vmax.f32 %v883_v0, %v893_v28  ;;  %v1244_v50 = vld [vmem:[#allocation2 + $0x140] ss:$2 sm:$0xff]  ;;  %v1308_v52 = vld [vmem:[#allocation2 + $0x141] ss:$2 sm:$0xff] }
 0x162   : > { %1182 = vst [vmem:[#allocation2 + $0x150] sm:$0xff] %v1118_v25  ;;  %v1260_v48 = vld [vmem:[#allocation2 + $0x1c0] ss:$2 sm:$0xff]  ;;  %v1324_v54 = vld [vmem:[#allocation2 + $0x1c1] ss:$2 sm:$0xff]  ;;  %v1351_v60 = vmax.f32 %v1244_v50, %v1308_v52 }
 0x163   : > { %1198 = vst [vmem:[#allocation2 + $0x1d0] sm:$0xff] %v1134_v26  ;;  %v1359_v0 = vmax.f32 %v1260_v48, %v1324_v54 }
 0x164   : > { %1151 = vst [vmem:[#allocation2 + $0x58] sm:$0xff] %v1087_v29  ;;  %v1387_v8 = vadd.f32 %v2156_v51, %v1351_v60 }
 0x165   : > { %1167 = vst [vmem:[#allocation2 + $0xd8] sm:$0xff] %v1103_v30  ;;  %v1395_v10 = vadd.f32 %v2156_v51, %v1359_v0 }
 0x167   : > { %v973_v33 = vpop.f32.mrf.mxu2  ;;  %v1053_v34 = vpop.f32.mrf.mxu3 }
 0x168   : > { %v1119_v37 = vmax.f32 %v963_v1, %v973_v33  ;;  %v1135_v38 = vmax.f32 %v1043_v2, %v1053_v34  ;;  %v816_v39 = vpop.f32.mrf.mxu0  ;;  %v896_v40 = vpop.f32.mrf.mxu1 }
 0x16a   : > { %1183 = vst [vmem:[#allocation2 + $0x158] sm:$0xff] %v1119_v37 }
 0x16b   : > { %v1214_v43 = vld [vmem:[#allocation2 + $0x50] ss:$2 sm:$0xff]  ;;  %v1278_v44 = vld [vmem:[#allocation2 + $0x51] ss:$2 sm:$0xff]  ;;  %1199 = vst [vmem:[#allocation2 + $0x1d8] sm:$0xff] %v1135_v38 }
 0x16c   : > { %v1336_v45 = vmax.f32 %v1214_v43, %v1278_v44  ;;  %v1230_v46 = vld [vmem:[#allocation2 + $0xd0] ss:$2 sm:$0xff]  ;;  %v1294_v49 = vld [vmem:[#allocation2 + $0xd1] ss:$2 sm:$0xff] }
 0x16d   : > { %v1344_v53 = vmax.f32 %v1230_v46, %v1294_v49 }
 0x16e   : > { %v1372_v55 = vadd.f32 %v2156_v51, %v1336_v45 }
 0x16f   : > { %v1380_v57 = vadd.f32 %v2156_v51, %v1344_v53  ;;  %v976_v58 = vpop.f32.mrf.mxu2  ;;  %v1056_v59 = vpop.f32.mrf.mxu3 }
 0x170   : > { %v1904_v61 = vpack.c.bf16 %v1372_v55, %v1371_v47  ;;  %v818_v62 = vpop.f32.mrf.mxu0  ;;  %v898_v63 = vpop.f32.mrf.mxu1 }
 0x171   : > { %v1924_v1 = vpack.c.bf16 %v1380_v57, %v1379_v56  ;;  %v1246_v2 = vld [vmem:[#allocation2 + $0x150] ss:$2 sm:$0xff]  ;;  %v1310_v3 = vld [vmem:[#allocation2 + $0x151] ss:$2 sm:$0xff] }
 0x172   : > { %1972 = vst [vmem:[%s2165_s13 + $0x10] sm:$0xff] %v1904_v61   ;;  %v1352_v4 = vmax.f32 %v1246_v2, %v1310_v3  ;;  %v1262_v5 = vld [vmem:[#allocation2 + $0x1d0] ss:$2 sm:$0xff]  ;;  %v1326_v6 = vld [vmem:[#allocation2 + $0x1d1] ss:$2 sm:$0xff] }
 0x173   : > { %1976 = vst [vmem:[%s2165_s13 + $0x30] sm:$0xff] %v1924_v1   ;;  %v1360_v7 = vmax.f32 %v1262_v5, %v1326_v6 }
 0x174   : > { %v1388_v9 = vadd.f32 %v2156_v51, %v1352_v4 }
 0x175   : > { %v1396_v11 = vadd.f32 %v2156_v51, %v1360_v7 }
 0x176   : > { %v1944_v12 = vpack.c.bf16 %v1388_v9, %v1387_v8 }
 0x177   : > { %v1964_v13 = vpack.c.bf16 %v1396_v11, %v1395_v10  ;;  %v978_v14 = vpop.f32.mrf.mxu2  ;;  %v1058_v15 = vpop.f32.mrf.mxu3 }
 0x178   : > { %1980 = vst [vmem:[%s2165_s13 + $0x50] sm:$0xff] %v1944_v12   ;;  %v821_v16 = vpop.f32.mrf.mxu0  ;;  %v901_v17 = vpop.f32.mrf.mxu1 }
 0x179   : > { %1984 = vst [vmem:[%s2165_s13 + $0x70] sm:$0xff] %v1964_v13  }
 0x17f   : > { %v981_v20 = vpop.f32.mrf.mxu2  ;;  %v1061_v18 = vpop.f32.mrf.mxu3 }
 0x180   : > { %v823_v19 = vpop.f32.mrf.mxu0  ;;  %v903_v21 = vpop.f32.mrf.mxu1 }
 0x187   : > { %v983_v22 = vpop.f32.mrf.mxu2  ;;  %v1063_v23 = vpop.f32.mrf.mxu3 }
 0x188   : > { %v826_v24 = vpop.f32.mrf.mxu0  ;;  %v906_v25 = vpop.f32.mrf.mxu1 }
 0x189   : > { %v1088_v26 = vmax.f32 %v816_v39, %v826_v24  ;;  %v1104_v27 = vmax.f32 %v896_v40, %v906_v25 }
 0x18b   : > { %1152 = vst [vmem:[#allocation2 + $0x60] sm:$0xff] %v1088_v26 }
 0x18c   : > { %1168 = vst [vmem:[#allocation2 + $0xe0] sm:$0xff] %v1104_v27 }
 0x18f   : > { %v986_v28 = vpop.f32.mrf.mxu2  ;;  %v1066_v29 = vpop.f32.mrf.mxu3 }
 0x190   : > { %v1120_v30 = vmax.f32 %v976_v58, %v986_v28  ;;  %v1136_v31 = vmax.f32 %v1056_v59, %v1066_v29  ;;  %v828_v32 = vpop.f32.mrf.mxu0  ;;  %v908_v33 = vpop.f32.mrf.mxu1 }
 0x191   : > { %v1089_v34 = vmax.f32 %v818_v62, %v828_v32  ;;  %v1105_v35 = vmax.f32 %v898_v63, %v908_v33 }
 0x192   : > { %1184 = vst [vmem:[#allocation2 + $0x160] sm:$0xff] %v1120_v30 }
 0x193   : > { %1200 = vst [vmem:[#allocation2 + $0x1e0] sm:$0xff] %v1136_v31 }
 0x194   : > { %1153 = vst [vmem:[#allocation2 + $0x68] sm:$0xff] %v1089_v34 }
 0x195   : > { %1169 = vst [vmem:[#allocation2 + $0xe8] sm:$0xff] %v1105_v35 }
 0x197   : > { %v988_v36 = vpop.f32.mrf.mxu2  ;;  %v1068_v37 = vpop.f32.mrf.mxu3 }
 0x198   : > { %v1121_v38 = vmax.f32 %v978_v14, %v988_v36  ;;  %v1137_v41 = vmax.f32 %v1058_v15, %v1068_v37  ;;  %v831_v39 = vpop.f32.mrf.mxu0  ;;  %v911_v40 = vpop.f32.mrf.mxu1 }
 0x199   : > { %v1090_v42 = vmax.f32 %v821_v16, %v831_v39  ;;  %v1106_v43 = vmax.f32 %v901_v17, %v911_v40 }
 0x19a   : > { %1185 = vst [vmem:[#allocation2 + $0x168] sm:$0xff] %v1121_v38 }
 0x19b   : > { %1201 = vst [vmem:[#allocation2 + $0x1e8] sm:$0xff] %v1137_v41  ;;  %v1216_v48 = vld [vmem:[#allocation2 + $0x60] ss:$2 sm:$0xff]  ;;  %v1280_v54 = vld [vmem:[#allocation2 + $0x61] ss:$2 sm:$0xff] }
 0x19c   : > { %1154 = vst [vmem:[#allocation2 + $0x70] sm:$0xff] %v1090_v42  ;;  %v1232_v57 = vld [vmem:[#allocation2 + $0xe0] ss:$2 sm:$0xff]  ;;  %v1296_v58 = vld [vmem:[#allocation2 + $0xe1] ss:$2 sm:$0xff]  ;;  %v1337_v61 = vmax.f32 %v1216_v48, %v1280_v54 }
 0x19d   : > { %1170 = vst [vmem:[#allocation2 + $0xf0] sm:$0xff] %v1106_v43  ;;  %v1345_v62 = vmax.f32 %v1232_v57, %v1296_v58 }
 0x19e   : > { %v1373_v7 = vadd.f32 %v2156_v51, %v1337_v61 }
 0x19f   : > { %v991_v44 = vpop.f32.mrf.mxu2  ;;  %v1071_v45 = vpop.f32.mrf.mxu3  ;;  %v1381_v11 = vadd.f32 %v2156_v51, %v1345_v62 }
 0x1a0   : > { %v1122_v46 = vmax.f32 %v981_v20, %v991_v44  ;;  %v1138_v49 = vmax.f32 %v1061_v18, %v1071_v45  ;;  %v833_v50 = vpop.f32.mrf.mxu0  ;;  %v913_v52 = vpop.f32.mrf.mxu1 }
 0x1a1   : > { %v1091_v53 = vmax.f32 %v823_v19, %v833_v50  ;;  %v1107_v47 = vmax.f32 %v903_v21, %v913_v52  ;;  %v1248_v4 = vld [vmem:[#allocation2 + $0x160] ss:$2 sm:$0xff]  ;;  %v1312_v5 = vld [vmem:[#allocation2 + $0x161] ss:$2 sm:$0xff] }
 0x1a2   : > { %1186 = vst [vmem:[#allocation2 + $0x170] sm:$0xff] %v1122_v46  ;;  %v1264_v8 = vld [vmem:[#allocation2 + $0x1e0] ss:$2 sm:$0xff]  ;;  %v1328_v9 = vld [vmem:[#allocation2 + $0x1e1] ss:$2 sm:$0xff]  ;;  %v1353_v13 = vmax.f32 %v1248_v4, %v1312_v5 }
 0x1a3   : > { %1202 = vst [vmem:[#allocation2 + $0x1f0] sm:$0xff] %v1138_v49  ;;  %v1361_v15 = vmax.f32 %v1264_v8, %v1328_v9 }
 0x1a4   : > { %1155 = vst [vmem:[#allocation2 + $0x78] sm:$0xff] %v1091_v53 }
 0x1a5   : > { %1171 = vst [vmem:[#allocation2 + $0xf8] sm:$0xff] %v1107_v47  ;;  %v1397_v25 = vadd.f32 %v2156_v51, %v1361_v15 }
 0x1a7   : > { %v993_v55 = vpop.f32.mrf.mxu2  ;;  %v1073_v56 = vpop.f32.mrf.mxu3 }
 0x1a8   : > { %v1123_v59 = vmax.f32 %v983_v22, %v993_v55  ;;  %v1139_v60 = vmax.f32 %v1063_v23, %v1073_v56  ;;  %v1389_v23 = vadd.f32 %v2156_v51, %v1353_v13 }
 0x1aa   : > { %1187 = vst [vmem:[#allocation2 + $0x178] sm:$0xff] %v1123_v59 }
 0x1ab   : > { %v1218_v63 = vld [vmem:[#allocation2 + $0x70] ss:$2 sm:$0xff]  ;;  %v1282_v0 = vld [vmem:[#allocation2 + $0x71] ss:$2 sm:$0xff]  ;;  %1203 = vst [vmem:[#allocation2 + $0x1f8] sm:$0xff] %v1139_v60 }
 0x1ac   : > { %v1338_v1 = vmax.f32 %v1218_v63, %v1282_v0  ;;  %v1234_v2 = vld [vmem:[#allocation2 + $0xf0] ss:$2 sm:$0xff]  ;;  %v1298_v3 = vld [vmem:[#allocation2 + $0xf1] ss:$2 sm:$0xff] }
 0x1ad   : > { %v1346_v6 = vmax.f32 %v1234_v2, %v1298_v3 }
 0x1ae   : > { %v1374_v10 = vadd.f32 %v2156_v51, %v1338_v1 }
 0x1af   : > { %v1382_v12 = vadd.f32 %v2156_v51, %v1346_v6 }
 0x1b0   : > { %v1909_v14 = vpack.c.bf16 %v1374_v10, %v1373_v7 }
 0x1b1   : > { %v1929_v16 = vpack.c.bf16 %v1382_v12, %v1381_v11  ;;  %v1250_v17 = vld [vmem:[#allocation2 + $0x170] ss:$2 sm:$0xff]  ;;  %v1314_v20 = vld [vmem:[#allocation2 + $0x171] ss:$2 sm:$0xff] }
 0x1b2   : > { %1973 = vst [vmem:[%s2165_s13 + $0x18] sm:$0xff] %v1909_v14   ;;  %v1354_v18 = vmax.f32 %v1250_v17, %v1314_v20  ;;  %v1266_v19 = vld [vmem:[#allocation2 + $0x1f0] ss:$2 sm:$0xff]  ;;  %v1330_v21 = vld [vmem:[#allocation2 + $0x1f1] ss:$2 sm:$0xff] }
 0x1b3   : > { %1977 = vst [vmem:[%s2165_s13 + $0x38] sm:$0xff] %v1929_v16   ;;  %v1362_v22 = vmax.f32 %v1266_v19, %v1330_v21 }
 0x1b4   : > { %v1390_v24 = vadd.f32 %v2156_v51, %v1354_v18 }
 0x1b5   : > { %v1398_v26 = vadd.f32 %v2156_v51, %v1362_v22 }
 0x1b6   : > { %v1949_v27 = vpack.c.bf16 %v1390_v24, %v1389_v23 }
 0x1b7   : > { %v1969_v28 = vpack.c.bf16 %v1398_v26, %v1397_v25 }
 0x1b8   : > { %1981 = vst [vmem:[%s2165_s13 + $0x58] sm:$0xff] %v1949_v27  }
 0x1b9   : > { %1985 = vst [vmem:[%s2165_s13 + $0x78] sm:$0xff] %v1969_v28  }
 0x1ba PF: > { %s13_s12 = sadd.s32 1, %s2025_s12  }
 0x1bb   : > { %p10_p4 = scmp.ge.s32.totalorder %s13_s12, 4  }
 0x1bd   :  { %12 = sbr.rel (!%p10_p4) target bundleno = 1 (0x1), region = 125 }

// kernel: nnmodel_forward.5
= control target key start
LH: loop header
LB: loop body
LE: loop exit
PB: predicated region body
PF: predicated region fallthrough
CT: control target
= control target key end

     0   :  { %s3036_s12 = smov 0   ;;  %s3685_s0 = inlined_call_operand.vmem [shape: bf16[2,256,896], index: 0, kind: input, shape index: {}]   ;;  %s3686_s1 = inlined_call_operand.vmem [shape: bf16[896,128], index: 1, kind: input, shape index: {}]   ;;  %s3687_s2 = inlined_call_operand.vmem [shape: f32[1,128], index: 2, kind: input, shape index: {}]   ;;  %s3688_s3 = inlined_call_operand.vmem [shape: bf16[2,64,128], index: 3, kind: output, shape index: {}]  }
   0x1 LB: > { %s2100_s13 = sadd.s32 4294967295, %s3014_s12   ;;  %p2104_p0 = scmp.ge.s32.totalorder %s3014_s12, 1  ;;  %s3014_s12 = sphi %s3036_s12, %s13_s12  }
   0x2   : > { %p137_p1 = scmp.lt.s32.totalorder %s3014_s12, 3 }
   0x4   : > { %p138_p2 = pnand %p2104_p0, %p137_p1 }
   0x5   : > { %p161_p3 = scmp.lt.s32.totalorder (!%p138_p2), %s2100_s13, 1 }
   0x6   : > { %141 = sbr.rel (%p138_p2) target bundleno = 640 (0x280), region = 32 }
   0xb   : > { %v2902_v0 = vld [vmem:[%s3686_s1 + $0x38] sm:$0xff]  ;;  %v2901_v3 = vld [vmem:[%s3686_s1 + $0x30] sm:$0xff]  ;;  %v2900_v6 = vld [vmem:[%s3686_s1 + $0x28] sm:$0xff]  ;;  %s3690_s13 = smov (!%p161_p3, %s2100_s13), 1 }
   0xc   : > { %v3050_v1 = vld [vmem:[%s3686_s1 + $0x78] sm:$0xff]  ;;  %1323 = vmatpush.bf16.msra.mxu0 %v2902_v0  ;;  %2974 = vmatpush.bf16.msra.mxu3 %v2902_v0  ;;  %v3065_v4 = vld [vmem:[%s3686_s1 + $0x70] sm:$0xff]  ;;  %v3080_v7 = vld [vmem:[%s3686_s1 + $0x68] sm:$0xff]  ;;  %s2998_s21 = smul.u32 896, %s3690_s13  ;;  %s2782_s8 = sshll.u32 %s3690_s13, 5 }
   0xd   : > { %v3055_v2 = vld [vmem:[%s3686_s1 + $0xb8] sm:$0xff]  ;;  %1412 = vmatpush.bf16.msra.mxu1 %v3050_v1  ;;  %v3070_v5 = vld [vmem:[%s3686_s1 + $0xb0] sm:$0xff]  ;;  %v3085_v8 = vld [vmem:[%s3686_s1 + $0xa8] sm:$0xff]  ;;  %s3630_s11 = scalar_lea.vmem %s3688_s3, %s2782_s8 }
   0xe   : > { %1501 = vmatpush.bf16.msra.mxu2 %v3055_v2  ;;  %v2899_v9 = vld [vmem:[%s3686_s1 + $0x20] sm:$0xff]  ;;  %v2898_v12 = vld [vmem:[%s3686_s1 + $0x18] sm:$0xff]  ;;  %v2897_v15 = vld [vmem:[%s3686_s1 + $0x10] sm:$0xff]  ;;  %s3145_s30 = scalar_lea.vmem %s3685_s0, %s2998_s21 }
   0xf   : > { %v3097_v10 = vld [vmem:[%s3686_s1 + $0x60] sm:$0xff]  ;;  %v3116_v13 = vld [vmem:[%s3686_s1 + $0x58] sm:$0xff]  ;;  %v3132_v16 = vld [vmem:[%s3686_s1 + $0x50] sm:$0xff] }
  0x10   : > { %1324 = vmatpush.bf16.msra.mxu0 %v2901_v3  ;;  %2975 = vmatpush.bf16.msra.mxu3 %v2901_v3  ;;  %v3102_v11 = vld [vmem:[%s3686_s1 + $0xa0] sm:$0xff]  ;;  %v3121_v14 = vld [vmem:[%s3686_s1 + $0x98] sm:$0xff]  ;;  %v3137_v17 = vld [vmem:[%s3686_s1 + $0x90] sm:$0xff] }
  0x11   : > { %1413 = vmatpush.bf16.msra.mxu1 %v3065_v4  ;;  %v2896_v18 = vld [vmem:[%s3686_s1 + $0x8] sm:$0xff]  ;;  %v2895_v21 = vld [vmem:[%s3686_s1] sm:$0xff]  ;;  %v2786_v25 = vld [vmem:[%s3145_s30 + $0x18] sm:$0xf0] }
  0x12   : > { %1502 = vmatpush.bf16.msra.mxu2 %v3070_v5  ;;  %v3152_v19 = vld [vmem:[%s3686_s1 + $0x48] sm:$0xff]  ;;  %v3165_v22 = vld [vmem:[%s3686_s1 + $0x40] sm:$0xff]  ;;  %v2870_v27 = vld [vmem:[%s3145_s30 + $0x2b8] sm:$0xf0] }
  0x13   : > { %v3157_v20 = vld [vmem:[%s3686_s1 + $0x88] sm:$0xff]  ;;  %v3170_v23 = vld [vmem:[%s3686_s1 + $0x80] sm:$0xff]  ;;  %v2950_v32 = vld [vmem:[%s3686_s1 + $0x1b8] sm:$0xff] }
  0x14   : > { %1325 = vmatpush.bf16.msra.mxu0 %v2900_v6  ;;  %2976 = vmatpush.bf16.msra.mxu3 %v2900_v6  ;;  %v2110_v24 = vld [vmem:[%s3145_s30] sm:$0xf]  ;;  %v2783_v28 = vld [vmem:[%s3145_s30 + $0x4] sm:$0xf]  ;;  %v2118_v30 = vld [vmem:[%s3145_s30 + $0x8] sm:$0xf] }
  0x15   : > { %1414 = vmatpush.bf16.msra.mxu1 %v3080_v7  ;;  %v2446_v26 = vld [vmem:[%s3145_s30 + $0x2a0] sm:$0xf]  ;;  %v2787_v31 = vld [vmem:[%s3145_s30 + $0x20] sm:$0xf0]  ;;  %v2111_v33 = vor.u32 %v2786_v25, %v2110_v24  ;;  %v2934_v37 = vld [vmem:[%s3686_s1 + $0x138] sm:$0xff] }
  0x16   : > { %1503 = vmatpush.bf16.msra.mxu2 %v3085_v8  ;;  %v2112_v29 = vld [vmem:[%s3145_s30 + $0x1c] sm:$0xf0]  ;;  %v2447_v34 = vor.u32 %v2870_v27, %v2446_v26  ;;  %v2119_v36 = vor.u32 %v2787_v31, %v2118_v30  ;;  %v2942_v38 = vld [vmem:[%s3686_s1 + $0x178] sm:$0xff]  ;;  %v2949_v39 = vld [vmem:[%s3686_s1 + $0x1b0] sm:$0xff] }
  0x17   : > { %v2115_v35 = vor.u32 %v2783_v28, %v2112_v29  ;;  %v2933_v40 = vld [vmem:[%s3686_s1 + $0x130] sm:$0xff]  ;;  %v2138_v42 = vld [vmem:[%s3145_s30 + $0x38] sm:$0xf]  ;;  %v2790_v46 = vld [vmem:[%s3145_s30 + $0x3c] sm:$0xf] }
  0x18   : > { %1326 = vmatpush.bf16.msra.mxu0 %v2899_v9  ;;  %2977 = vmatpush.bf16.msra.mxu3 %v2899_v9  ;;  %v2941_v41 = vld [vmem:[%s3686_s1 + $0x170] sm:$0xff]  ;;  %v2474_v44 = vld [vmem:[%s3145_s30 + $0x2d8] sm:$0xf]  ;;  %v2146_v48 = vld [vmem:[%s3145_s30 + $0x40] sm:$0xf] }
  0x19   : > { %1415 = vmatpush.bf16.msra.mxu1 %v3097_v10  ;;  %v2793_v43 = vld [vmem:[%s3145_s30 + $0x50] sm:$0xf0]  ;;  %v2140_v47 = vld [vmem:[%s3145_s30 + $0x54] sm:$0xf0]  ;;  %v2794_v49 = vld [vmem:[%s3145_s30 + $0x58] sm:$0xf0] }
  0x1a   : > { %1504 = vmatpush.bf16.msra.mxu2 %v3102_v11  ;;  %v2877_v45 = vld [vmem:[%s3145_s30 + $0x2f0] sm:$0xf0]  ;;  %v2139_v50 = vor.u32 %v2793_v43, %v2138_v42  ;;  %v2143_v52 = vor.u32 %v2790_v46, %v2140_v47  ;;  %v2147_v53 = vor.u32 %v2794_v49, %v2146_v48  ;;  %v2948_v54 = vld [vmem:[%s3686_s1 + $0x1a8] sm:$0xff]  ;;  %v2166_v57 = vld [vmem:[%s3145_s30 + $0x70] sm:$0xf] }
  0x1b   : > { %v2475_v51 = vor.u32 %v2877_v45, %v2474_v44  ;;  %v2932_v55 = vld [vmem:[%s3686_s1 + $0x128] sm:$0xff]  ;;  %v2502_v59 = vld [vmem:[%s3145_s30 + $0x310] sm:$0xf]  ;;  %v2797_v61 = vld [vmem:[%s3145_s30 + $0x74] sm:$0xf] }
  0x1c   : > { %1327 = vmatpush.bf16.msra.mxu0 %v2898_v12  ;;  %2978 = vmatpush.bf16.msra.mxu3 %v2898_v12  ;;  %v2940_v56 = vld [vmem:[%s3686_s1 + $0x168] sm:$0xff]  ;;  %v2168_v62 = vld [vmem:[%s3145_s30 + $0x8c] sm:$0xf0]  ;;  %v2174_v63 = vld [vmem:[%s3145_s30 + $0x78] sm:$0xf] }
  0x1d   : > { %1416 = vmatpush.bf16.msra.mxu1 %v3116_v13  ;;  %v2800_v58 = vld [vmem:[%s3145_s30 + $0x88] sm:$0xf0]  ;;  %v2801_v0 = vld [vmem:[%s3145_s30 + $0x90] sm:$0xf0]  ;;  %v2194_v9 = vld [vmem:[%s3145_s30 + $0xa8] sm:$0xf] }
  0x1e   : > { %1505 = vmatpush.bf16.msra.mxu2 %v3121_v14  ;;  %v2884_v60 = vld [vmem:[%s3145_s30 + $0x328] sm:$0xf0]  ;;  %v2175_v6 = vor.u32 %v2801_v0, %v2174_v63  ;;  %v2891_v12 = vld [vmem:[%s3145_s30 + $0x360] sm:$0xf0]  ;;  %v2814_v24 = vld [vmem:[%s3145_s30 + $0xf8] sm:$0xf0] }
  0x1f   : > { %v2503_v3 = vor.u32 %v2884_v60, %v2502_v59  ;;  %v2811_v25 = vld [vmem:[%s3145_s30 + $0xe4] sm:$0xf]  ;;  %v2448_v27 = vld [vmem:[%s3145_s30 + $0x2bc] sm:$0xf0]  ;;  %v2230_v29 = vld [vmem:[%s3145_s30 + $0xe8] sm:$0xf] }
  0x20   : > { %1328 = vmatpush.bf16.msra.mxu0 %v2897_v15  ;;  %2979 = vmatpush.bf16.msra.mxu3 %v2897_v15  ;;  %v2196_v15 = vld [vmem:[%s3145_s30 + $0xc4] sm:$0xf0]  ;;  %v2867_v26 = vld [vmem:[%s3145_s30 + $0x2a4] sm:$0xf]  ;;  %v2224_v28 = vld [vmem:[%s3145_s30 + $0xfc] sm:$0xf0] }
  0x21   : > { %1417 = vmatpush.bf16.msra.mxu1 %v3132_v16  ;;  %v2815_v30 = vld [vmem:[%s3145_s30 + $0x100] sm:$0xf0]  ;;  %v2822_v42 = vld [vmem:[%s3145_s30 + $0x138] sm:$0xf0]  ;;  %v2278_v47 = vld [vmem:[%s3145_s30 + $0x150] sm:$0xf] }
  0x22   : > { %1506 = vmatpush.bf16.msra.mxu2 %v3137_v17  ;;  %v2828_v48 = vld [vmem:[%s3145_s30 + $0x168] sm:$0xf0]  ;;  %v2825_v49 = vld [vmem:[%s3145_s30 + $0x154] sm:$0xf]  ;;  %v2926_v60 = vld [vmem:[%s3686_s1 + $0xf8] sm:$0xff] }
  0x23   : > { %v2945_v59 = vld [vmem:[%s3686_s1 + $0x190] sm:$0xff]  ;;  %v2306_v0 = vld [vmem:[%s3145_s30 + $0x188] sm:$0xf] }
  0x24   : > { %1329 = vmatpush.bf16.msra.mxu0 %v2896_v18  ;;  %2980 = vmatpush.bf16.msra.mxu3 %v2896_v18  ;;  %v2808_v18 = vld [vmem:[%s3145_s30 + $0xc8] sm:$0xf0]  ;;  %v2925_v63 = vld [vmem:[%s3686_s1 + $0xf0] sm:$0xff] }
  0x25   : > { %1418 = vmatpush.bf16.msra.mxu1 %v3152_v19 }
  0x26   : > { %1507 = vmatpush.bf16.msra.mxu2 %v3157_v20 }
  0x28   : > { %1330 = vmatpush.bf16.msra.mxu0 %v2895_v21  ;;  %2981 = vmatpush.bf16.msra.mxu3 %v2895_v21 }
  0x29   : > { %1419 = vmatpush.bf16.msra.mxu1 %v3165_v22 }
  0x2a   : > { %1508 = vmatpush.bf16.msra.mxu2 %v3170_v23 }
  0x2b   : > { %1331 = vmatmul.bf16.vlgmr.msra.gmra.mxu0 %v2111_v33  ;;  %1391 = vmatmul.bf16.vlgmr.msra.gmra.mxu3 %v2447_v34  ;;  %v2231_v33 = vor.u32 %v2815_v30, %v2230_v29  ;;  %v2938_v34 = vld [vmem:[%s3686_s1 + $0x158] sm:$0xff] }
  0x2c   : > { %2982 = vmatpush.bf16.msrb.mxu3 %v3050_v1  ;;  %1420 = vmatmul.bf16.vlgmr.msra.gmra.mxu1 %v2115_v35  ;;  %v2167_v1 = vor.u32 %v2800_v58, %v2166_v57  ;;  %v2250_v35 = vld [vmem:[%s3145_s30 + $0x118] sm:$0xf] }
  0x2d   : > { %1509 = vmatmul.bf16.vlgmr.msra.gmra.mxu2 %v2119_v36  ;;  %1679 = vmatpush.bf16.msrb.mxu0 %v2934_v37  ;;  %v2821_v36 = vld [vmem:[%s3145_s30 + $0x130] sm:$0xf0]  ;;  %v2818_v37 = vld [vmem:[%s3145_s30 + $0x11c] sm:$0xf] }
  0x2e   : > { %1857 = vmatpush.bf16.msrb.mxu2 %v2950_v32  ;;  %1768 = vmatpush.bf16.msrb.mxu1 %v2942_v38  ;;  %v2451_v32 = vor.u32 %v2867_v26, %v2448_v27  ;;  %v2874_v38 = vld [vmem:[%s3145_s30 + $0x2dc] sm:$0xf]  ;;  %v2251_v43 = vor.u32 %v2821_v36, %v2250_v35  ;;  %v2342_v26 = vld [vmem:[%s3145_s30 + $0x1c8] sm:$0xf]  ;;  %v2843_v27 = vld [vmem:[%s3145_s30 + $0x1e0] sm:$0xf0] }
  0x30   : > { %2983 = vmatpush.bf16.msrb.mxu3 %v3065_v4  ;;  %v2171_v4 = vor.u32 %v2797_v61, %v2168_v62  ;;  %v2929_v61 = vld [vmem:[%s3686_s1 + $0x110] sm:$0xff] }
  0x31   : > { %1680 = vmatpush.bf16.msrb.mxu0 %v2933_v40  ;;  %v2252_v40 = vld [vmem:[%s3145_s30 + $0x134] sm:$0xf0]  ;;  %v2937_v62 = vld [vmem:[%s3686_s1 + $0x150] sm:$0xff] }
  0x32   : > { %1858 = vmatpush.bf16.msrb.mxu2 %v2949_v39  ;;  %1769 = vmatpush.bf16.msrb.mxu1 %v2941_v41  ;;  %v2476_v39 = vld [vmem:[%s3145_s30 + $0x2f4] sm:$0xf0]  ;;  %v2258_v41 = vld [vmem:[%s3145_s30 + $0x120] sm:$0xf]  ;;  %v2255_v45 = vor.u32 %v2818_v37, %v2252_v40 }
  0x33   : > { %v2479_v44 = vor.u32 %v2874_v38, %v2476_v39  ;;  %v2259_v46 = vor.u32 %v2822_v42, %v2258_v41  ;;  %v2921_v39 = vld [vmem:[%s3686_s1 + $0xd0] sm:$0xff]  ;;  %v2362_v40 = vld [vmem:[%s3145_s30 + $0x1f8] sm:$0xf]  ;;  %v2846_v42 = vld [vmem:[%s3145_s30 + $0x1fc] sm:$0xf] }
  0x34   : > { %2984 = vmatpush.bf16.msrb.mxu3 %v3080_v7  ;;  %v2947_v7 = vld [vmem:[%s3686_s1 + $0x1a0] sm:$0xff]  ;;  %v2849_v41 = vld [vmem:[%s3145_s30 + $0x210] sm:$0xf0] }
  0x35   : > { %1681 = vmatpush.bf16.msrb.mxu0 %v2932_v55  ;;  %v2279_v55 = vor.u32 %v2828_v48, %v2278_v47  ;;  %v2850_v47 = vld [vmem:[%s3145_s30 + $0x218] sm:$0xf0] }
  0x36   : > { %1859 = vmatpush.bf16.msrb.mxu2 %v2948_v54  ;;  %1770 = vmatpush.bf16.msrb.mxu1 %v2940_v56  ;;  %v2829_v54 = vld [vmem:[%s3145_s30 + $0x170] sm:$0xf0] }
  0x38   : > { %2985 = vmatpush.bf16.msrb.mxu3 %v3097_v10  ;;  %v2530_v10 = vld [vmem:[%s3145_s30 + $0x348] sm:$0xf] }
  0x39   : > { %v2531_v21 = vor.u32 %v2891_v12, %v2530_v10 }
  0x3a   : > { %1860 = vmatpush.bf16.msrb.mxu2 %v2947_v7  ;;  %v2308_v7 = vld [vmem:[%s3145_s30 + $0x1a4] sm:$0xf0] }
  0x3b   : > { %1336 = vmatmul.bf16.gmra.mxu0 %v2139_v50  ;;  %1396 = vmatmul.bf16.gmra.mxu3 %v2475_v51  ;;  %v2881_v50 = vld [vmem:[%s3145_s30 + $0x314] sm:$0xf]  ;;  %v2504_v51 = vld [vmem:[%s3145_s30 + $0x32c] sm:$0xf0] }
  0x3c   : > { %2986 = vmatpush.bf16.msrb.mxu3 %v3116_v13  ;;  %1425 = vmatmul.bf16.gmra.mxu1 %v2143_v52  ;;  %v2804_v13 = vld [vmem:[%s3145_s30 + $0xac] sm:$0xf]  ;;  %v2280_v52 = vld [vmem:[%s3145_s30 + $0x16c] sm:$0xf0]  ;;  %v2507_v56 = vor.u32 %v2881_v50, %v2504_v51  ;;  %v2363_v50 = vor.u32 %v2849_v41, %v2362_v40 }
  0x3d   : > { %1514 = vmatmul.bf16.gmra.mxu2 %v2147_v53  ;;  %v2286_v53 = vld [vmem:[%s3145_s30 + $0x158] sm:$0xf]  ;;  %v2283_v57 = vor.u32 %v2825_v49, %v2280_v52 }
  0x3e   : > { %v2287_v58 = vor.u32 %v2829_v54, %v2286_v53 }
  0x40   : > { %2987 = vmatpush.bf16.msrb.mxu3 %v3132_v16  ;;  %v2202_v16 = vld [vmem:[%s3145_s30 + $0xb0] sm:$0xf] }
  0x44   : > { %2988 = vmatpush.bf16.msrb.mxu3 %v3152_v19 }
  0x48   : > { %2989 = vmatpush.bf16.msrb.mxu3 %v3165_v22  ;;  %v2199_v22 = vor.u32 %v2804_v13, %v2196_v15 }
  0x4b   : > { %1341 = vmatmul.bf16.gmra.mxu0 %v2167_v1  ;;  %1401 = vmatmul.bf16.gmra.mxu3 %v2503_v3  ;;  %v2835_v1 = vld [vmem:[%s3145_s30 + $0x1a0] sm:$0xf0]  ;;  %v2832_v3 = vld [vmem:[%s3145_s30 + $0x18c] sm:$0xf] }
  0x4c   : > { %2990 = vmatpush.bf16.msra.mxu3 %v3055_v2  ;;  %1430 = vmatmul.bf16.gmra.mxu1 %v2171_v4  ;;  %v2807_v2 = vld [vmem:[%s3145_s30 + $0xc0] sm:$0xf0]  ;;  %v2888_v4 = vld [vmem:[%s3145_s30 + $0x34c] sm:$0xf]  ;;  %v2307_v10 = vor.u32 %v2835_v1, %v2306_v0  ;;  %v2311_v13 = vor.u32 %v2832_v3, %v2308_v7  ;;  %v2390_v7 = vld [vmem:[%s3145_s30 + $0x230] sm:$0xf] }
  0x4d   : > { %1519 = vmatmul.bf16.gmra.mxu2 %v2175_v6  ;;  %v2195_v19 = vor.u32 %v2807_v2, %v2194_v9  ;;  %v2532_v6 = vld [vmem:[%s3145_s30 + $0x364] sm:$0xf0]  ;;  %v2314_v9 = vld [vmem:[%s3145_s30 + $0x190] sm:$0xf]  ;;  %v2836_v2 = vld [vmem:[%s3145_s30 + $0x1a8] sm:$0xf0] }
  0x4e   : > { %v2535_v12 = vor.u32 %v2888_v4, %v2532_v6  ;;  %v2315_v15 = vor.u32 %v2836_v2, %v2314_v9  ;;  %v2919_v6 = vld [vmem:[%s3686_s1 + $0xc0] sm:$0xff]  ;;  %v2856_v9 = vld [vmem:[%s3145_s30 + $0x248] sm:$0xf0]  ;;  %v2853_v2 = vld [vmem:[%s3145_s30 + $0x234] sm:$0xf] }
  0x50   : > { %2991 = vmatpush.bf16.msra.mxu3 %v3070_v5  ;;  %v2203_v5 = vor.u32 %v2808_v18, %v2202_v16  ;;  %v2924_v16 = vld [vmem:[%s3686_s1 + $0xe8] sm:$0xff] }
  0x51   : > { %v2944_v18 = vld [vmem:[%s3686_s1 + $0x188] sm:$0xff] }
  0x54   : > { %2992 = vmatpush.bf16.msra.mxu3 %v3085_v8  ;;  %v2931_v8 = vld [vmem:[%s3686_s1 + $0x120] sm:$0xff] }
  0x55   : > { %1682 = vmatpush.bf16.msrb.mxu0 %v2931_v8  ;;  %v2936_v8 = vld [vmem:[%s3686_s1 + $0x148] sm:$0xff] }
  0x58   : > { %2993 = vmatpush.bf16.msra.mxu3 %v3102_v11  ;;  %v2939_v11 = vld [vmem:[%s3686_s1 + $0x160] sm:$0xff] }
  0x59   : > { %1771 = vmatpush.bf16.msrb.mxu1 %v2939_v11  ;;  %v2839_v11 = vld [vmem:[%s3145_s30 + $0x1c4] sm:$0xf] }
  0x5b   : > { %1346 = vmatmul.bf16.gmra.mxu0 %v2195_v19  ;;  %1406 = vmatmul.bf16.gmra.mxu3 %v2531_v21  ;;  %v2923_v19 = vld [vmem:[%s3686_s1 + $0xe0] sm:$0xff]  ;;  %v2928_v21 = vld [vmem:[%s3686_s1 + $0x108] sm:$0xff] }
  0x5c   : > { %2994 = vmatpush.bf16.msra.mxu3 %v3121_v14  ;;  %1435 = vmatmul.bf16.gmra.mxu1 %v2199_v22  ;;  %v2222_v14 = vld [vmem:[%s3145_s30 + $0xe0] sm:$0xf] }
  0x5d   : > { %1524 = vmatmul.bf16.gmra.mxu2 %v2203_v5  ;;  %v2223_v31 = vor.u32 %v2814_v24, %v2222_v14  ;;  %1772 = vmatpush.bf16.msrb.mxu1 %v2938_v34  ;;  %v2334_v22 = vld [vmem:[%s3145_s30 + $0x1c0] sm:$0xf]  ;;  %v2842_v5 = vld [vmem:[%s3145_s30 + $0x1d8] sm:$0xf0]  ;;  %v2454_v14 = vld [vmem:[%s3145_s30 + $0x2a8] sm:$0xf] }
  0x5e   : > { %v2871_v24 = vld [vmem:[%s3145_s30 + $0x2c0] sm:$0xf0] }
  0x5f   : > { %v2455_v29 = vor.u32 %v2871_v24, %v2454_v14 }
  0x60   : > { %2995 = vmatpush.bf16.msra.mxu3 %v3137_v17  ;;  %v2227_v17 = vor.u32 %v2811_v25, %v2224_v28  ;;  %v2336_v25 = vld [vmem:[%s3145_s30 + $0x1dc] sm:$0xf0]  ;;  %v2335_v28 = vor.u32 %v2842_v5, %v2334_v22 }
  0x61   : > { %1773 = vmatpush.bf16.msrb.mxu1 %v2937_v62 }
  0x64   : > { %2996 = vmatpush.bf16.msra.mxu3 %v3157_v20  ;;  %v2946_v20 = vld [vmem:[%s3686_s1 + $0x198] sm:$0xff] }
  0x65   : > { %1861 = vmatpush.bf16.msrb.mxu2 %v2946_v20  ;;  %1774 = vmatpush.bf16.msrb.mxu1 %v2936_v8  ;;  %v2922_v20 = vld [vmem:[%s3686_s1 + $0xd8] sm:$0xff] }
  0x68   : > { %2997 = vmatpush.bf16.msra.mxu3 %v3170_v23  ;;  %v2930_v23 = vld [vmem:[%s3686_s1 + $0x118] sm:$0xff] }
  0x69   : > { %1683 = vmatpush.bf16.msrb.mxu0 %v2930_v23  ;;  %1862 = vmatpush.bf16.msrb.mxu2 %v2945_v59  ;;  %v2920_v59 = vld [vmem:[%s3686_s1 + $0xc8] sm:$0xff] }
  0x6b   : > { %1351 = vmatmul.bf16.gmra.mxu0 %v2223_v31  ;;  %1480 = vmatmul.bf16.vlgmr.msrb.gmra.mxu3 %v2451_v32  ;;  %v2339_v31 = vor.u32 %v2839_v11, %v2336_v25  ;;  %v2343_v32 = vor.u32 %v2843_v27, %v2342_v26 }
  0x6c   : > { %1440 = vmatmul.bf16.gmra.mxu1 %v2227_v17  ;;  %1590 = vmatpush.bf16.msrb.mxu3 %v2926_v60  ;;  %v2927_v60 = vld [vmem:[%s3686_s1 + $0x100] sm:$0xff] }
  0x6d   : > { %1529 = vmatmul.bf16.gmra.mxu2 %v2231_v33  ;;  %1684 = vmatpush.bf16.msrb.mxu0 %v2929_v61  ;;  %v2935_v61 = vld [vmem:[%s3686_s1 + $0x140] sm:$0xff] }
  0x6e   : > { %1863 = vmatpush.bf16.msrb.mxu2 %v2944_v18  ;;  %1775 = vmatpush.bf16.msrb.mxu1 %v2935_v61  ;;  %v2134_v61 = vld [vmem:[%s3145_s30 + $0x18] sm:$0xf] }
  0x70   : > { %1591 = vmatpush.bf16.msrb.mxu3 %v2925_v63 }
  0x71   : > { %1685 = vmatpush.bf16.msrb.mxu0 %v2928_v21  ;;  %v2391_v21 = vor.u32 %v2856_v9, %v2390_v7 }
  0x74   : > { %1592 = vmatpush.bf16.msrb.mxu3 %v2924_v16  ;;  %v2857_v16 = vld [vmem:[%s3145_s30 + $0x250] sm:$0xf0] }
  0x75   : > { %1686 = vmatpush.bf16.msrb.mxu0 %v2927_v60  ;;  %v2788_v60 = vld [vmem:[%s3145_s30 + $0x28] sm:$0xf0] }
  0x78   : > { %1593 = vmatpush.bf16.msrb.mxu3 %v2923_v19 }
  0x7b   : > { %1356 = vmatmul.bf16.gmra.mxu0 %v2251_v43  ;;  %1485 = vmatmul.bf16.gmra.mxu3 %v2479_v44  ;;  %v2482_v43 = vld [vmem:[%s3145_s30 + $0x2e0] sm:$0xf]  ;;  %v2878_v44 = vld [vmem:[%s3145_s30 + $0x2f8] sm:$0xf0] }
  0x7c   : > { %1445 = vmatmul.bf16.gmra.mxu1 %v2255_v45  ;;  %1594 = vmatpush.bf16.msrb.mxu3 %v2922_v20  ;;  %v2364_v45 = vld [vmem:[%s3145_s30 + $0x214] sm:$0xf0]  ;;  %v2483_v51 = vor.u32 %v2878_v44, %v2482_v43  ;;  %v2538_v20 = vld [vmem:[%s3145_s30 + $0x350] sm:$0xf] }
  0x7d   : > { %1534 = vmatmul.bf16.gmra.mxu2 %v2259_v46  ;;  %v2370_v46 = vld [vmem:[%s3145_s30 + $0x200] sm:$0xf]  ;;  %v2367_v54 = vor.u32 %v2846_v42, %v2364_v45 }
  0x80   : > { %1595 = vmatpush.bf16.msrb.mxu3 %v2921_v39 }
  0x84   : > { %1596 = vmatpush.bf16.msrb.mxu3 %v2920_v59  ;;  %v2126_v59 = vld [vmem:[%s3145_s30 + $0x10] sm:$0xf] }
  0x85   : > { %v2127_v9 = vor.u32 %v2788_v60, %v2126_v59  ;;  %v2802_v59 = vld [vmem:[%s3145_s30 + $0x98] sm:$0xf0]  ;;  %v2190_v60 = vld [vmem:[%s3145_s30 + $0x88] sm:$0xf] }
  0x88   : > { %1597 = vmatpush.bf16.msrb.mxu3 %v2919_v6 }
  0x8b   : > { %1361 = vmatmul.bf16.gmra.mxu0 %v2279_v55  ;;  %1490 = vmatmul.bf16.gmra.mxu3 %v2507_v56  ;;  %v2371_v55 = vor.u32 %v2850_v47, %v2370_v46 }
  0x8c   : > { %1450 = vmatmul.bf16.gmra.mxu1 %v2283_v57 }
  0x8d   : > { %1539 = vmatmul.bf16.gmra.mxu2 %v2287_v58  ;;  %v2943_v58 = vld [vmem:[%s3686_s1 + $0x180] sm:$0xff] }
  0x8e   : > { %1864 = vmatpush.bf16.msrb.mxu2 %v2943_v58  ;;  %v2120_v58 = vld [vmem:[%s3145_s30 + $0x24] sm:$0xf0] }
  0x9b   : > { %1366 = vmatmul.bf16.gmra.mxu0 %v2307_v10  ;;  %1495 = vmatmul.bf16.gmra.mxu3 %v2535_v12  ;;  %v2510_v10 = vld [vmem:[%s3145_s30 + $0x318] sm:$0xf]  ;;  %v2885_v12 = vld [vmem:[%s3145_s30 + $0x330] sm:$0xf0] }
  0x9c   : > { %1455 = vmatmul.bf16.gmra.mxu1 %v2311_v13  ;;  %v2392_v13 = vld [vmem:[%s3145_s30 + $0x24c] sm:$0xf0]  ;;  %v2511_v22 = vor.u32 %v2885_v12, %v2510_v10 }
  0x9d   : > { %1544 = vmatmul.bf16.gmra.mxu2 %v2315_v15  ;;  %v2398_v15 = vld [vmem:[%s3145_s30 + $0x238] sm:$0xf]  ;;  %v2395_v11 = vor.u32 %v2853_v2, %v2392_v13 }
  0x9e   : > { %v2399_v14 = vor.u32 %v2857_v16, %v2398_v15 }
  0xa8   : > { %v1332_v30 = vpop.f32.mrf.mxu0 }
  0xa9   : > { %v1421_v17 = vpop.f32.mrf.mxu1 }
  0xaa   : > { %v1422_v33 = vadd.f32 %v1421_v17, %v1332_v30  ;;  %v2863_v17 = vld [vmem:[%s3145_s30 + $0x280] sm:$0xf0] }
  0xab   : > { %1371 = vmatmul.bf16.gmra.mxu0 %v2335_v28  ;;  %1569 = vmatmul.bf16.vlgmr.msra.gmra.mxu3 %v2455_v29 }
  0xac   : > { %1460 = vmatmul.bf16.gmra.mxu1 %v2339_v31 }
  0xad   : > { %1549 = vmatmul.bf16.gmra.mxu2 %v2343_v32  ;;  %v2418_v32 = vld [vmem:[%s3145_s30 + $0x268] sm:$0xf] }
  0xae   : > { %v3342_v23 = vpop.f32.mrf.mxu3  ;;  %v2419_v41 = vor.u32 %v2863_v17, %v2418_v32  ;;  %v2796_v32 = vld [vmem:[%s3145_s30 + $0x68] sm:$0xf0] }
  0xaf   : > { %v2792_v17 = vld [vmem:[%s3145_s30 + $0x4c] sm:$0xf] }
  0xb0   : > { %v1510_v34 = vpop.f32.mrf.mxu2  ;;  %v1334_v36 = vpop.f32.mrf.mxu0 }
  0xb1   : > { %v3344_v35 = vadd.f32 %v1510_v34, %v1422_v33  ;;  %v1423_v37 = vpop.f32.mrf.mxu1  ;;  %v2860_v33 = vld [vmem:[%s3145_s30 + $0x26c] sm:$0xf] }
  0xb2   : > { %v1424_v38 = vadd.f32 %v1423_v37, %v1334_v36  ;;  %v2892_v34 = vld [vmem:[%s3145_s30 + $0x368] sm:$0xf0]  ;;  %v2420_v36 = vld [vmem:[%s3145_s30 + $0x284] sm:$0xf0]  ;;  %v2426_v37 = vld [vmem:[%s3145_s30 + $0x270] sm:$0xf] }
  0xb3   : > { %v2539_v42 = vor.u32 %v2892_v34, %v2538_v20  ;;  %v2423_v45 = vor.u32 %v2860_v33, %v2420_v36  ;;  %v2156_v33 = vld [vmem:[%s3145_s30 + $0x64] sm:$0xf0] }
  0xb6   : > { %v3357_v48 = vpop.f32.mrf.mxu3 }
  0xb8   : > { %v1512_v49 = vpop.f32.mrf.mxu2  ;;  %v1337_v53 = vpop.f32.mrf.mxu0 }
  0xb9   : > { %v3359_v52 = vadd.f32 %v1512_v49, %v1424_v38  ;;  %v1426_v56 = vpop.f32.mrf.mxu1  ;;  %v2864_v38 = vld [vmem:[%s3145_s30 + $0x288] sm:$0xf0] }
  0xba   : > { %v1427_v57 = vadd.f32 %v1426_v56, %v1337_v53  ;;  %v2427_v46 = vor.u32 %v2864_v38, %v2426_v37 }
  0xbb   : > { %1376 = vmatmul.bf16.gmra.mxu0 %v2363_v50  ;;  %1574 = vmatmul.bf16.gmra.mxu3 %v2483_v51 }
  0xbc   : > { %1465 = vmatmul.bf16.gmra.mxu1 %v2367_v54 }
  0xbd   : > { %1554 = vmatmul.bf16.gmra.mxu2 %v2371_v55 }
  0xbe   : > { %v3373_v62 = vpop.f32.mrf.mxu3 }
  0xc0   : > { %v1515_v63 = vpop.f32.mrf.mxu2  ;;  %v1339_v1 = vpop.f32.mrf.mxu0 }
  0xc1   : > { %v3375_v0 = vadd.f32 %v1515_v63, %v1427_v57  ;;  %v1428_v3 = vpop.f32.mrf.mxu1  ;;  %v2784_v57 = vld [vmem:[%s3145_s30 + $0xc] sm:$0xf]  ;;  %v2789_v63 = vld [vmem:[%s3145_s30 + $0x30] sm:$0xf0] }
  0xc2   : > { %v1429_v4 = vadd.f32 %v1428_v3, %v1339_v1  ;;  %v2785_v1 = vld [vmem:[%s3145_s30 + $0x14] sm:$0xf]  ;;  %v2128_v3 = vld [vmem:[%s3145_s30 + $0x2c] sm:$0xf0]  ;;  %v2123_v7 = vor.u32 %v2784_v57, %v2120_v58  ;;  %v2135_v12 = vor.u32 %v2789_v63, %v2134_v61  ;;  %v2176_v57 = vld [vmem:[%s3145_s30 + $0x94] sm:$0xf0] }
  0xc3   : > { %v2131_v13 = vor.u32 %v2785_v1, %v2128_v3  ;;  %v2182_v58 = vld [vmem:[%s3145_s30 + $0x80] sm:$0xf]  ;;  %v2803_v61 = vld [vmem:[%s3145_s30 + $0xa0] sm:$0xf0] }
  0xc4   : > { %v2799_v63 = vld [vmem:[%s3145_s30 + $0x84] sm:$0xf]  ;;  %v2184_v1 = vld [vmem:[%s3145_s30 + $0x9c] sm:$0xf0] }
  0xc6   : > { %v3388_v18 = vpop.f32.mrf.mxu3 }
  0xc8   : > { %v1517_v19 = vpop.f32.mrf.mxu2  ;;  %v1342_v8 = vpop.f32.mrf.mxu0 }
  0xc9   : > { %v3390_v5 = vadd.f32 %v1517_v19, %v1429_v4  ;;  %v1431_v24 = vpop.f32.mrf.mxu1 }
  0xca   : > { %v1432_v25 = vadd.f32 %v1431_v24, %v1342_v8 }
  0xcb   : > { %1381 = vmatmul.bf16.gmra.mxu0 %v2391_v21  ;;  %1579 = vmatmul.bf16.gmra.mxu3 %v2511_v22 }
  0xcc   : > { %1470 = vmatmul.bf16.gmra.mxu1 %v2395_v11 }
  0xcd   : > { %1559 = vmatmul.bf16.gmra.mxu2 %v2399_v14 }
  0xce   : > { %v3392_v26 = vpop.f32.mrf.mxu3 }
  0xd0   : > { %v1520_v27 = vpop.f32.mrf.mxu2  ;;  %v1344_v29 = vpop.f32.mrf.mxu0 }
  0xd1   : > { %v3394_v28 = vadd.f32 %v1520_v27, %v1432_v25  ;;  %v1433_v30 = vpop.f32.mrf.mxu1  ;;  %v2791_v25 = vld [vmem:[%s3145_s30 + $0x44] sm:$0xf]  ;;  %v2148_v27 = vld [vmem:[%s3145_s30 + $0x5c] sm:$0xf0] }
  0xd2   : > { %v1434_v31 = vadd.f32 %v1433_v30, %v1344_v29  ;;  %v2154_v29 = vld [vmem:[%s3145_s30 + $0x48] sm:$0xf]  ;;  %v2795_v30 = vld [vmem:[%s3145_s30 + $0x60] sm:$0xf0]  ;;  %v2151_v36 = vor.u32 %v2791_v25, %v2148_v27 }
  0xd3   : > { %v2155_v37 = vor.u32 %v2795_v30, %v2154_v29  ;;  %v2805_v29 = vld [vmem:[%s3145_s30 + $0xb4] sm:$0xf]  ;;  %v2204_v30 = vld [vmem:[%s3145_s30 + $0xcc] sm:$0xf0] }
  0xd6   : > { %v3404_v39 = vpop.f32.mrf.mxu3 }
  0xd8   : > { %v1522_v40 = vpop.f32.mrf.mxu2  ;;  %v1347_v44 = vpop.f32.mrf.mxu0 }
  0xd9   : > { %v3406_v43 = vadd.f32 %v1522_v40, %v1434_v31  ;;  %v1436_v47 = vpop.f32.mrf.mxu1  ;;  %v2162_v31 = vld [vmem:[%s3145_s30 + $0x50] sm:$0xf] }
  0xda   : > { %v1437_v49 = vadd.f32 %v1436_v47, %v1347_v44 }
  0xdb   : > { %1386 = vmatmul.bf16.gmra.mxu0 %v2419_v41  ;;  %1584 = vmatmul.bf16.gmra.mxu3 %v2539_v42  ;;  %v2163_v41 = vor.u32 %v2796_v32, %v2162_v31  ;;  %v2159_v42 = vor.u32 %v2792_v17, %v2156_v33  ;;  %v2210_v31 = vld [vmem:[%s3145_s30 + $0xb8] sm:$0xf]  ;;  %v2809_v32 = vld [vmem:[%s3145_s30 + $0xd0] sm:$0xf0]  ;;  %v2218_v17 = vld [vmem:[%s3145_s30 + $0xc0] sm:$0xf] }
  0xdc   : > { %1475 = vmatmul.bf16.gmra.mxu1 %v2423_v45  ;;  %v2810_v33 = vld [vmem:[%s3145_s30 + $0xd8] sm:$0xf0] }
  0xdd   : > { %1564 = vmatmul.bf16.gmra.mxu2 %v2427_v46 }
  0xde   : > { %v3408_v50 = vpop.f32.mrf.mxu3 }
  0xe0   : > { %v1525_v51 = vpop.f32.mrf.mxu2  ;;  %v1349_v54 = vpop.f32.mrf.mxu0 }
  0xe1   : > { %v3410_v53 = vadd.f32 %v1525_v51, %v1437_v49  ;;  %v1438_v55 = vpop.f32.mrf.mxu1 }
  0xe2   : > { %v1439_v56 = vadd.f32 %v1438_v55, %v1349_v54 }
  0xe6   : > { %v3420_v4 = vpop.f32.mrf.mxu3 }
  0xe8   : > { %v1527_v6 = vpop.f32.mrf.mxu2  ;;  %v1352_v10 = vpop.f32.mrf.mxu0 }
  0xe9   : > { %v3422_v2 = vadd.f32 %v1527_v6, %v1439_v56  ;;  %v1441_v15 = vpop.f32.mrf.mxu1  ;;  %v2798_v56 = vld [vmem:[%s3145_s30 + $0x7c] sm:$0xf] }
  0xea   : > { %v1442_v16 = vadd.f32 %v1441_v15, %v1352_v10  ;;  %v2187_v15 = vor.u32 %v2799_v63, %v2184_v1  ;;  %v2238_v63 = vld [vmem:[%s3145_s30 + $0xf0] sm:$0xf]  ;;  %v2816_v1 = vld [vmem:[%s3145_s30 + $0x108] sm:$0xf0] }
  0xeb   : > { %1598 = vmatmul.bf16.vlgmr.msrb.gmra.mxu3 %v2123_v7  ;;  %1687 = vmatmul.bf16.vlgmr.msrb.gmra.mxu0 %v2127_v9  ;;  %v2179_v7 = vor.u32 %v2798_v56, %v2176_v57  ;;  %v2183_v9 = vor.u32 %v2802_v59, %v2182_v58 }
  0xec   : > { %1776 = vmatmul.bf16.vlgmr.msrb.gmra.mxu1 %v2131_v13  ;;  %v2191_v13 = vor.u32 %v2803_v61, %v2190_v60  ;;  %v2812_v60 = vld [vmem:[%s3145_s30 + $0xec] sm:$0xf]  ;;  %v2232_v61 = vld [vmem:[%s3145_s30 + $0x104] sm:$0xf0] }
  0xed   : > { %1865 = vmatmul.bf16.vlgmr.msrb.gmra.mxu2 %v2135_v12 }
  0xee   : > { %v1481_v19 = vpop.f32.mrf.mxu3 }
  0xef   : > { %v3425_v21 = vadd.f32 %v1481_v19, %v3342_v23 }
  0xf0   : > { %v1530_v22 = vpop.f32.mrf.mxu2  ;;  %v1354_v11 = vpop.f32.mrf.mxu0 }
  0xf1   : > { %v3427_v8 = vadd.f32 %v1530_v22, %v1442_v16  ;;  %v1443_v14 = vpop.f32.mrf.mxu1 }
  0xf2   : > { %v1444_v24 = vadd.f32 %v1443_v14, %v1354_v11 }
  0xf6   : > { %v1483_v20 = vpop.f32.mrf.mxu3 }
  0xf7   : > { %v3438_v34 = vadd.f32 %v1483_v20, %v3357_v48  ;;  %v2806_v20 = vld [vmem:[%s3145_s30 + $0xbc] sm:$0xf] }
  0xf8   : > { %v1532_v23 = vpop.f32.mrf.mxu2  ;;  %v1357_v40 = vpop.f32.mrf.mxu0 }
  0xf9   : > { %v3440_v38 = vadd.f32 %v1532_v23, %v1444_v24  ;;  %v1446_v44 = vpop.f32.mrf.mxu1  ;;  %v2212_v23 = vld [vmem:[%s3145_s30 + $0xd4] sm:$0xf0] }
  0xfa   : > { %v1447_v45 = vadd.f32 %v1446_v44, %v1357_v40  ;;  %v2207_v40 = vor.u32 %v2805_v29, %v2204_v30 }
  0xfb   : > { %1603 = vmatmul.bf16.gmra.mxu3 %v2151_v36  ;;  %1692 = vmatmul.bf16.gmra.mxu0 %v2155_v37 }
  0xfc   : > { %1781 = vmatmul.bf16.gmra.mxu1 %v2159_v42 }
  0xfd   : > { %1870 = vmatmul.bf16.gmra.mxu2 %v2163_v41  ;;  %v2211_v41 = vor.u32 %v2809_v32, %v2210_v31 }
  0xfe   : > { %v1486_v48 = vpop.f32.mrf.mxu3 }
  0xff   : > { %v3443_v46 = vadd.f32 %v1486_v48, %v3373_v62  ;;  %v2215_v48 = vor.u32 %v2806_v20, %v2212_v23  ;;  %v2819_v20 = vld [vmem:[%s3145_s30 + $0x124] sm:$0xf]  ;;  %v2260_v23 = vld [vmem:[%s3145_s30 + $0x13c] sm:$0xf0] }
 0x100   : > { %v1535_v47 = vpop.f32.mrf.mxu2  ;;  %v1359_v51 = vpop.f32.mrf.mxu0 }
 0x101   : > { %v3445_v49 = vadd.f32 %v1535_v47, %v1447_v45  ;;  %v1448_v54 = vpop.f32.mrf.mxu1  ;;  %v2219_v45 = vor.u32 %v2810_v33, %v2218_v17 }
 0x102   : > { %v1449_v55 = vadd.f32 %v1448_v54, %v1359_v51 }
 0x106   : > { %v1488_v3 = vpop.f32.mrf.mxu3 }
 0x107   : > { %v3456_v6 = vadd.f32 %v1488_v3, %v3388_v18  ;;  %v2246_v3 = vld [vmem:[%s3145_s30 + $0xf8] sm:$0xf] }
 0x108   : > { %v1537_v62 = vpop.f32.mrf.mxu2  ;;  %v1362_v12 = vpop.f32.mrf.mxu0 }
 0x109   : > { %v3458_v10 = vadd.f32 %v1537_v62, %v1449_v55  ;;  %v1451_v16 = vpop.f32.mrf.mxu1  ;;  %v2817_v62 = vld [vmem:[%s3145_s30 + $0x110] sm:$0xf0] }
 0x10a   : > { %v1452_v19 = vadd.f32 %v1451_v16, %v1362_v12  ;;  %v2239_v16 = vor.u32 %v2816_v1, %v2238_v63 }
 0x10b   : > { %1608 = vmatmul.bf16.gmra.mxu3 %v2179_v7  ;;  %1697 = vmatmul.bf16.gmra.mxu0 %v2183_v9  ;;  %v2813_v7 = vld [vmem:[%s3145_s30 + $0xf4] sm:$0xf]  ;;  %v2240_v9 = vld [vmem:[%s3145_s30 + $0x10c] sm:$0xf0] }
 0x10c   : > { %1786 = vmatmul.bf16.gmra.mxu1 %v2187_v15  ;;  %v2235_v15 = vor.u32 %v2812_v60, %v2232_v61 }
 0x10d   : > { %1875 = vmatmul.bf16.gmra.mxu2 %v2191_v13 }
 0x10e   : > { %v1491_v18 = vpop.f32.mrf.mxu3 }
 0x10f   : > { %v3461_v22 = vadd.f32 %v1491_v18, %v3392_v26 }
 0x110   : > { %v1540_v11 = vpop.f32.mrf.mxu2  ;;  %v1364_v24 = vpop.f32.mrf.mxu0 }
 0x111   : > { %v3463_v14 = vadd.f32 %v1540_v11, %v1452_v19  ;;  %v1453_v25 = vpop.f32.mrf.mxu1  ;;  %v2247_v11 = vor.u32 %v2817_v62, %v2246_v3 }
 0x112   : > { %v1454_v27 = vadd.f32 %v1453_v25, %v1364_v24  ;;  %v2243_v24 = vor.u32 %v2813_v7, %v2240_v9 }
 0x116   : > { %v1493_v36 = vpop.f32.mrf.mxu3 }
 0x117   : > { %v3474_v37 = vadd.f32 %v1493_v36, %v3404_v39  ;;  %v2266_v36 = vld [vmem:[%s3145_s30 + $0x128] sm:$0xf] }
 0x118   : > { %v1542_v26 = vpop.f32.mrf.mxu2  ;;  %v1367_v44 = vpop.f32.mrf.mxu0 }
 0x119   : > { %v3476_v42 = vadd.f32 %v1542_v26, %v1454_v27  ;;  %v1456_v47 = vpop.f32.mrf.mxu1  ;;  %v2823_v26 = vld [vmem:[%s3145_s30 + $0x140] sm:$0xf0] }
 0x11a   : > { %v1457_v51 = vadd.f32 %v1456_v47, %v1367_v44  ;;  %v2820_v44 = vld [vmem:[%s3145_s30 + $0x12c] sm:$0xf] }
 0x11b   : > { %1613 = vmatmul.bf16.gmra.mxu3 %v2207_v40  ;;  %1702 = vmatmul.bf16.gmra.mxu0 %v2211_v41  ;;  %v2274_v40 = vld [vmem:[%s3145_s30 + $0x130] sm:$0xf]  ;;  %v2824_v41 = vld [vmem:[%s3145_s30 + $0x148] sm:$0xf0] }
 0x11c   : > { %1791 = vmatmul.bf16.gmra.mxu1 %v2215_v48 }
 0x11d   : > { %1880 = vmatmul.bf16.gmra.mxu2 %v2219_v45  ;;  %v2268_v45 = vld [vmem:[%s3145_s30 + $0x144] sm:$0xf0] }
 0x11e   : > { %v1496_v39 = vpop.f32.mrf.mxu3 }
 0x11f   : > { %v3479_v54 = vadd.f32 %v1496_v39, %v3408_v50  ;;  %v2267_v39 = vor.u32 %v2823_v26, %v2266_v36 }
 0x120   : > { %v1545_v55 = vpop.f32.mrf.mxu2  ;;  %v1369_v57 = vpop.f32.mrf.mxu0 }
 0x121   : > { %v3481_v56 = vadd.f32 %v1545_v55, %v1457_v51  ;;  %v1458_v58 = vpop.f32.mrf.mxu1 }
 0x122   : > { %v1459_v59 = vadd.f32 %v1458_v58, %v1369_v57  ;;  %v2275_v58 = vor.u32 %v2824_v41, %v2274_v40 }
 0x126   : > { %v1498_v12 = vpop.f32.mrf.mxu3 }
 0x127   : > { %v3492_v13 = vadd.f32 %v1498_v12, %v3420_v4  ;;  %v2826_v12 = vld [vmem:[%s3145_s30 + $0x15c] sm:$0xf] }
 0x128   : > { %v1547_v50 = vpop.f32.mrf.mxu2  ;;  %v1372_v18 = vpop.f32.mrf.mxu0 }
 0x129   : > { %v3494_v19 = vadd.f32 %v1547_v50, %v1459_v59  ;;  %v1461_v25 = vpop.f32.mrf.mxu1  ;;  %v2271_v59 = vor.u32 %v2820_v44, %v2268_v45  ;;  %v2288_v50 = vld [vmem:[%s3145_s30 + $0x174] sm:$0xf0] }
 0x12a   : > { %v1462_v27 = vadd.f32 %v1461_v25, %v1372_v18  ;;  %v2302_v18 = vld [vmem:[%s3145_s30 + $0x168] sm:$0xf]  ;;  %v2296_v25 = vld [vmem:[%s3145_s30 + $0x17c] sm:$0xf0] }
 0x12b   : > { %1618 = vmatmul.bf16.gmra.mxu3 %v2235_v15  ;;  %1707 = vmatmul.bf16.gmra.mxu0 %v2239_v16  ;;  %v2294_v15 = vld [vmem:[%s3145_s30 + $0x160] sm:$0xf]  ;;  %v2830_v16 = vld [vmem:[%s3145_s30 + $0x178] sm:$0xf0] }
 0x12c   : > { %1796 = vmatmul.bf16.gmra.mxu1 %v2243_v24  ;;  %v2827_v24 = vld [vmem:[%s3145_s30 + $0x164] sm:$0xf] }
 0x12d   : > { %1885 = vmatmul.bf16.gmra.mxu2 %v2247_v11  ;;  %v2831_v11 = vld [vmem:[%s3145_s30 + $0x180] sm:$0xf0] }
 0x12e   : > { %v1570_v4 = vpop.f32.mrf.mxu3 }
 0x12f   : > { %v3497_v30 = vadd.f32 %v1570_v4, %v3425_v21  ;;  %v2263_v21 = vor.u32 %v2819_v20, %v2260_v23  ;;  %v2303_v20 = vor.u32 %v2831_v11, %v2302_v18  ;;  %v2299_v23 = vor.u32 %v2827_v24, %v2296_v25 }
 0x130   : > { %v1550_v29 = vpop.f32.mrf.mxu2  ;;  %v1374_v32 = vpop.f32.mrf.mxu0 }
 0x131   : > { %v3499_v31 = vadd.f32 %v1550_v29, %v1462_v27  ;;  %v1463_v17 = vpop.f32.mrf.mxu1 }
 0x132   : > { %v1464_v33 = vadd.f32 %v1463_v17, %v1374_v32  ;;  %v2295_v32 = vor.u32 %v2830_v16, %v2294_v15 }
 0x136   : > { %v1572_v48 = vpop.f32.mrf.mxu3 }
 0x137   : > { %v3510_v51 = vadd.f32 %v1572_v48, %v3438_v34 }
 0x138   : > { %v1552_v47 = vpop.f32.mrf.mxu2  ;;  %v1377_v57 = vpop.f32.mrf.mxu0 }
 0x139   : > { %v3512_v55 = vadd.f32 %v1552_v47, %v1464_v33  ;;  %v1466_v60 = vpop.f32.mrf.mxu1 }
 0x13a   : > { %v1467_v61 = vadd.f32 %v1466_v60, %v1377_v57  ;;  %v2322_v57 = vld [vmem:[%s3145_s30 + $0x198] sm:$0xf]  ;;  %v2838_v60 = vld [vmem:[%s3145_s30 + $0x1b8] sm:$0xf0] }
 0x13b   : > { %1623 = vmatmul.bf16.gmra.mxu3 %v2263_v21  ;;  %1712 = vmatmul.bf16.gmra.mxu0 %v2267_v39  ;;  %v2833_v21 = vld [vmem:[%s3145_s30 + $0x194] sm:$0xf]  ;;  %v2316_v39 = vld [vmem:[%s3145_s30 + $0x1ac] sm:$0xf0] }
 0x13c   : > { %1801 = vmatmul.bf16.gmra.mxu1 %v2271_v59  ;;  %v2330_v59 = vld [vmem:[%s3145_s30 + $0x1a0] sm:$0xf] }
 0x13d   : > { %1890 = vmatmul.bf16.gmra.mxu2 %v2275_v58  ;;  %v2837_v58 = vld [vmem:[%s3145_s30 + $0x1b0] sm:$0xf0]  ;;  %v2331_v15 = vor.u32 %v2838_v60, %v2330_v59 }
 0x13e   : > { %v1575_v34 = vpop.f32.mrf.mxu3 }
 0x13f   : > { %v3515_v1 = vadd.f32 %v1575_v34, %v3443_v46  ;;  %v2291_v46 = vor.u32 %v2826_v12, %v2288_v50  ;;  %v2324_v34 = vld [vmem:[%s3145_s30 + $0x1b4] sm:$0xf0] }
 0x140   : > { %v1555_v63 = vpop.f32.mrf.mxu2  ;;  %v1379_v62 = vpop.f32.mrf.mxu0 }
 0x141   : > { %v3517_v3 = vadd.f32 %v1555_v63, %v1467_v61  ;;  %v1468_v7 = vpop.f32.mrf.mxu1  ;;  %v2834_v61 = vld [vmem:[%s3145_s30 + $0x19c] sm:$0xf] }
 0x142   : > { %v1469_v9 = vadd.f32 %v1468_v7, %v1379_v62  ;;  %v2327_v16 = vor.u32 %v2834_v61, %v2324_v34 }
 0x146   : > { %v1577_v27 = vpop.f32.mrf.mxu3 }
 0x147   : > { %v3528_v29 = vadd.f32 %v1577_v27, %v3456_v6 }
 0x148   : > { %v1557_v4 = vpop.f32.mrf.mxu2  ;;  %v1382_v33 = vpop.f32.mrf.mxu0 }
 0x149   : > { %v3530_v17 = vadd.f32 %v1557_v4, %v1469_v9  ;;  %v1471_v36 = vpop.f32.mrf.mxu1  ;;  %v2323_v9 = vor.u32 %v2837_v58, %v2322_v57 }
 0x14a   : > { %v1472_v26 = vadd.f32 %v1471_v36, %v1382_v33  ;;  %v2840_v33 = vld [vmem:[%s3145_s30 + $0x1cc] sm:$0xf] }
 0x14b   : > { %1628 = vmatmul.bf16.gmra.mxu3 %v2291_v46  ;;  %1717 = vmatmul.bf16.gmra.mxu0 %v2295_v32  ;;  %v2844_v36 = vld [vmem:[%s3145_s30 + $0x1e8] sm:$0xf0] }
 0x14c   : > { %1806 = vmatmul.bf16.gmra.mxu1 %v2299_v23  ;;  %v2350_v23 = vld [vmem:[%s3145_s30 + $0x1d0] sm:$0xf] }
 0x14d   : > { %1895 = vmatmul.bf16.gmra.mxu2 %v2303_v20  ;;  %v2344_v20 = vld [vmem:[%s3145_s30 + $0x1e4] sm:$0xf0] }
 0x14e   : > { %v1580_v6 = vpop.f32.mrf.mxu3 }
 0x14f   : > { %v3533_v41 = vadd.f32 %v1580_v6, %v3461_v22  ;;  %v2319_v22 = vor.u32 %v2833_v21, %v2316_v39  ;;  %v2845_v6 = vld [vmem:[%s3145_s30 + $0x1f0] sm:$0xf0]  ;;  %v2351_v39 = vor.u32 %v2844_v36, %v2350_v23 }
 0x150   : > { %v1560_v40 = vpop.f32.mrf.mxu2  ;;  %v1384_v45 = vpop.f32.mrf.mxu0 }
 0x151   : > { %v3535_v44 = vadd.f32 %v1560_v40, %v1472_v26  ;;  %v1473_v48 = vpop.f32.mrf.mxu1  ;;  %v2358_v26 = vld [vmem:[%s3145_s30 + $0x1d8] sm:$0xf]  ;;  %v2841_v40 = vld [vmem:[%s3145_s30 + $0x1d4] sm:$0xf] }
 0x152   : > { %v1474_v47 = vadd.f32 %v1473_v48, %v1384_v45  ;;  %v2352_v45 = vld [vmem:[%s3145_s30 + $0x1ec] sm:$0xf0]  ;;  %v2359_v59 = vor.u32 %v2845_v6, %v2358_v26 }
 0x153   : > { %v2355_v60 = vor.u32 %v2841_v40, %v2352_v45 }
 0x156   : > { %v1582_v63 = vpop.f32.mrf.mxu3 }
 0x157   : > { %v3546_v7 = vadd.f32 %v1582_v63, %v3474_v37 }
 0x158   : > { %v1562_v62 = vpop.f32.mrf.mxu2  ;;  %v1387_v50 = vpop.f32.mrf.mxu0 }
 0x159   : > { %v3548_v12 = vadd.f32 %v1562_v62, %v1474_v47  ;;  %v1476_v18 = vpop.f32.mrf.mxu1 }
 0x15a   : > { %v1477_v11 = vadd.f32 %v1476_v18, %v1387_v50  ;;  %v2378_v50 = vld [vmem:[%s3145_s30 + $0x208] sm:$0xf]  ;;  %v2852_v18 = vld [vmem:[%s3145_s30 + $0x228] sm:$0xf0] }
 0x15b   : > { %1633 = vmatmul.bf16.gmra.mxu3 %v2319_v22  ;;  %1722 = vmatmul.bf16.gmra.mxu0 %v2323_v9  ;;  %v2847_v22 = vld [vmem:[%s3145_s30 + $0x204] sm:$0xf]  ;;  %v2372_v9 = vld [vmem:[%s3145_s30 + $0x21c] sm:$0xf0] }
 0x15c   : > { %1811 = vmatmul.bf16.gmra.mxu1 %v2327_v16  ;;  %v2386_v16 = vld [vmem:[%s3145_s30 + $0x210] sm:$0xf] }
 0x15d   : > { %1900 = vmatmul.bf16.gmra.mxu2 %v2331_v15  ;;  %v2851_v15 = vld [vmem:[%s3145_s30 + $0x220] sm:$0xf0] }
 0x15e   : > { %v1585_v37 = vpop.f32.mrf.mxu3 }
 0x15f   : > { %v3551_v25 = vadd.f32 %v1585_v37, %v3479_v54  ;;  %v2347_v54 = vor.u32 %v2840_v33, %v2344_v20  ;;  %v2380_v37 = vld [vmem:[%s3145_s30 + $0x224] sm:$0xf0]  ;;  %v2387_v20 = vor.u32 %v2852_v18, %v2386_v16 }
 0x160   : > { %v1565_v24 = vpop.f32.mrf.mxu2  ;;  %v1389_v4 = vpop.f32.mrf.mxu0 }
 0x161   : > { %v3553_v27 = vadd.f32 %v1565_v24, %v1477_v11  ;;  %v1478_v46 = vpop.f32.mrf.mxu1  ;;  %v2848_v11 = vld [vmem:[%s3145_s30 + $0x20c] sm:$0xf] }
 0x162   : > { %v1479_v32 = vadd.f32 %v1478_v46, %v1389_v4  ;;  %v2375_v46 = vor.u32 %v2847_v22, %v2372_v9  ;;  %v2383_v23 = vor.u32 %v2848_v11, %v2380_v37  ;;  %v2400_v22 = vld [vmem:[%s3145_s30 + $0x254] sm:$0xf0]  ;;  %v2406_v9 = vld [vmem:[%s3145_s30 + $0x240] sm:$0xf]  ;;  %v2855_v11 = vld [vmem:[%s3145_s30 + $0x244] sm:$0xf] }
 0x163   : > { %v2408_v37 = vld [vmem:[%s3145_s30 + $0x25c] sm:$0xf0] }
 0x166   : > { %v1587_v48 = vpop.f32.mrf.mxu3 }
 0x167   : > { %v3564_v21 = vadd.f32 %v1587_v48, %v3492_v13 }
 0x168   : > { %v1567_v47 = vpop.f32.mrf.mxu2  ;;  %v1688_v58 = vpop.f32.mrf.mxu0 }
 0x169   : > { %v3566_v57 = vadd.f32 %v1567_v47, %v1479_v32  ;;  %v1777_v61 = vpop.f32.mrf.mxu1  ;;  %v2379_v32 = vor.u32 %v2851_v15, %v2378_v50  ;;  %v2858_v50 = vld [vmem:[%s3145_s30 + $0x258] sm:$0xf0]  ;;  %v2414_v15 = vld [vmem:[%s3145_s30 + $0x248] sm:$0xf] }
 0x16b   : > { %1638 = vmatmul.bf16.gmra.mxu3 %v2347_v54  ;;  %1727 = vmatmul.bf16.gmra.mxu0 %v2351_v39 }
 0x16c   : > { %1816 = vmatmul.bf16.gmra.mxu1 %v2355_v60 }
 0x16d   : > { %1905 = vmatmul.bf16.gmra.mxu2 %v2359_v59 }
 0x16e   : > { %v1599_v13 = vpop.f32.mrf.mxu3 }
 0x16f   : > { %v1600_v36 = vadd.f32 %v1599_v13, %v3344_v35  ;;  %v2854_v13 = vld [vmem:[%s3145_s30 + $0x23c] sm:$0xf] }
 0x170   : > { %v1866_v34 = vpop.f32.mrf.mxu2  ;;  %v1690_v63 = vpop.f32.mrf.mxu0 }
 0x171   : > { %v1779_v62 = vpop.f32.mrf.mxu1  ;;  %v1689_v6 = vadd.f32 %v1688_v58, %v1600_v36  ;;  %v2411_v36 = vor.u32 %v2855_v11, %v2408_v37 }
 0x173   : > { %v1778_v35 = vadd.f32 %v1777_v61, %v1689_v6 }
 0x175   : > { %v1867_v58 = vadd.f32 %v1866_v34, %v1778_v35 }
 0x176   : > { %v1601_v24 = vpop.f32.mrf.mxu3 }
 0x177   : > { %v1602_v54 = vadd.f32 %v1601_v24, %v3359_v52  ;;  %v2403_v52 = vor.u32 %v2854_v13, %v2400_v22  ;;  %v2407_v24 = vor.u32 %v2858_v50, %v2406_v9  ;;  %v2442_v13 = vld [vmem:[%s3145_s30 + $0x280] sm:$0xf]  ;;  %v2866_v22 = vld [vmem:[%s3145_s30 + $0x298] sm:$0xf0]  ;;  %v2436_v50 = vld [vmem:[%s3145_s30 + $0x294] sm:$0xf0] }
 0x178   : > { %v1868_v4 = vpop.f32.mrf.mxu2  ;;  %v1693_v33 = vpop.f32.mrf.mxu0  ;;  %v2862_v9 = vld [vmem:[%s3145_s30 + $0x27c] sm:$0xf] }
 0x179   : > { %v1782_v26 = vpop.f32.mrf.mxu1  ;;  %v1691_v16 = vadd.f32 %v1690_v63, %v1602_v54  ;;  %v2861_v54 = vld [vmem:[%s3145_s30 + $0x274] sm:$0xf]  ;;  %v2439_v11 = vor.u32 %v2862_v9, %v2436_v50 }
 0x17b   : > { %1643 = vmatmul.bf16.gmra.mxu3 %v2375_v46  ;;  %1732 = vmatmul.bf16.gmra.mxu0 %v2379_v32 }
 0x17c   : > { %1821 = vmatmul.bf16.gmra.mxu1 %v2383_v23 }
 0x17d   : > { %1910 = vmatmul.bf16.gmra.mxu2 %v2387_v20 }
 0x17e   : > { %v1604_v40 = vpop.f32.mrf.mxu3 }
 0x17f   : > { %v1605_v45 = vadd.f32 %v1604_v40, %v3375_v0  ;;  %v2859_v0 = vld [vmem:[%s3145_s30 + $0x260] sm:$0xf0] }
 0x180   : > { %v1871_v48 = vpop.f32.mrf.mxu2  ;;  %v1695_v47 = vpop.f32.mrf.mxu0  ;;  %v2415_v23 = vor.u32 %v2859_v0, %v2414_v15  ;;  %v2443_v0 = vor.u32 %v2866_v22, %v2442_v13 }
 0x181   : > { %v1694_v39 = vadd.f32 %v1693_v33, %v1605_v45  ;;  %v1784_v59 = vpop.f32.mrf.mxu1 }
 0x183   : > { %v1783_v60 = vadd.f32 %v1782_v26, %v1694_v39  ;;  %v1780_v26 = vadd.f32 %v1779_v62, %v1691_v16  ;;  %v2428_v39 = vld [vmem:[%s3145_s30 + $0x28c] sm:$0xf0] }
 0x184   : > { %v2431_v16 = vor.u32 %v2861_v54, %v2428_v39 }
 0x185   : > { %v1872_v18 = vadd.f32 %v1871_v48, %v1783_v60  ;;  %v2865_v60 = vld [vmem:[%s3145_s30 + $0x290] sm:$0xf0] }
 0x186   : > { %v1606_v46 = vpop.f32.mrf.mxu3 }
 0x187   : > { %v1946_v32 = vmax.f32 %v1867_v58, %v1872_v18  ;;  %v1607_v61 = vadd.f32 %v1606_v46, %v3390_v5  ;;  %v1869_v5 = vadd.f32 %v1868_v4, %v1780_v26 }
 0x188   : > { %v1873_v20 = vpop.f32.mrf.mxu2  ;;  %v1698_v33 = vpop.f32.mrf.mxu0 }
 0x189   : > { %1962 = vst [vmem:[#allocation2] sm:$0xff] %v1946_v32  ;;  %v1696_v6 = vadd.f32 %v1695_v47, %v1607_v61  ;;  %v1787_v34 = vpop.f32.mrf.mxu1 }
 0x18b   : > { %v1785_v63 = vadd.f32 %v1784_v59, %v1696_v6  ;;  %1648 = vmatmul.bf16.gmra.mxu3 %v2403_v52  ;;  %1737 = vmatmul.bf16.gmra.mxu0 %v2407_v24  ;;  %v2434_v59 = vld [vmem:[%s3145_s30 + $0x278] sm:$0xf] }
 0x18c   : > { %1826 = vmatmul.bf16.gmra.mxu1 %v2411_v36  ;;  %v2435_v18 = vor.u32 %v2865_v60, %v2434_v59  ;;  %v2869_v59 = vld [vmem:[%s3145_s30 + $0x2b4] sm:$0xf]  ;;  %v2464_v60 = vld [vmem:[%s3145_s30 + $0x2cc] sm:$0xf0] }
 0x18d   : > { %1915 = vmatmul.bf16.gmra.mxu2 %v2415_v23  ;;  %v1874_v40 = vadd.f32 %v1873_v20, %v1785_v63  ;;  %v2868_v63 = vld [vmem:[%s3145_s30 + $0x2ac] sm:$0xf] }
 0x18e   : > { %v1609_v45 = vpop.f32.mrf.mxu3 }
 0x18f   : > { %v1947_v62 = vmax.f32 %v1869_v5, %v1874_v40  ;;  %v1610_v37 = vadd.f32 %v1609_v45, %v3394_v28  ;;  %v2456_v5 = vld [vmem:[%s3145_s30 + $0x2c4] sm:$0xf0]  ;;  %v2462_v40 = vld [vmem:[%s3145_s30 + $0x2b0] sm:$0xf]  ;;  %v2872_v45 = vld [vmem:[%s3145_s30 + $0x2c8] sm:$0xf0] }
 0x190   : > { %v1876_v48 = vpop.f32.mrf.mxu2  ;;  %v1700_v35 = vpop.f32.mrf.mxu0  ;;  %v2463_v50 = vor.u32 %v2872_v45, %v2462_v40  ;;  %v3621_v45 = vld [vmem:[%s3687_s2] ss:$0 sm:$0xff] }
 0x191   : > { %1963 = vst [vmem:[#allocation2 + $0x8] sm:$0xff] %v1947_v62  ;;  %v1789_v47 = vpop.f32.mrf.mxu1  ;;  %v1699_v32 = vadd.f32 %v1698_v33, %v1610_v37  ;;  %v2470_v62 = vld [vmem:[%s3145_s30 + $0x2b8] sm:$0xf] }
 0x193   : > { %v1788_v28 = vadd.f32 %v1787_v34, %v1699_v32 }
 0x195   : > { %v1877_v33 = vadd.f32 %v1876_v48, %v1788_v28  ;;  %v2484_v28 = vld [vmem:[%s3145_s30 + $0x2fc] sm:$0xf0] }
 0x196   : > { %v1611_v15 = vpop.f32.mrf.mxu3 }
 0x197   : > { %v1612_v23 = vadd.f32 %v1611_v15, %v3406_v43  ;;  %v2459_v43 = vor.u32 %v2868_v63, %v2456_v5  ;;  %v2492_v63 = vld [vmem:[%s3145_s30 + $0x304] sm:$0xf0] }
 0x198   : > { %v1878_v58 = vpop.f32.mrf.mxu2  ;;  %v1703_v4 = vpop.f32.mrf.mxu0 }
 0x199   : > { %v1792_v46 = vpop.f32.mrf.mxu1  ;;  %v1701_v54 = vadd.f32 %v1700_v35, %v1612_v23  ;;  %v2490_v23 = vld [vmem:[%s3145_s30 + $0x2e8] sm:$0xf] }
 0x19b   : > { %1653 = vmatmul.bf16.gmra.mxu3 %v2431_v16  ;;  %1742 = vmatmul.bf16.gmra.mxu0 %v2435_v18  ;;  %v2467_v18 = vor.u32 %v2869_v59, %v2464_v60 }
 0x19c   : > { %1831 = vmatmul.bf16.gmra.mxu1 %v2439_v11 }
 0x19d   : > { %1920 = vmatmul.bf16.gmra.mxu2 %v2443_v0 }
 0x19e   : > { %v1614_v61 = vpop.f32.mrf.mxu3 }
 0x19f   : > { %v1615_v20 = vadd.f32 %v1614_v61, %v3410_v53  ;;  %v2873_v53 = vld [vmem:[%s3145_s30 + $0x2d0] sm:$0xf0] }
 0x1a0   : > { %v1881_v52 = vpop.f32.mrf.mxu2  ;;  %v1705_v24 = vpop.f32.mrf.mxu0  ;;  %v2471_v16 = vor.u32 %v2873_v53, %v2470_v62 }
 0x1a1   : > { %v1704_v36 = vadd.f32 %v1703_v4, %v1615_v20  ;;  %v1794_v26 = vpop.f32.mrf.mxu1  ;;  %v1790_v4 = vadd.f32 %v1789_v47, %v1701_v54  ;;  %v1978_v20 = vld [vmem:[#allocation2] ss:$2 sm:$0xff] }
 0x1a3   : > { %v1793_v6 = vadd.f32 %v1792_v46, %v1704_v36  ;;  %v2879_v36 = vld [vmem:[%s3145_s30 + $0x300] sm:$0xf0] }
 0x1a4   : > { %v2491_v54 = vor.u32 %v2879_v36, %v2490_v23  ;;  %v2886_v23 = vld [vmem:[%s3145_s30 + $0x338] sm:$0xf0] }
 0x1a5   : > { %v1882_v39 = vadd.f32 %v1881_v52, %v1793_v6  ;;  %v1994_v52 = vld [vmem:[#allocation2 + $0x1] ss:$2 sm:$0xff] }
 0x1a6   : > { %v1616_v13 = vpop.f32.mrf.mxu3  ;;  %v2880_v6 = vld [vmem:[%s3145_s30 + $0x308] sm:$0xf0]  ;;  %v2009_v40 = vmax.f32 %v1978_v20, %v1994_v52  ;;  %v2882_v52 = vld [vmem:[%s3145_s30 + $0x31c] sm:$0xf] }
 0x1a7   : > { %v1948_v22 = vmax.f32 %v1877_v33, %v1882_v39  ;;  %v1617_v34 = vadd.f32 %v1616_v13, %v3422_v2  ;;  %v1879_v2 = vadd.f32 %v1878_v58, %v1790_v4  ;;  %v2876_v58 = vld [vmem:[%s3145_s30 + $0x2ec] sm:$0xf] }
 0x1a8   : > { %v1883_v9 = vpop.f32.mrf.mxu2  ;;  %v1708_v15 = vpop.f32.mrf.mxu0  ;;  %v2495_v13 = vor.u32 %v2876_v58, %v2492_v63  ;;  %v2883_v58 = vld [vmem:[%s3145_s30 + $0x324] sm:$0xf]  ;;  %v2520_v63 = vld [vmem:[%s3145_s30 + $0x33c] sm:$0xf0] }
 0x1a9   : > { %1964 = vst [vmem:[#allocation2 + $0x10] sm:$0xff] %v1948_v22  ;;  %v1706_v0 = vadd.f32 %v1705_v24, %v1617_v34  ;;  %v1797_v11 = vpop.f32.mrf.mxu1  ;;  %v2875_v24 = vld [vmem:[%s3145_s30 + $0x2e4] sm:$0xf] }
 0x1aa   : > { %v2487_v33 = vor.u32 %v2875_v24, %v2484_v28  ;;  %v2512_v24 = vld [vmem:[%s3145_s30 + $0x334] sm:$0xf0]  ;;  %v2518_v28 = vld [vmem:[%s3145_s30 + $0x320] sm:$0xf] }
 0x1ab   : > { %v1795_v48 = vadd.f32 %v1794_v26, %v1706_v0  ;;  %1658 = vmatmul.bf16.gmra.mxu3 %v2459_v43  ;;  %1747 = vmatmul.bf16.gmra.mxu0 %v2463_v50  ;;  %v2498_v26 = vld [vmem:[%s3145_s30 + $0x2f0] sm:$0xf]  ;;  %v2021_v43 = vadd.f32 %v3621_v45, %v2009_v40 }
 0x1ac   : > { %1836 = vmatmul.bf16.gmra.mxu1 %v2467_v18  ;;  %v2499_v60 = vor.u32 %v2880_v6, %v2498_v26 }
 0x1ad   : > { %1925 = vmatmul.bf16.gmra.mxu2 %v2471_v16  ;;  %v1884_v35 = vadd.f32 %v1883_v9, %v1795_v48 }
 0x1ae   : > { %v1619_v37 = vpop.f32.mrf.mxu3 }
 0x1af   : > { %v1949_v47 = vmax.f32 %v1879_v2, %v1884_v35  ;;  %v1620_v34 = vadd.f32 %v1619_v37, %v3427_v8 }
 0x1b0   : > { %v1886_v46 = vpop.f32.mrf.mxu2  ;;  %v1710_v32 = vpop.f32.mrf.mxu0 }
 0x1b1   : > { %1965 = vst [vmem:[#allocation2 + $0x18] sm:$0xff] %v1949_v47  ;;  %v3608_v61 = vpop.f32.mrf.mxu1  ;;  %v1709_v16 = vadd.f32 %v1708_v15, %v1620_v34  ;;  %v2526_v15 = vld [vmem:[%s3145_s30 + $0x328] sm:$0xf] }
 0x1b3   : > { %v1798_v2 = vadd.f32 %v1797_v11, %v1709_v16  ;;  %v2540_v16 = vld [vmem:[%s3145_s30 + $0x36c] sm:$0xf0] }
 0x1b5   : > { %v1887_v36 = vadd.f32 %v1886_v46, %v1798_v2  ;;  %v2890_v2 = vld [vmem:[%s3145_s30 + $0x35c] sm:$0xf] }
 0x1b6   : > { %v1621_v5 = vpop.f32.mrf.mxu3 }
 0x1b7   : > { %v1622_v35 = vadd.f32 %v1621_v5, %v3440_v38  ;;  %v2515_v38 = vor.u32 %v2882_v52, %v2512_v24  ;;  %v2519_v5 = vor.u32 %v2886_v23, %v2518_v28 }
 0x1b8   : > { %v1888_v62 = vpop.f32.mrf.mxu2  ;;  %v1980_v39 = vld [vmem:[#allocation2 + $0x10] ss:$2 sm:$0xff]  ;;  %v1996_v53 = vld [vmem:[#allocation2 + $0x11] ss:$2 sm:$0xff]  ;;  %v1713_v59 = vpop.f32.mrf.mxu0 }
 0x1b9   : > { %v2010_v22 = vmax.f32 %v1980_v39, %v1996_v53  ;;  %v1802_v9 = vpop.f32.mrf.mxu1  ;;  %v1711_v26 = vadd.f32 %v1710_v32, %v1622_v35  ;;  %v2548_v35 = vld [vmem:[%s3145_s30 + $0x374] sm:$0xf0] }
 0x1ba   : > { %v2551_v28 = vor.u32 %v2890_v2, %v2548_v35 }
 0x1bb   : > { %v2022_v50 = vadd.f32 %v3621_v45, %v2010_v22  ;;  %1663 = vmatmul.bf16.gmra.mxu3 %v2487_v33  ;;  %1752 = vmatmul.bf16.gmra.mxu0 %v2491_v54 }
 0x1bc   : > { %1841 = vmatmul.bf16.gmra.mxu1 %v2495_v13 }
 0x1bd   : > { %1930 = vmatmul.bf16.gmra.mxu2 %v2499_v60  ;;  %v2954_v8 = vpack.c.bf16 %v2022_v50, %v2021_v43  ;;  %v1800_v60 = vadd.f32 %v3608_v61, %v1711_v26 }
 0x1be   : > { %v1624_v18 = vpop.f32.mrf.mxu3 }
 0x1bf   : > { %2955 = vst [vmem:[%s3630_s11] sm:$0xff] %v2954_v8   ;;  %v1625_v4 = vadd.f32 %v1624_v18, %v3445_v49  ;;  %v2887_v49 = vld [vmem:[%s3145_s30 + $0x340] sm:$0xf0]  ;;  %v2889_v8 = vld [vmem:[%s3145_s30 + $0x354] sm:$0xf]  ;;  %v2546_v18 = vld [vmem:[%s3145_s30 + $0x358] sm:$0xf] }
 0x1c0   : > { %v1891_v0 = vpop.f32.mrf.mxu2  ;;  %v1715_v48 = vpop.f32.mrf.mxu0  ;;  %v2527_v53 = vor.u32 %v2887_v49, %v2526_v15 }
 0x1c1   : > { %v1714_v37 = vadd.f32 %v1713_v59, %v1625_v4  ;;  %v1804_v47 = vpop.f32.mrf.mxu1  ;;  %v2523_v59 = vor.u32 %v2883_v58, %v2520_v63  ;;  %v2893_v4 = vld [vmem:[%s3145_s30 + $0x370] sm:$0xf0] }
 0x1c2   : > { %v2547_v52 = vor.u32 %v2893_v4, %v2546_v18 }
 0x1c3   : > { %v1803_v20 = vadd.f32 %v1802_v9, %v1714_v37 }
 0x1c5   : > { %v1892_v6 = vadd.f32 %v1891_v0, %v1803_v20  ;;  %v2554_v0 = vld [vmem:[%s3145_s30 + $0x360] sm:$0xf]  ;;  %v2543_v20 = vor.u32 %v2889_v8, %v2540_v16 }
 0x1c6   : > { %v1626_v40 = vpop.f32.mrf.mxu3 }
 0x1c7   : > { %v1950_v33 = vmax.f32 %v1887_v36, %v1892_v6  ;;  %v1627_v11 = vadd.f32 %v1626_v40, %v3458_v10  ;;  %v1889_v10 = vadd.f32 %v1888_v62, %v1800_v60 }
 0x1c8   : > { %v1893_v54 = vpop.f32.mrf.mxu2  ;;  %v1718_v39 = vpop.f32.mrf.mxu0 }
 0x1c9   : > { %1966 = vst [vmem:[#allocation2 + $0x20] sm:$0xff] %v1950_v33  ;;  %v1716_v46 = vadd.f32 %v1715_v48, %v1627_v11  ;;  %v1807_v32 = vpop.f32.mrf.mxu1  ;;  %v2894_v48 = vld [vmem:[%s3145_s30 + $0x378] sm:$0xf0] }
 0x1ca   : > { %v2555_v24 = vor.u32 %v2894_v48, %v2554_v0 }
 0x1cb   : > { %v1805_v13 = vadd.f32 %v1804_v47, %v1716_v46  ;;  %1668 = vmatmul.bf16.gmra.mxu3 %v2515_v38  ;;  %1757 = vmatmul.bf16.gmra.mxu0 %v2519_v5 }
 0x1cc   : > { %1846 = vmatmul.bf16.gmra.mxu1 %v2523_v59 }
 0x1cd   : > { %1935 = vmatmul.bf16.gmra.mxu2 %v2527_v53  ;;  %v1894_v22 = vadd.f32 %v1893_v54, %v1805_v13 }
 0x1ce   : > { %v1629_v34 = vpop.f32.mrf.mxu3 }
 0x1cf   : > { %v1951_v61 = vmax.f32 %v1889_v10, %v1894_v22  ;;  %v1630_v23 = vadd.f32 %v1629_v34, %v3463_v14 }
 0x1d0   : > { %v1896_v9 = vpop.f32.mrf.mxu2  ;;  %v1720_v43 = vpop.f32.mrf.mxu0 }
 0x1d1   : > { %1967 = vst [vmem:[#allocation2 + $0x28] sm:$0xff] %v1951_v61  ;;  %v1809_v50 = vpop.f32.mrf.mxu1  ;;  %v1719_v36 = vadd.f32 %v1718_v39, %v1630_v23 }
 0x1d3   : > { %v1808_v63 = vadd.f32 %v1807_v32, %v1719_v36 }
 0x1d5   : > { %v1897_v38 = vadd.f32 %v1896_v9, %v1808_v63 }
 0x1d6   : > { %v1631_v37 = vpop.f32.mrf.mxu3 }
 0x1d7   : > { %v1632_v40 = vadd.f32 %v1631_v37, %v3476_v42 }
 0x1d8   : > { %v1898_v47 = vpop.f32.mrf.mxu2  ;;  %v1723_v62 = vpop.f32.mrf.mxu0  ;;  %v1998_v18 = vld [vmem:[#allocation2 + $0x21] ss:$2 sm:$0xff] }
 0x1d9   : > { %v1812_v15 = vpop.f32.mrf.mxu1  ;;  %v1721_v5 = vadd.f32 %v1720_v43, %v1632_v40  ;;  %v1982_v43 = vld [vmem:[#allocation2 + $0x20] ss:$2 sm:$0xff] }
 0x1db   : > { %1673 = vmatmul.bf16.gmra.mxu3 %v2543_v20  ;;  %1762 = vmatmul.bf16.gmra.mxu0 %v2547_v52  ;;  %v1810_v13 = vadd.f32 %v1809_v50, %v1721_v5 }
 0x1dc   : > { %1851 = vmatmul.bf16.gmra.mxu1 %v2551_v28 }
 0x1dd   : > { %1940 = vmatmul.bf16.gmra.mxu2 %v2555_v24  ;;  %v1899_v32 = vadd.f32 %v1898_v47, %v1810_v13 }
 0x1de   : > { %v1634_v26 = vpop.f32.mrf.mxu3 }
 0x1df   : > { %v1635_v6 = vadd.f32 %v1634_v26, %v3481_v56 }
 0x1e0   : > { %v1901_v49 = vpop.f32.mrf.mxu2  ;;  %v1725_v58 = vpop.f32.mrf.mxu0 }
 0x1e1   : > { %v1724_v33 = vadd.f32 %v1723_v62, %v1635_v6  ;;  %v1814_v11 = vpop.f32.mrf.mxu1 }
 0x1e3   : > { %v1813_v54 = vadd.f32 %v1812_v15, %v1724_v33 }
 0x1e5   : > { %v1902_v14 = vadd.f32 %v1901_v49, %v1813_v54 }
 0x1e6   : > { %v1636_v53 = vpop.f32.mrf.mxu3 }
 0x1e7   : > { %v1952_v59 = vmax.f32 %v1897_v38, %v1902_v14  ;;  %v1637_v60 = vadd.f32 %v1636_v53, %v3494_v19  ;;  %v2011_v19 = vmax.f32 %v1982_v43, %v1998_v18 }
 0x1e8   : > { %v1903_v46 = vpop.f32.mrf.mxu2  ;;  %v1728_v39 = vpop.f32.mrf.mxu0 }
 0x1e9   : > { %1968 = vst [vmem:[#allocation2 + $0x30] sm:$0xff] %v1952_v59  ;;  %v1726_v56 = vadd.f32 %v1725_v58, %v1637_v60  ;;  %v1817_v10 = vpop.f32.mrf.mxu1  ;;  %v2023_v20 = vadd.f32 %v3621_v45, %v2011_v19 }
 0x1eb   : > { %v1815_v22 = vadd.f32 %v1814_v11, %v1726_v56 }
 0x1ed   : > { %v1904_v34 = vadd.f32 %v1903_v46, %v1815_v22 }
 0x1ee   : > { %v1639_v42 = vpop.f32.mrf.mxu3 }
 0x1ef   : > { %v1953_v61 = vmax.f32 %v1899_v32, %v1904_v34  ;;  %v1640_v37 = vadd.f32 %v1639_v42, %v3499_v31 }
 0x1f0   : > { %v1906_v8 = vpop.f32.mrf.mxu2  ;;  %v1730_v16 = vpop.f32.mrf.mxu0 }
 0x1f1   : > { %1969 = vst [vmem:[#allocation2 + $0x38] sm:$0xff] %v1953_v61  ;;  %v1819_v9 = vpop.f32.mrf.mxu1  ;;  %v1729_v24 = vadd.f32 %v1728_v39, %v1640_v37 }
 0x1f3   : > { %v1818_v26 = vadd.f32 %v1817_v10, %v1729_v24 }
 0x1f5   : > { %v1907_v31 = vadd.f32 %v1906_v8, %v1818_v26 }
 0x1f6   : > { %v1641_v4 = vpop.f32.mrf.mxu3 }
 0x1f7   : > { %v1642_v6 = vadd.f32 %v1641_v4, %v3512_v55 }
 0x1f8   : > { %v1908_v0 = vpop.f32.mrf.mxu2  ;;  %v1984_v48 = vld [vmem:[#allocation2 + $0x30] ss:$2 sm:$0xff]  ;;  %v2000_v50 = vld [vmem:[#allocation2 + $0x31] ss:$2 sm:$0xff]  ;;  %v1733_v2 = vpop.f32.mrf.mxu0 }
 0x1f9   : > { %v2012_v35 = vmax.f32 %v1984_v48, %v2000_v50  ;;  %v1822_v47 = vpop.f32.mrf.mxu1  ;;  %v1731_v40 = vadd.f32 %v1730_v16, %v1642_v6 }
 0x1fb   : > { %v2024_v52 = vadd.f32 %v3621_v45, %v2012_v35  ;;  %v1820_v53 = vadd.f32 %v1819_v9, %v1731_v40 }
 0x1fd   : > { %v2959_v62 = vpack.c.bf16 %v2024_v52, %v2023_v20  ;;  %v1909_v46 = vadd.f32 %v1908_v0, %v1820_v53 }
 0x1fe   : > { %v1644_v28 = vpop.f32.mrf.mxu3 }
 0x1ff   : > { %2971 = vst [vmem:[%s3630_s11 + $0x8] sm:$0xff] %v2959_v62   ;;  %v1645_v23 = vadd.f32 %v1644_v28, %v3517_v3 }
 0x200   : > { %v1911_v15 = vpop.f32.mrf.mxu2  ;;  %v1735_v36 = vpop.f32.mrf.mxu0 }
 0x201   : > { %v1734_v49 = vadd.f32 %v1733_v2, %v1645_v23  ;;  %v1824_v58 = vpop.f32.mrf.mxu1 }
 0x203   : > { %v1823_v63 = vadd.f32 %v1822_v47, %v1734_v49 }
 0x205   : > { %v1912_v33 = vadd.f32 %v1911_v15, %v1823_v63 }
 0x206   : > { %v1646_v11 = vpop.f32.mrf.mxu3 }
 0x207   : > { %v1954_v54 = vmax.f32 %v1907_v31, %v1912_v33  ;;  %v1647_v38 = vadd.f32 %v1646_v11, %v3530_v17 }
 0x208   : > { %v1913_v5 = vpop.f32.mrf.mxu2  ;;  %v1738_v14 = vpop.f32.mrf.mxu0 }
 0x209   : > { %1970 = vst [vmem:[#allocation2 + $0x40] sm:$0xff] %v1954_v54  ;;  %v1736_v3 = vadd.f32 %v1735_v36, %v1647_v38  ;;  %v1827_v59 = vpop.f32.mrf.mxu1 }
 0x20b   : > { %v1825_v60 = vadd.f32 %v1824_v58, %v1736_v3 }
 0x20d   : > { %v1914_v39 = vadd.f32 %v1913_v5, %v1825_v60 }
 0x20e   : > { %v1649_v55 = vpop.f32.mrf.mxu3 }
 0x20f   : > { %v1955_v13 = vmax.f32 %v1909_v46, %v1914_v39  ;;  %v1650_v17 = vadd.f32 %v1649_v55, %v3535_v44 }
 0x210   : > { %v1916_v56 = vpop.f32.mrf.mxu2  ;;  %v1740_v10 = vpop.f32.mrf.mxu0 }
 0x211   : > { %1971 = vst [vmem:[#allocation2 + $0x48] sm:$0xff] %v1955_v13  ;;  %v1829_v22 = vpop.f32.mrf.mxu1  ;;  %v1739_v8 = vadd.f32 %v1738_v14, %v1650_v17 }
 0x213   : > { %v1828_v4 = vadd.f32 %v1827_v59, %v1739_v8 }
 0x215   : > { %v1917_v2 = vadd.f32 %v1916_v56, %v1828_v4 }
 0x216   : > { %v1651_v32 = vpop.f32.mrf.mxu3 }
 0x217   : > { %v1652_v19 = vadd.f32 %v1651_v32, %v3548_v12 }
 0x218   : > { %v1918_v34 = vpop.f32.mrf.mxu2  ;;  %v1743_v42 = vpop.f32.mrf.mxu0  ;;  %v1986_v63 = vld [vmem:[#allocation2 + $0x40] ss:$2 sm:$0xff]  ;;  %v2002_v31 = vld [vmem:[#allocation2 + $0x41] ss:$2 sm:$0xff] }
 0x219   : > { %v1832_v61 = vpop.f32.mrf.mxu1  ;;  %v1741_v35 = vadd.f32 %v1740_v10, %v1652_v19 }
 0x21b   : > { %v1830_v24 = vadd.f32 %v1829_v22, %v1741_v35 }
 0x21d   : > { %v1919_v15 = vadd.f32 %v1918_v34, %v1830_v24 }
 0x21e   : > { %v1654_v16 = vpop.f32.mrf.mxu3 }
 0x21f   : > { %v1655_v9 = vadd.f32 %v1654_v16, %v3553_v27 }
 0x220   : > { %v1921_v43 = vpop.f32.mrf.mxu2  ;;  %v1745_v18 = vpop.f32.mrf.mxu0 }
 0x221   : > { %v1744_v0 = vadd.f32 %v1743_v42, %v1655_v9  ;;  %v1834_v48 = vpop.f32.mrf.mxu1 }
 0x223   : > { %v1833_v50 = vadd.f32 %v1832_v61, %v1744_v0 }
 0x225   : > { %v1922_v37 = vadd.f32 %v1921_v43, %v1833_v50 }
 0x226   : > { %v1656_v47 = vpop.f32.mrf.mxu3 }
 0x227   : > { %v1956_v20 = vmax.f32 %v1917_v2, %v1922_v37  ;;  %v1657_v44 = vadd.f32 %v1656_v47, %v3566_v57  ;;  %v2013_v57 = vmax.f32 %v1986_v63, %v2002_v31 }
 0x228   : > { %v1923_v52 = vpop.f32.mrf.mxu2  ;;  %v1748_v62 = vpop.f32.mrf.mxu0 }
 0x229   : > { %1972 = vst [vmem:[#allocation2 + $0x50] sm:$0xff] %v1956_v20  ;;  %v1746_v27 = vadd.f32 %v1745_v18, %v1657_v44  ;;  %v1837_v28 = vpop.f32.mrf.mxu1  ;;  %v2025_v3 = vadd.f32 %v3621_v45, %v2013_v57 }
 0x22b   : > { %v1835_v23 = vadd.f32 %v1834_v48, %v1746_v27 }
 0x22d   : > { %v1924_v36 = vadd.f32 %v1923_v52, %v1835_v23 }
 0x22e   : > { %v1659_v12 = vpop.f32.mrf.mxu3 }
 0x22f   : > { %v1957_v26 = vmax.f32 %v1919_v15, %v1924_v36  ;;  %v1660_v14 = vadd.f32 %v1659_v12, %v3497_v30 }
 0x230   : > { %v1926_v6 = vpop.f32.mrf.mxu2  ;;  %v1750_v49 = vpop.f32.mrf.mxu0 }
 0x231   : > { %1973 = vst [vmem:[#allocation2 + $0x58] sm:$0xff] %v1957_v26  ;;  %v1839_v58 = vpop.f32.mrf.mxu1  ;;  %v1749_v46 = vadd.f32 %v1748_v62, %v1660_v14 }
 0x233   : > { %v1838_v10 = vadd.f32 %v1837_v28, %v1749_v46 }
 0x235   : > { %v1927_v30 = vadd.f32 %v1926_v6, %v1838_v10 }
 0x236   : > { %v1661_v40 = vpop.f32.mrf.mxu3 }
 0x237   : > { %v1662_v22 = vadd.f32 %v1661_v40, %v3510_v51 }
 0x238   : > { %v1928_v33 = vpop.f32.mrf.mxu2  ;;  %v1988_v11 = vld [vmem:[#allocation2 + $0x50] ss:$2 sm:$0xff]  ;;  %v2004_v54 = vld [vmem:[#allocation2 + $0x51] ss:$2 sm:$0xff]  ;;  %v1753_v38 = vpop.f32.mrf.mxu0 }
 0x239   : > { %v2014_v5 = vmax.f32 %v1988_v11, %v2004_v54  ;;  %v1842_v53 = vpop.f32.mrf.mxu1  ;;  %v1751_v17 = vadd.f32 %v1750_v49, %v1662_v22 }
 0x23b   : > { %v2026_v59 = vadd.f32 %v3621_v45, %v2014_v5  ;;  %v1840_v18 = vadd.f32 %v1839_v58, %v1751_v17 }
 0x23d   : > { %v2964_v60 = vpack.c.bf16 %v2026_v59, %v2025_v3  ;;  %v1929_v48 = vadd.f32 %v1928_v33, %v1840_v18 }
 0x23e   : > { %v1664_v39 = vpop.f32.mrf.mxu3 }
 0x23f   : > { %2972 = vst [vmem:[%s3630_s11 + $0x10] sm:$0xff] %v2964_v60   ;;  %v1665_v55 = vadd.f32 %v1664_v39, %v3515_v1 }
 0x240   : > { %v1931_v13 = vpop.f32.mrf.mxu2  ;;  %v1755_v56 = vpop.f32.mrf.mxu0 }
 0x241   : > { %v1754_v32 = vadd.f32 %v1753_v38, %v1665_v55  ;;  %v1844_v34 = vpop.f32.mrf.mxu1 }
 0x243   : > { %v1843_v42 = vadd.f32 %v1842_v53, %v1754_v32 }
 0x245   : > { %v1932_v61 = vadd.f32 %v1931_v13, %v1843_v42 }
 0x246   : > { %v1666_v8 = vpop.f32.mrf.mxu3 }
 0x247   : > { %v1958_v16 = vmax.f32 %v1927_v30, %v1932_v61  ;;  %v1667_v9 = vadd.f32 %v1666_v8, %v3528_v29 }
 0x248   : > { %v1933_v43 = vpop.f32.mrf.mxu2  ;;  %v1758_v1 = vpop.f32.mrf.mxu0 }
 0x249   : > { %1974 = vst [vmem:[#allocation2 + $0x60] sm:$0xff] %v1958_v16  ;;  %v1756_v4 = vadd.f32 %v1755_v56, %v1667_v9  ;;  %v1847_v0 = vpop.f32.mrf.mxu1 }
 0x24b   : > { %v1845_v19 = vadd.f32 %v1844_v34, %v1756_v4 }
 0x24d   : > { %v1934_v50 = vadd.f32 %v1933_v43, %v1845_v19 }
 0x24e   : > { %v1669_v51 = vpop.f32.mrf.mxu3 }
 0x24f   : > { %v1959_v2 = vmax.f32 %v1929_v48, %v1934_v50  ;;  %v1670_v52 = vadd.f32 %v1669_v51, %v3533_v41 }
 0x250   : > { %v1936_v35 = vpop.f32.mrf.mxu2  ;;  %v1760_v37 = vpop.f32.mrf.mxu0 }
 0x251   : > { %1975 = vst [vmem:[#allocation2 + $0x68] sm:$0xff] %v1959_v2  ;;  %v1849_v47 = vpop.f32.mrf.mxu1  ;;  %v1759_v29 = vadd.f32 %v1758_v1, %v1670_v52 }
 0x253   : > { %v1848_v23 = vadd.f32 %v1847_v0, %v1759_v29 }
 0x255   : > { %v1937_v6 = vadd.f32 %v1936_v35, %v1848_v23 }
 0x256   : > { %v1671_v20 = vpop.f32.mrf.mxu3 }
 0x257   : > { %v1672_v15 = vadd.f32 %v1671_v20, %v3546_v7 }
 0x258   : > { %v1938_v44 = vpop.f32.mrf.mxu2  ;;  %v1763_v62 = vpop.f32.mrf.mxu0  ;;  %v1990_v14 = vld [vmem:[#allocation2 + $0x60] ss:$2 sm:$0xff]  ;;  %v2006_v53 = vld [vmem:[#allocation2 + $0x61] ss:$2 sm:$0xff] }
 0x259   : > { %v1852_v28 = vpop.f32.mrf.mxu1  ;;  %v1761_v49 = vadd.f32 %v1760_v37, %v1672_v15  ;;  %v2015_v3 = vmax.f32 %v1990_v14, %v2006_v53 }
 0x25b   : > { %v1850_v57 = vadd.f32 %v1849_v47, %v1761_v49 }
 0x25d   : > { %v1939_v38 = vadd.f32 %v1938_v44, %v1850_v57 }
 0x25e   : > { %v1674_v24 = vpop.f32.mrf.mxu3 }
 0x25f   : > { %v1675_v27 = vadd.f32 %v1674_v24, %v3551_v25 }
 0x260   : > { %v1941_v12 = vpop.f32.mrf.mxu2  ;;  %v1765_v41 = vpop.f32.mrf.mxu0 }
 0x261   : > { %v1764_v36 = vadd.f32 %v1763_v62, %v1675_v27  ;;  %v1854_v11 = vpop.f32.mrf.mxu1 }
 0x263   : > { %v1853_v26 = vadd.f32 %v1852_v28, %v1764_v36 }
 0x265   : > { %v1942_v58 = vadd.f32 %v1941_v12, %v1853_v26 }
 0x266   : > { %v1676_v63 = vpop.f32.mrf.mxu3 }
 0x267   : > { %v1960_v31 = vmax.f32 %v1937_v6, %v1942_v58  ;;  %v1677_v40 = vadd.f32 %v1676_v63, %v3564_v21  ;;  %v2027_v21 = vadd.f32 %v3621_v45, %v2015_v3 }
 0x268   : > { %v1943_v54 = vpop.f32.mrf.mxu2 }
 0x269   : > { %1976 = vst [vmem:[#allocation2 + $0x70] sm:$0xff] %v1960_v31  ;;  %v1766_v33 = vadd.f32 %v1765_v41, %v1677_v40 }
 0x26b   : > { %v1855_v25 = vadd.f32 %v1854_v11, %v1766_v33 }
 0x26d   : > { %v1944_v7 = vadd.f32 %v1943_v54, %v1855_v25 }
 0x26f   : > { %v1961_v5 = vmax.f32 %v1939_v38, %v1944_v7 }
 0x271   : > { %1977 = vst [vmem:[#allocation2 + $0x78] sm:$0xff] %v1961_v5 }
 0x278   : > { %v1992_v59 = vld [vmem:[#allocation2 + $0x70] ss:$2 sm:$0xff]  ;;  %v2008_v60 = vld [vmem:[#allocation2 + $0x71] ss:$2 sm:$0xff] }
 0x279   : > { %v2016_v46 = vmax.f32 %v1992_v59, %v2008_v60 }
 0x27b   : > { %v2028_v39 = vadd.f32 %v3621_v45, %v2016_v46 }
 0x27d   : > { %v2969_v55 = vpack.c.bf16 %v2028_v39, %v2027_v21 }
 0x27f   : > { %2973 = vst [vmem:[%s3630_s11 + $0x18] sm:$0xff] %v2969_v55  }
 0x280 PF: > { %s13_s12 = sadd.s32 1, %s3014_s12  }
 0x281   : > { %p10_p4 = scmp.ge.s32.totalorder %s13_s12, 4  }
 0x283   :  { %12 = sbr.rel (!%p10_p4) target bundleno = 1 (0x1), region = 77 }

// kernel: nnmodel_forward.6
= control target key start
LH: loop header
LB: loop body
LE: loop exit
PB: predicated region body
PF: predicated region fallthrough
CT: control target
= control target key end

     0   :  { %s1578_s12 = smov 0   ;;  %s1886_s0 = inlined_call_operand.vmem [shape: bf16[2,64,896], index: 0, kind: input, shape index: {}]   ;;  %s1887_s1 = inlined_call_operand.vmem [shape: bf16[896,128], index: 1, kind: input, shape index: {}]   ;;  %s1888_s2 = inlined_call_operand.vmem [shape: f32[1,128], index: 2, kind: input, shape index: {}]   ;;  %s1889_s3 = inlined_call_operand.vmem [shape: bf16[2,16,128], index: 3, kind: output, shape index: {}]  }
   0x1 LB: > { %s1080_s13 = sadd.s32 4294967295, %s1556_s12   ;;  %p1084_p0 = scmp.ge.s32.totalorder %s1556_s12, 1  ;;  %s1556_s12 = sphi %s1578_s12, %s13_s12  }
   0x2   : > { %p137_p1 = scmp.lt.s32.totalorder %s1556_s12, 3 }
   0x4   : > { %p138_p2 = pnand %p1084_p0, %p137_p1 }
   0x5   : > { %p161_p3 = scmp.lt.s32.totalorder (!%p138_p2), %s1080_s13, 1 }
   0x6   : > { %141 = sbr.rel (%p138_p2) target bundleno = 300 (0x12c), region = 32 }
   0xb   : > { %v1462_v0 = vld [vmem:[%s1887_s1 + $0x38] sm:$0xff]  ;;  %v1461_v3 = vld [vmem:[%s1887_s1 + $0x30] sm:$0xff]  ;;  %v1460_v6 = vld [vmem:[%s1887_s1 + $0x28] sm:$0xff]  ;;  %s1891_s13 = smov (!%p161_p3, %s1080_s13), 1 }
   0xc   : > { %v1470_v1 = vld [vmem:[%s1887_s1 + $0x78] sm:$0xff]  ;;  %795 = vmatpush.bf16.msra.mxu0 %v1462_v0  ;;  %1516 = vmatpush.bf16.msra.mxu3 %v1462_v0  ;;  %v1469_v4 = vld [vmem:[%s1887_s1 + $0x70] sm:$0xff]  ;;  %v1468_v7 = vld [vmem:[%s1887_s1 + $0x68] sm:$0xff]  ;;  %s1540_s21 = smul.u32 224, %s1891_s13  ;;  %s1426_s7 = sshll.u32 %s1891_s13, 3 }
   0xd   : > { %v1478_v2 = vld [vmem:[%s1887_s1 + $0xb8] sm:$0xff]  ;;  %824 = vmatpush.bf16.msra.mxu1 %v1470_v1  ;;  %v1477_v5 = vld [vmem:[%s1887_s1 + $0xb0] sm:$0xff]  ;;  %v1476_v8 = vld [vmem:[%s1887_s1 + $0xa8] sm:$0xff]  ;;  %s170_s10 = scalar_lea.vmem %s1889_s3, %s1426_s7 }
   0xe   : > { %853 = vmatpush.bf16.msra.mxu2 %v1478_v2  ;;  %v1459_v9 = vld [vmem:[%s1887_s1 + $0x20] sm:$0xff]  ;;  %v1458_v12 = vld [vmem:[%s1887_s1 + $0x18] sm:$0xff]  ;;  %v1457_v15 = vld [vmem:[%s1887_s1 + $0x10] sm:$0xff]  ;;  %s1653_s30 = scalar_lea.vmem %s1886_s0, %s1540_s21 }
   0xf   : > { %v1467_v10 = vld [vmem:[%s1887_s1 + $0x60] sm:$0xff]  ;;  %v1466_v13 = vld [vmem:[%s1887_s1 + $0x58] sm:$0xff]  ;;  %v1465_v16 = vld [vmem:[%s1887_s1 + $0x50] sm:$0xff] }
  0x10   : > { %796 = vmatpush.bf16.msra.mxu0 %v1461_v3  ;;  %1517 = vmatpush.bf16.msra.mxu3 %v1461_v3  ;;  %v1475_v11 = vld [vmem:[%s1887_s1 + $0xa0] sm:$0xff]  ;;  %v1474_v14 = vld [vmem:[%s1887_s1 + $0x98] sm:$0xff]  ;;  %v1473_v17 = vld [vmem:[%s1887_s1 + $0x90] sm:$0xff] }
  0x11   : > { %825 = vmatpush.bf16.msra.mxu1 %v1469_v4  ;;  %v1456_v18 = vld [vmem:[%s1887_s1 + $0x8] sm:$0xff]  ;;  %v1455_v21 = vld [vmem:[%s1887_s1] sm:$0xff]  ;;  %v1430_v25 = vld [vmem:[%s1653_s30 + $0x18] sm:$0xf0] }
  0x12   : > { %854 = vmatpush.bf16.msra.mxu2 %v1477_v5  ;;  %v1464_v19 = vld [vmem:[%s1887_s1 + $0x48] sm:$0xff]  ;;  %v1463_v22 = vld [vmem:[%s1887_s1 + $0x40] sm:$0xff]  ;;  %v1146_v26 = vld [vmem:[%s1653_s30 + $0x70] sm:$0xf] }
  0x13   : > { %v1472_v20 = vld [vmem:[%s1887_s1 + $0x88] sm:$0xff]  ;;  %v1471_v23 = vld [vmem:[%s1887_s1 + $0x80] sm:$0xff]  ;;  %v1486_v32 = vld [vmem:[%s1887_s1 + $0xf8] sm:$0xff] }
  0x14   : > { %797 = vmatpush.bf16.msra.mxu0 %v1460_v6  ;;  %1518 = vmatpush.bf16.msra.mxu3 %v1460_v6  ;;  %v1090_v24 = vld [vmem:[%s1653_s30] sm:$0xf]  ;;  %v1444_v27 = vld [vmem:[%s1653_s30 + $0x88] sm:$0xf0]  ;;  %v1427_v28 = vld [vmem:[%s1653_s30 + $0x4] sm:$0xf] }
  0x15   : > { %826 = vmatpush.bf16.msra.mxu1 %v1468_v7  ;;  %v1092_v29 = vld [vmem:[%s1653_s30 + $0x1c] sm:$0xf0]  ;;  %v1098_v30 = vld [vmem:[%s1653_s30 + $0x8] sm:$0xf]  ;;  %v1431_v31 = vld [vmem:[%s1653_s30 + $0x20] sm:$0xf0]  ;;  %v1091_v34 = vor.u32 %v1430_v25, %v1090_v24  ;;  %v1147_v35 = vor.u32 %v1444_v27, %v1146_v26 }
  0x16   : > { %855 = vmatpush.bf16.msra.mxu2 %v1476_v8  ;;  %v1684_v33 = vld [vmem:[%s1887_s1 + $0x1b8] sm:$0xff]  ;;  %v1095_v36 = vor.u32 %v1427_v28, %v1092_v29  ;;  %v1099_v37 = vor.u32 %v1431_v31, %v1098_v30  ;;  %v1485_v40 = vld [vmem:[%s1887_s1 + $0xf0] sm:$0xff]  ;;  %v1484_v44 = vld [vmem:[%s1887_s1 + $0xe8] sm:$0xff] }
  0x17   : > { %v1494_v38 = vld [vmem:[%s1887_s1 + $0x138] sm:$0xff]  ;;  %v1701_v41 = vld [vmem:[%s1887_s1 + $0x1b0] sm:$0xff]  ;;  %v1719_v45 = vld [vmem:[%s1887_s1 + $0x1a8] sm:$0xff] }
  0x18   : > { %798 = vmatpush.bf16.msra.mxu0 %v1459_v9  ;;  %1519 = vmatpush.bf16.msra.mxu3 %v1459_v9  ;;  %v1692_v39 = vld [vmem:[%s1887_s1 + $0x178] sm:$0xff]  ;;  %v1493_v42 = vld [vmem:[%s1887_s1 + $0x130] sm:$0xff]  ;;  %v1492_v46 = vld [vmem:[%s1887_s1 + $0x128] sm:$0xff] }
  0x19   : > { %827 = vmatpush.bf16.msra.mxu1 %v1467_v10  ;;  %v1710_v43 = vld [vmem:[%s1887_s1 + $0x170] sm:$0xff]  ;;  %v1728_v47 = vld [vmem:[%s1887_s1 + $0x168] sm:$0xff]  ;;  %v1483_v48 = vld [vmem:[%s1887_s1 + $0xe0] sm:$0xff] }
  0x1a   : > { %856 = vmatpush.bf16.msra.mxu2 %v1475_v11  ;;  %v1737_v49 = vld [vmem:[%s1887_s1 + $0x1a0] sm:$0xff]  ;;  %v1118_v51 = vld [vmem:[%s1653_s30 + $0x38] sm:$0xf]  ;;  %v1437_v52 = vld [vmem:[%s1653_s30 + $0x50] sm:$0xf0] }
  0x1b   : > { %v1491_v50 = vld [vmem:[%s1887_s1 + $0x120] sm:$0xff]  ;;  %v1174_v53 = vld [vmem:[%s1653_s30 + $0xa8] sm:$0xf]  ;;  %v1434_v55 = vld [vmem:[%s1653_s30 + $0x3c] sm:$0xf]  ;;  %v1119_v62 = vor.u32 %v1437_v52, %v1118_v51 }
  0x1c   : > { %799 = vmatpush.bf16.msra.mxu0 %v1458_v12  ;;  %1520 = vmatpush.bf16.msra.mxu3 %v1458_v12  ;;  %v1451_v54 = vld [vmem:[%s1653_s30 + $0xc0] sm:$0xf0]  ;;  %v1120_v56 = vld [vmem:[%s1653_s30 + $0x54] sm:$0xf0]  ;;  %v1126_v57 = vld [vmem:[%s1653_s30 + $0x40] sm:$0xf] }
  0x1d   : > { %828 = vmatpush.bf16.msra.mxu1 %v1466_v13  ;;  %v1438_v58 = vld [vmem:[%s1653_s30 + $0x58] sm:$0xf0]  ;;  %v1754_v59 = vld [vmem:[%s1887_s1 + $0x160] sm:$0xff]  ;;  %v1175_v63 = vor.u32 %v1451_v54, %v1174_v53  ;;  %v1123_v0 = vor.u32 %v1434_v55, %v1120_v56  ;;  %v1481_v4 = vld [vmem:[%s1887_s1 + $0xd0] sm:$0xff] }
  0x1e   : > { %857 = vmatpush.bf16.msra.mxu2 %v1474_v14  ;;  %v1482_v60 = vld [vmem:[%s1887_s1 + $0xd8] sm:$0xff]  ;;  %v1127_v1 = vor.u32 %v1438_v58, %v1126_v57  ;;  %v1781_v5 = vld [vmem:[%s1887_s1 + $0x190] sm:$0xff]  ;;  %v1480_v8 = vld [vmem:[%s1887_s1 + $0xc8] sm:$0xff] }
  0x1f   : > { %v1763_v61 = vld [vmem:[%s1887_s1 + $0x198] sm:$0xff]  ;;  %v1489_v6 = vld [vmem:[%s1887_s1 + $0x110] sm:$0xff]  ;;  %v1504_v9 = vld [vmem:[%s1887_s1 + $0x188] sm:$0xff] }
  0x20   : > { %800 = vmatpush.bf16.msra.mxu0 %v1457_v15  ;;  %1521 = vmatpush.bf16.msra.mxu3 %v1457_v15  ;;  %v1490_v2 = vld [vmem:[%s1887_s1 + $0x118] sm:$0xff]  ;;  %v1790_v7 = vld [vmem:[%s1887_s1 + $0x150] sm:$0xff]  ;;  %v1488_v10 = vld [vmem:[%s1887_s1 + $0x108] sm:$0xff] }
  0x21   : > { %829 = vmatpush.bf16.msra.mxu1 %v1465_v16  ;;  %v1772_v3 = vld [vmem:[%s1887_s1 + $0x158] sm:$0xff]  ;;  %v1496_v11 = vld [vmem:[%s1887_s1 + $0x148] sm:$0xff]  ;;  %v1479_v12 = vld [vmem:[%s1887_s1 + $0xc0] sm:$0xff] }
  0x22   : > { %858 = vmatpush.bf16.msra.mxu2 %v1473_v17  ;;  %v1503_v13 = vld [vmem:[%s1887_s1 + $0x180] sm:$0xff]  ;;  %v1441_v15 = vld [vmem:[%s1653_s30 + $0x74] sm:$0xf]  ;;  %v1148_v16 = vld [vmem:[%s1653_s30 + $0x8c] sm:$0xf0] }
  0x23   : > { %v1487_v14 = vld [vmem:[%s1887_s1 + $0x100] sm:$0xff]  ;;  %v1428_v17 = vld [vmem:[%s1653_s30 + $0xc] sm:$0xf]  ;;  %v1151_v25 = vor.u32 %v1441_v15, %v1148_v16  ;;  %v1176_v31 = vld [vmem:[%s1653_s30 + $0xc4] sm:$0xf0] }
  0x24   : > { %801 = vmatpush.bf16.msra.mxu0 %v1456_v18  ;;  %1522 = vmatpush.bf16.msra.mxu3 %v1456_v18  ;;  %v1100_v18 = vld [vmem:[%s1653_s30 + $0x24] sm:$0xf0]  ;;  %v1448_v28 = vld [vmem:[%s1653_s30 + $0xac] sm:$0xf]  ;;  %v1435_v29 = vld [vmem:[%s1653_s30 + $0x44] sm:$0xf] }
  0x25   : > { %830 = vmatpush.bf16.msra.mxu1 %v1464_v19  ;;  %v1154_v19 = vld [vmem:[%s1653_s30 + $0x78] sm:$0xf]  ;;  %v1103_v24 = vor.u32 %v1428_v17, %v1100_v18  ;;  %v1128_v30 = vld [vmem:[%s1653_s30 + $0x5c] sm:$0xf0]  ;;  %v1449_v52 = vld [vmem:[%s1653_s30 + $0xb4] sm:$0xf] }
  0x26   : > { %859 = vmatpush.bf16.msra.mxu2 %v1472_v20  ;;  %v1445_v20 = vld [vmem:[%s1653_s30 + $0x90] sm:$0xf0]  ;;  %v1184_v53 = vld [vmem:[%s1653_s30 + $0xcc] sm:$0xf0]  ;;  %v1443_v54 = vld [vmem:[%s1653_s30 + $0x84] sm:$0xf] }
  0x27   : > { %v1155_v26 = vor.u32 %v1445_v20, %v1154_v19  ;;  %v1164_v55 = vld [vmem:[%s1653_s30 + $0x9c] sm:$0xf0]  ;;  %v1142_v56 = vld [vmem:[%s1653_s30 + $0x50] sm:$0xf]  ;;  %v1440_v57 = vld [vmem:[%s1653_s30 + $0x68] sm:$0xf0] }
  0x28   : > { %802 = vmatpush.bf16.msra.mxu0 %v1455_v21  ;;  %1523 = vmatpush.bf16.msra.mxu3 %v1455_v21  ;;  %v1495_v21 = vld [vmem:[%s1887_s1 + $0x140] sm:$0xff]  ;;  %v1190_v58 = vld [vmem:[%s1653_s30 + $0xb8] sm:$0xf] }
  0x29   : > { %831 = vmatpush.bf16.msra.mxu1 %v1463_v22  ;;  %v1106_v22 = vld [vmem:[%s1653_s30 + $0x10] sm:$0xf] }
  0x2a   : > { %860 = vmatpush.bf16.msra.mxu2 %v1471_v23  ;;  %v1432_v23 = vld [vmem:[%s1653_s30 + $0x28] sm:$0xf0] }
  0x2b   : > { %803 = vmatmul.bf16.vlgmr.msra.gmra.mxu0 %v1091_v34  ;;  %813 = vmatmul.bf16.vlgmr.msra.gmra.mxu3 %v1147_v35  ;;  %v1107_v27 = vor.u32 %v1432_v23, %v1106_v22  ;;  %v1134_v34 = vld [vmem:[%s1653_s30 + $0x48] sm:$0xf]  ;;  %v1439_v35 = vld [vmem:[%s1653_s30 + $0x60] sm:$0xf0] }
  0x2c   : > { %882 = vmatpush.bf16.msrb.mxu3 %v1486_v32  ;;  %832 = vmatmul.bf16.vlgmr.msra.gmra.mxu1 %v1095_v36  ;;  %v1182_v32 = vld [vmem:[%s1653_s30 + $0xb0] sm:$0xf]  ;;  %v1131_v36 = vor.u32 %v1435_v29, %v1128_v30 }
  0x2d   : > { %861 = vmatmul.bf16.vlgmr.msra.gmra.mxu2 %v1099_v37  ;;  %911 = vmatpush.bf16.msrb.mxu0 %v1494_v38  ;;  %v1179_v37 = vor.u32 %v1448_v28, %v1176_v31 }
  0x2e   : > { %969 = vmatpush.bf16.msrb.mxu2 %v1684_v33  ;;  %1524 = vmatpush.bf16.msrb.mxu1 %v1692_v39 }
  0x30   : > { %883 = vmatpush.bf16.msrb.mxu3 %v1485_v40  ;;  %v1442_v40 = vld [vmem:[%s1653_s30 + $0x7c] sm:$0xf] }
  0x31   : > { %912 = vmatpush.bf16.msrb.mxu0 %v1493_v42  ;;  %v1436_v42 = vld [vmem:[%s1653_s30 + $0x4c] sm:$0xf] }
  0x32   : > { %970 = vmatpush.bf16.msrb.mxu2 %v1701_v41  ;;  %1525 = vmatpush.bf16.msrb.mxu1 %v1710_v43 }
  0x34   : > { %884 = vmatpush.bf16.msrb.mxu3 %v1484_v44  ;;  %v1114_v44 = vld [vmem:[%s1653_s30 + $0x18] sm:$0xf] }
  0x35   : > { %913 = vmatpush.bf16.msrb.mxu0 %v1492_v46  ;;  %v1162_v46 = vld [vmem:[%s1653_s30 + $0x80] sm:$0xf] }
  0x36   : > { %971 = vmatpush.bf16.msrb.mxu2 %v1719_v45  ;;  %1526 = vmatpush.bf16.msrb.mxu1 %v1728_v47 }
  0x38   : > { %885 = vmatpush.bf16.msrb.mxu3 %v1483_v48 }
  0x39   : > { %914 = vmatpush.bf16.msrb.mxu0 %v1491_v50 }
  0x3a   : > { %972 = vmatpush.bf16.msrb.mxu2 %v1737_v49  ;;  %1527 = vmatpush.bf16.msrb.mxu1 %v1754_v59 }
  0x3b   : > { %808 = vmatmul.bf16.gmra.mxu0 %v1119_v62  ;;  %818 = vmatmul.bf16.gmra.mxu3 %v1175_v63  ;;  %v1143_v62 = vor.u32 %v1440_v57, %v1142_v56 }
  0x3c   : > { %886 = vmatpush.bf16.msrb.mxu3 %v1482_v60  ;;  %837 = vmatmul.bf16.gmra.mxu1 %v1123_v0  ;;  %v1187_v60 = vor.u32 %v1449_v52, %v1184_v53  ;;  %v1450_v0 = vld [vmem:[%s1653_s30 + $0xbc] sm:$0xf] }
  0x3d   : > { %866 = vmatmul.bf16.gmra.mxu2 %v1127_v1  ;;  %915 = vmatpush.bf16.msrb.mxu0 %v1490_v2  ;;  %v1198_v1 = vld [vmem:[%s1653_s30 + $0xc0] sm:$0xf]  ;;  %v1454_v2 = vld [vmem:[%s1653_s30 + $0xd8] sm:$0xf0] }
  0x3e   : > { %973 = vmatpush.bf16.msrb.mxu2 %v1763_v61  ;;  %1528 = vmatpush.bf16.msrb.mxu1 %v1772_v3 }
  0x40   : > { %887 = vmatpush.bf16.msrb.mxu3 %v1481_v4  ;;  %v1170_v4 = vld [vmem:[%s1653_s30 + $0x88] sm:$0xf] }
  0x41   : > { %916 = vmatpush.bf16.msrb.mxu0 %v1489_v6  ;;  %v1429_v6 = vld [vmem:[%s1653_s30 + $0x14] sm:$0xf] }
  0x42   : > { %974 = vmatpush.bf16.msrb.mxu2 %v1781_v5  ;;  %1529 = vmatpush.bf16.msrb.mxu1 %v1790_v7 }
  0x44   : > { %888 = vmatpush.bf16.msrb.mxu3 %v1480_v8  ;;  %v1199_v8 = vor.u32 %v1454_v2, %v1198_v1 }
  0x45   : > { %917 = vmatpush.bf16.msrb.mxu0 %v1488_v10 }
  0x46   : > { %975 = vmatpush.bf16.msrb.mxu2 %v1504_v9  ;;  %1530 = vmatpush.bf16.msrb.mxu1 %v1496_v11 }
  0x48   : > { %889 = vmatpush.bf16.msrb.mxu3 %v1479_v12 }
  0x49   : > { %918 = vmatpush.bf16.msrb.mxu0 %v1487_v14 }
  0x4a   : > { %976 = vmatpush.bf16.msrb.mxu2 %v1503_v13  ;;  %1531 = vmatpush.bf16.msrb.mxu1 %v1495_v21 }
  0x4b   : > { %890 = vmatmul.bf16.vlgmr.msrb.gmra.mxu3 %v1103_v24 }
  0x4c   : > { %1532 = vmatpush.bf16.msra.mxu3 %v1684_v33  ;;  %842 = vmatmul.bf16.gmra.mxu1 %v1151_v25  ;;  %v1452_v33 = vld [vmem:[%s1653_s30 + $0xc8] sm:$0xf0] }
  0x4d   : > { %940 = vmatpush.bf16.msra.mxu0 %v1692_v39  ;;  %871 = vmatmul.bf16.gmra.mxu2 %v1155_v26  ;;  %v1183_v38 = vor.u32 %v1452_v33, %v1182_v32  ;;  %v1135_v39 = vor.u32 %v1439_v35, %v1134_v34 }
  0x4e   : > { %919 = vmatmul.bf16.vlgmr.msrb.gmra.mxu0 %v1107_v27 }
  0x50   : > { %1533 = vmatpush.bf16.msra.mxu3 %v1701_v41  ;;  %v1156_v41 = vld [vmem:[%s1653_s30 + $0x94] sm:$0xf0] }
  0x51   : > { %941 = vmatpush.bf16.msra.mxu0 %v1710_v43  ;;  %v1136_v43 = vld [vmem:[%s1653_s30 + $0x64] sm:$0xf0]  ;;  %v1159_v48 = vor.u32 %v1442_v40, %v1156_v41 }
  0x54   : > { %1534 = vmatpush.bf16.msra.mxu3 %v1719_v45  ;;  %v1433_v45 = vld [vmem:[%s1653_s30 + $0x30] sm:$0xf0] }
  0x55   : > { %942 = vmatpush.bf16.msra.mxu0 %v1728_v47  ;;  %v1446_v47 = vld [vmem:[%s1653_s30 + $0x98] sm:$0xf0]  ;;  %v1115_v50 = vor.u32 %v1433_v45, %v1114_v44 }
  0x56   : > { %v1163_v51 = vor.u32 %v1446_v47, %v1162_v46 }
  0x58   : > { %1535 = vmatpush.bf16.msra.mxu3 %v1737_v49  ;;  %v1139_v49 = vor.u32 %v1436_v42, %v1136_v43 }
  0x59   : > { %943 = vmatpush.bf16.msra.mxu0 %v1754_v59  ;;  %v1453_v59 = vld [vmem:[%s1653_s30 + $0xd0] sm:$0xf0] }
  0x5a   : > { %v1191_v63 = vor.u32 %v1453_v59, %v1190_v58 }
  0x5b   : > { %895 = vmatmul.bf16.gmra.mxu3 %v1131_v36 }
  0x5c   : > { %1536 = vmatpush.bf16.msra.mxu3 %v1763_v61  ;;  %847 = vmatmul.bf16.gmra.mxu1 %v1179_v37  ;;  %v1167_v61 = vor.u32 %v1443_v54, %v1164_v55 }
  0x5d   : > { %944 = vmatpush.bf16.msra.mxu0 %v1772_v3  ;;  %876 = vmatmul.bf16.gmra.mxu2 %v1183_v38  ;;  %v1192_v3 = vld [vmem:[%s1653_s30 + $0xd4] sm:$0xf0] }
  0x5e   : > { %924 = vmatmul.bf16.gmra.mxu0 %v1135_v39 }
  0x60   : > { %1537 = vmatpush.bf16.msra.mxu3 %v1781_v5  ;;  %v1447_v5 = vld [vmem:[%s1653_s30 + $0xa0] sm:$0xf0] }
  0x61   : > { %945 = vmatpush.bf16.msra.mxu0 %v1790_v7  ;;  %v1108_v7 = vld [vmem:[%s1653_s30 + $0x2c] sm:$0xf0]  ;;  %v1171_v10 = vor.u32 %v1447_v5, %v1170_v4 }
  0x64   : > { %1538 = vmatpush.bf16.msra.mxu3 %v1504_v9  ;;  %v1195_v9 = vor.u32 %v1450_v0, %v1192_v3 }
  0x65   : > { %946 = vmatpush.bf16.msra.mxu0 %v1496_v11  ;;  %v1111_v11 = vor.u32 %v1429_v6, %v1108_v7 }
  0x68   : > { %1539 = vmatpush.bf16.msra.mxu3 %v1503_v13 }
  0x69   : > { %947 = vmatpush.bf16.msra.mxu0 %v1495_v21 }
  0x6b   : > { %900 = vmatmul.bf16.gmra.mxu3 %v1159_v48 }
  0x6c   : > { %953 = vmatmul.bf16.vlgmr.msrb.gmra.mxu1 %v1139_v49 }
  0x6d   : > { %977 = vmatmul.bf16.vlgmr.msrb.gmra.mxu2 %v1115_v50 }
  0x6e   : > { %929 = vmatmul.bf16.gmra.mxu0 %v1163_v51 }
  0x7b   : > { %905 = vmatmul.bf16.gmra.mxu3 %v1187_v60 }
  0x7c   : > { %958 = vmatmul.bf16.gmra.mxu1 %v1167_v61 }
  0x7d   : > { %982 = vmatmul.bf16.gmra.mxu2 %v1143_v62 }
  0x7e   : > { %934 = vmatmul.bf16.gmra.mxu0 %v1191_v63 }
  0x8b   : > { %992 = vmatmul.bf16.vlgmr.msra.gmra.mxu3 %v1199_v8 }
  0x8c   : > { %963 = vmatmul.bf16.gmra.mxu1 %v1195_v9 }
  0x8d   : > { %987 = vmatmul.bf16.gmra.mxu2 %v1171_v10 }
  0x8e   : > { %948 = vmatmul.bf16.vlgmr.msra.gmra.mxu0 %v1111_v11 }
  0xa8   : > { %v804_v12 = vpop.f32.mrf.mxu0 }
  0xa9   : > { %v833_v13 = vpop.f32.mrf.mxu1 }
  0xaa   : > { %v834_v14 = vadd.f32 %v833_v13, %v804_v12 }
  0xae   : > { %v814_v15 = vpop.f32.mrf.mxu3 }
  0xb0   : > { %v862_v16 = vpop.f32.mrf.mxu2  ;;  %v806_v18 = vpop.f32.mrf.mxu0 }
  0xb1   : > { %v863_v17 = vadd.f32 %v862_v16, %v834_v14  ;;  %v835_v19 = vpop.f32.mrf.mxu1 }
  0xb2   : > { %v836_v20 = vadd.f32 %v835_v19, %v806_v18 }
  0xb6   : > { %v1870_v21 = vpop.f32.mrf.mxu3 }
  0xb8   : > { %v864_v22 = vpop.f32.mrf.mxu2  ;;  %v809_v24 = vpop.f32.mrf.mxu0 }
  0xb9   : > { %v1872_v23 = vadd.f32 %v864_v22, %v836_v20  ;;  %v838_v25 = vpop.f32.mrf.mxu1 }
  0xba   : > { %v839_v26 = vadd.f32 %v838_v25, %v809_v24 }
  0xbe   : > { %v819_v27 = vpop.f32.mrf.mxu3 }
  0xc0   : > { %v867_v28 = vpop.f32.mrf.mxu2  ;;  %v811_v30 = vpop.f32.mrf.mxu0 }
  0xc1   : > { %v868_v29 = vadd.f32 %v867_v28, %v839_v26  ;;  %v840_v31 = vpop.f32.mrf.mxu1 }
  0xc2   : > { %v841_v0 = vadd.f32 %v840_v31, %v811_v30 }
  0xc6   : > { %v821_v32 = vpop.f32.mrf.mxu3 }
  0xc8   : > { %v869_v33 = vpop.f32.mrf.mxu2 }
  0xc9   : > { %v843_v34 = vpop.f32.mrf.mxu1  ;;  %v870_v1 = vadd.f32 %v869_v33, %v841_v0 }
  0xca   : > { %v844_v35 = vadd.f32 %v843_v34, %v814_v15 }
  0xcb   : > { %v920_v36 = vpop.f32.mrf.mxu0 }
  0xce   : > { %v891_v37 = vpop.f32.mrf.mxu3 }
  0xcf   : > { %v892_v39 = vadd.f32 %v891_v37, %v863_v17 }
  0xd0   : > { %v872_v38 = vpop.f32.mrf.mxu2 }
  0xd1   : > { %v873_v40 = vadd.f32 %v872_v38, %v844_v35  ;;  %v845_v41 = vpop.f32.mrf.mxu1  ;;  %v921_v42 = vadd.f32 %v920_v36, %v892_v39 }
  0xd2   : > { %v846_v22 = vadd.f32 %v845_v41, %v1870_v21 }
  0xd3   : > { %v922_v43 = vpop.f32.mrf.mxu0 }
  0xd6   : > { %v893_v44 = vpop.f32.mrf.mxu3 }
  0xd7   : > { %v894_v24 = vadd.f32 %v893_v44, %v1872_v23 }
  0xd8   : > { %v874_v45 = vpop.f32.mrf.mxu2 }
  0xd9   : > { %v848_v46 = vpop.f32.mrf.mxu1  ;;  %v875_v28 = vadd.f32 %v874_v45, %v846_v22  ;;  %v923_v37 = vadd.f32 %v922_v43, %v894_v24 }
  0xda   : > { %v849_v19 = vadd.f32 %v848_v46, %v819_v27 }
  0xdb   : > { %v925_v47 = vpop.f32.mrf.mxu0 }
  0xde   : > { %v896_v48 = vpop.f32.mrf.mxu3 }
  0xdf   : > { %v897_v4 = vadd.f32 %v896_v48, %v868_v29 }
  0xe0   : > { %v877_v49 = vpop.f32.mrf.mxu2 }
  0xe1   : > { %v850_v50 = vpop.f32.mrf.mxu1  ;;  %v926_v8 = vadd.f32 %v925_v47, %v897_v4  ;;  %v878_v25 = vadd.f32 %v877_v49, %v849_v19 }
  0xe2   : > { %v851_v20 = vadd.f32 %v850_v50, %v821_v32 }
  0xe3   : > { %v927_v51 = vpop.f32.mrf.mxu0 }
  0xe6   : > { %v898_v52 = vpop.f32.mrf.mxu3 }
  0xe7   : > { %v899_v5 = vadd.f32 %v898_v52, %v870_v1 }
  0xe8   : > { %v879_v53 = vpop.f32.mrf.mxu2 }
  0xe9   : > { %v954_v54 = vpop.f32.mrf.mxu1  ;;  %v928_v9 = vadd.f32 %v927_v51, %v899_v5  ;;  %v880_v26 = vadd.f32 %v879_v53, %v851_v20 }
  0xea   : > { %v955_v10 = vadd.f32 %v954_v54, %v926_v8 }
  0xeb   : > { %v930_v55 = vpop.f32.mrf.mxu0 }
  0xee   : > { %v901_v56 = vpop.f32.mrf.mxu3 }
  0xef   : > { %v902_v34 = vadd.f32 %v901_v56, %v873_v40 }
  0xf0   : > { %v978_v57 = vpop.f32.mrf.mxu2 }
  0xf1   : > { %v956_v58 = vpop.f32.mrf.mxu1  ;;  %v931_v21 = vadd.f32 %v930_v55, %v902_v34 }
  0xf2   : > { %v957_v11 = vadd.f32 %v956_v58, %v928_v9 }
  0xf3   : > { %v932_v59 = vpop.f32.mrf.mxu0 }
  0xf6   : > { %v903_v60 = vpop.f32.mrf.mxu3 }
  0xf7   : > { %v904_v35 = vadd.f32 %v903_v60, %v875_v28 }
  0xf8   : > { %v980_v61 = vpop.f32.mrf.mxu2 }
  0xf9   : > { %v959_v62 = vpop.f32.mrf.mxu1  ;;  %v933_v41 = vadd.f32 %v932_v59, %v904_v35  ;;  %v1549_v59 = vld [vmem:[%s1888_s2] ss:$0 sm:$0xff] }
  0xfa   : > { %v960_v45 = vadd.f32 %v959_v62, %v931_v21 }
  0xfb   : > { %v935_v63 = vpop.f32.mrf.mxu0 }
  0xfe   : > { %v906_v2 = vpop.f32.mrf.mxu3 }
  0xff   : > { %v907_v30 = vadd.f32 %v906_v2, %v878_v25 }
 0x100   : > { %v983_v3 = vpop.f32.mrf.mxu2 }
 0x101   : > { %v961_v6 = vpop.f32.mrf.mxu1  ;;  %v984_v14 = vadd.f32 %v983_v3, %v955_v10  ;;  %v936_v27 = vadd.f32 %v935_v63, %v907_v30 }
 0x102   : > { %v962_v49 = vadd.f32 %v961_v6, %v933_v41 }
 0x103   : > { %v937_v7 = vpop.f32.mrf.mxu0 }
 0x106   : > { %v908_v12 = vpop.f32.mrf.mxu3 }
 0x107   : > { %v909_v31 = vadd.f32 %v908_v12, %v880_v26 }
 0x108   : > { %v985_v13 = vpop.f32.mrf.mxu2 }
 0x109   : > { %v986_v15 = vadd.f32 %v985_v13, %v957_v11  ;;  %v964_v16 = vpop.f32.mrf.mxu1  ;;  %v938_v46 = vadd.f32 %v937_v7, %v909_v31 }
 0x10a   : > { %v965_v23 = vadd.f32 %v964_v16, %v936_v27 }
 0x10b   : > { %v999_v17 = vmax.f32 %v984_v14, %v986_v15  ;;  %v949_v18 = vpop.f32.mrf.mxu0 }
 0x10c   : > { %v950_v36 = vadd.f32 %v949_v18, %v921_v42 }
 0x10d   : > { %1003 = vst [vmem:[#allocation2 + $0x8] sm:$0xff] %v999_v17 }
 0x10e   : > { %v993_v29 = vpop.f32.mrf.mxu3  ;;  %v979_v47 = vadd.f32 %v978_v57, %v950_v36 }
 0x10f   : > { %v994_v51 = vadd.f32 %v993_v29, %v965_v23 }
 0x110   : > { %v988_v33 = vpop.f32.mrf.mxu2 }
 0x111   : > { %v966_v39 = vpop.f32.mrf.mxu1  ;;  %v989_v43 = vadd.f32 %v988_v33, %v960_v45 }
 0x112   : > { %v967_v48 = vadd.f32 %v966_v39, %v938_v46 }
 0x113   : > { %v951_v38 = vpop.f32.mrf.mxu0 }
 0x114   : > { %v952_v32 = vadd.f32 %v951_v38, %v923_v37 }
 0x116   : > { %v981_v44 = vadd.f32 %v980_v61, %v952_v32  ;;  %v995_v50 = vpop.f32.mrf.mxu3 }
 0x117   : > { %v996_v42 = vadd.f32 %v995_v50, %v967_v48 }
 0x118   : > { %v998_v52 = vmax.f32 %v979_v47, %v981_v44  ;;  %v990_v40 = vpop.f32.mrf.mxu2 }
 0x119   : > { %v991_v53 = vadd.f32 %v990_v40, %v962_v49  ;;  %v1001_v54 = vmax.f32 %v994_v51, %v996_v42 }
 0x11a   : > { %1002 = vst [vmem:[#allocation2] sm:$0xff] %v998_v52 }
 0x11b   : > { %v1000_v56 = vmax.f32 %v989_v43, %v991_v53  ;;  %1005 = vst [vmem:[#allocation2 + $0x18] sm:$0xff] %v1001_v54 }
 0x11d   : > { %1004 = vst [vmem:[#allocation2 + $0x10] sm:$0xff] %v1000_v56 }
 0x121   : > { %v1006_v55 = vld [vmem:[#allocation2] ss:$2 sm:$0xff]  ;;  %v1010_v57 = vld [vmem:[#allocation2 + $0x1] ss:$2 sm:$0xff] }
 0x122   : > { %v1013_v58 = vmax.f32 %v1006_v55, %v1010_v57 }
 0x124   : > { %v1008_v60 = vld [vmem:[#allocation2 + $0x10] ss:$2 sm:$0xff]  ;;  %v1012_v61 = vld [vmem:[#allocation2 + $0x11] ss:$2 sm:$0xff]  ;;  %v1019_v63 = vadd.f32 %v1549_v59, %v1013_v58 }
 0x125   : > { %v1014_v62 = vmax.f32 %v1008_v60, %v1012_v61 }
 0x127   : > { %v1020_v0 = vadd.f32 %v1549_v59, %v1014_v62 }
 0x129   : > { %v1514_v1 = vpack.c.bf16 %v1020_v0, %v1019_v63 }
 0x12b   : > { %1515 = vst [vmem:[%s170_s10] sm:$0xff] %v1514_v1  }
 0x12c PF: > { %s13_s12 = sadd.s32 1, %s1556_s12  }
 0x12d   : > { %p10_p4 = scmp.ge.s32.totalorder %s13_s12, 4  }
 0x12f   :  { %12 = sbr.rel (!%p10_p4) target bundleno = 1 (0x1), region = 65 }

// kernel: nnmodel_forward.7
= control target key start
LH: loop header
LB: loop body
LE: loop exit
PB: predicated region body
PF: predicated region fallthrough
CT: control target
= control target key end

     0   :  { %s2557_s0 = inlined_call_operand.vmem [shape: bf16[2,2048], index: 0, kind: input, shape index: {}]   ;;  %s2558_s1 = inlined_call_operand.vmem [shape: bf16[2048,128], index: 1, kind: input, shape index: {}]   ;;  %s2559_s2 = inlined_call_operand.vmem [shape: f32[1,128], index: 2, kind: input, shape index: {}]   ;;  %s2560_s3 = inlined_call_operand.vmem [shape: bf16[128,128], index: 3, kind: input, shape index: {}]   ;;  %s2561_s4 = inlined_call_operand.vmem [shape: f32[1,128], index: 4, kind: input, shape index: {}]   ;;  %s2562_s5 = inlined_call_operand.hbm [shape: f32[2,128], index: 5, kind: output, shape index: {}]  }
   0x1   :  { %v1945_v0 = vld [vmem:[%s2558_s1 + $0x38] sm:$0xff]  ;;  %v1944_v4 = vld [vmem:[%s2558_s1 + $0x30] sm:$0xff]  ;;  %v1943_v8 = vld [vmem:[%s2558_s1 + $0x28] sm:$0xff] }
   0x2   :  { %v1953_v1 = vld [vmem:[%s2558_s1 + $0x78] sm:$0xff]  ;;  %1087 = vmatpush.bf16.msra.mxu0 %v1945_v0  ;;  %v1952_v5 = vld [vmem:[%s2558_s1 + $0x70] sm:$0xff]  ;;  %v1951_v9 = vld [vmem:[%s2558_s1 + $0x68] sm:$0xff] }
   0x3   :  { %v1961_v2 = vld [vmem:[%s2558_s1 + $0xb8] sm:$0xff]  ;;  %1100 = vmatpush.bf16.msra.mxu1 %v1953_v1  ;;  %v1960_v6 = vld [vmem:[%s2558_s1 + $0xb0] sm:$0xff]  ;;  %v1959_v10 = vld [vmem:[%s2558_s1 + $0xa8] sm:$0xff] }
   0x4   :  { %v1969_v3 = vld [vmem:[%s2558_s1 + $0xf8] sm:$0xff]  ;;  %1113 = vmatpush.bf16.msra.mxu2 %v1961_v2  ;;  %v1968_v7 = vld [vmem:[%s2558_s1 + $0xf0] sm:$0xff]  ;;  %v1967_v11 = vld [vmem:[%s2558_s1 + $0xe8] sm:$0xff] }
   0x5   :  { %1126 = vmatpush.bf16.msra.mxu3 %v1969_v3  ;;  %v1942_v12 = vld [vmem:[%s2558_s1 + $0x20] sm:$0xff]  ;;  %v1941_v16 = vld [vmem:[%s2558_s1 + $0x18] sm:$0xff]  ;;  %v1940_v20 = vld [vmem:[%s2558_s1 + $0x10] sm:$0xff] }
   0x6   :  { %1088 = vmatpush.bf16.msra.mxu0 %v1944_v4  ;;  %v1950_v13 = vld [vmem:[%s2558_s1 + $0x60] sm:$0xff]  ;;  %v1949_v17 = vld [vmem:[%s2558_s1 + $0x58] sm:$0xff]  ;;  %v1948_v21 = vld [vmem:[%s2558_s1 + $0x50] sm:$0xff] }
   0x7   :  { %1101 = vmatpush.bf16.msra.mxu1 %v1952_v5  ;;  %v1958_v14 = vld [vmem:[%s2558_s1 + $0xa0] sm:$0xff]  ;;  %v1957_v18 = vld [vmem:[%s2558_s1 + $0x98] sm:$0xff]  ;;  %v1956_v23 = vld [vmem:[%s2558_s1 + $0x90] sm:$0xff] }
   0x8   :  { %1114 = vmatpush.bf16.msra.mxu2 %v1960_v6  ;;  %v1966_v15 = vld [vmem:[%s2558_s1 + $0xe0] sm:$0xff]  ;;  %v1965_v19 = vld [vmem:[%s2558_s1 + $0xd8] sm:$0xff]  ;;  %v1964_v24 = vld [vmem:[%s2558_s1 + $0xd0] sm:$0xff] }
   0x9   :  { %1127 = vmatpush.bf16.msra.mxu3 %v1968_v7  ;;  %v21_v22 = vld [vmem:[%s2557_s0] sm:$0xff] }
   0xa   :  { %1089 = vmatpush.bf16.msra.mxu0 %v1943_v8  ;;  %284 = vst [vmem:[#allocation1] ss:$9 sm:$0xff] %v21_v22 }
   0xb   :  { %1102 = vmatpush.bf16.msra.mxu1 %v1951_v9 }
   0xc   :  { %1115 = vmatpush.bf16.msra.mxu2 %v1959_v10 }
   0xd   :  { %1128 = vmatpush.bf16.msra.mxu3 %v1967_v11 }
   0xe   :  { %1090 = vmatpush.bf16.msra.mxu0 %v1942_v12 }
   0xf   :  { %1103 = vmatpush.bf16.msra.mxu1 %v1950_v13 }
  0x10   :  { %1116 = vmatpush.bf16.msra.mxu2 %v1958_v14 }
  0x11   :  { %1129 = vmatpush.bf16.msra.mxu3 %v1966_v15 }
  0x12   :  { %1091 = vmatpush.bf16.msra.mxu0 %v1941_v16 }
  0x13   :  { %1104 = vmatpush.bf16.msra.mxu1 %v1949_v17 }
  0x14   :  { %1117 = vmatpush.bf16.msra.mxu2 %v1957_v18 }
  0x15   :  { %1130 = vmatpush.bf16.msra.mxu3 %v1965_v19 }
  0x16   :  { %10 = vsyncpa [#allocation3], 0  ;;  %1092 = vmatpush.bf16.msra.mxu0 %v1940_v20  ;;  %v1939_v25 = vld [vmem:[%s2558_s1 + $0x8] sm:$0xff]  ;;  %v1938_v29 = vld [vmem:[%s2558_s1] sm:$0xff]  ;;  %s2103_s13 = smov [#allocation2]   ;;  %s1385_s17 = sshll.u32 %s2562_s5, 4  ;;  %s1386_s17 = int_to_ptr.hbm [resolvable:$true] %s1385_s17 }
  0x17   :  { %1105 = vmatpush.bf16.msra.mxu1 %v1948_v21  ;;  %v1947_v26 = vld [vmem:[%s2558_s1 + $0x48] sm:$0xff]  ;;  %v1946_v30 = vld [vmem:[%s2558_s1 + $0x40] sm:$0xff]  ;;  %v1977_v33 = vld [vmem:[%s2558_s1 + $0x138] sm:$0xff]  ;;  %s1383_s14 = sshll.u32 %s2103_s13, 4  ;;  %s1384_s14 = int_to_ptr.vmem [resolvable:$true] %s1383_s14 }
  0x18   :  { %1118 = vmatpush.bf16.msra.mxu2 %v1956_v23  ;;  %v1955_v27 = vld [vmem:[%s2558_s1 + $0x88] sm:$0xff]  ;;  %v1954_v31 = vld [vmem:[%s2558_s1 + $0x80] sm:$0xff]  ;;  %v1985_v34 = vld [vmem:[%s2558_s1 + $0x178] sm:$0xff] }
  0x19   :  { %1131 = vmatpush.bf16.msra.mxu3 %v1964_v24  ;;  %v1963_v28 = vld [vmem:[%s2558_s1 + $0xc8] sm:$0xff]  ;;  %v1962_v32 = vld [vmem:[%s2558_s1 + $0xc0] sm:$0xff]  ;;  %v1993_v35 = vld [vmem:[%s2558_s1 + $0x1b8] sm:$0xff] }
  0x1a   :  { %1093 = vmatpush.bf16.msra.mxu0 %v1939_v25  ;;  %v2001_v36 = vld [vmem:[%s2558_s1 + $0x1f8] sm:$0xff]  ;;  %v1976_v37 = vld [vmem:[%s2558_s1 + $0x130] sm:$0xff]  ;;  %v285_v39 = vld [vmem:[#allocation1] sm:$0xff] }
  0x1b   :  { %1106 = vmatpush.bf16.msra.mxu1 %v1947_v26  ;;  %v287_v38 = vld [vmem:[#allocation1 + $0x12] sm:$0xff]  ;;  %v288_v41 = vld [vmem:[#allocation1 + $0x1b] sm:$0xff]  ;;  %v286_v42 = vld [vmem:[#allocation1 + $0x9] sm:$0xff] }
  0x1c   :  { %1119 = vmatpush.bf16.msra.mxu2 %v1955_v27  ;;  %v1984_v40 = vld [vmem:[%s2558_s1 + $0x170] sm:$0xff]  ;;  %v1975_v45 = vld [vmem:[%s2558_s1 + $0x128] sm:$0xff]  ;;  %v1974_v49 = vld [vmem:[%s2558_s1 + $0x120] sm:$0xff] }
  0x1d   :  { %1132 = vmatpush.bf16.msra.mxu3 %v1963_v28  ;;  %v1992_v43 = vld [vmem:[%s2558_s1 + $0x1b0] sm:$0xff]  ;;  %v1983_v46 = vld [vmem:[%s2558_s1 + $0x168] sm:$0xff]  ;;  %v1982_v50 = vld [vmem:[%s2558_s1 + $0x160] sm:$0xff] }
  0x1e   :  { %1094 = vmatpush.bf16.msra.mxu0 %v1938_v29  ;;  %v2000_v44 = vld [vmem:[%s2558_s1 + $0x1f0] sm:$0xff]  ;;  %v1991_v47 = vld [vmem:[%s2558_s1 + $0x1a8] sm:$0xff]  ;;  %v292_v54 = vld [vmem:[#allocation1 + $0x3f] sm:$0xff] }
  0x1f   :  { %1107 = vmatpush.bf16.msra.mxu1 %v1946_v30  ;;  %v1999_v48 = vld [vmem:[%s2558_s1 + $0x1e8] sm:$0xff]  ;;  %v291_v51 = vld [vmem:[#allocation1 + $0x36] sm:$0xff]  ;;  %v1990_v56 = vld [vmem:[%s2558_s1 + $0x1a0] sm:$0xff] }
  0x20   :  { %1120 = vmatpush.bf16.msra.mxu2 %v1954_v31  ;;  %v22_v52 = vld [vmem:[%s2557_s0 + $0x8] sm:$0xff]  ;;  %v1998_v57 = vld [vmem:[%s2558_s1 + $0x1e0] sm:$0xff]  ;;  %v1973_v58 = vld [vmem:[%s2558_s1 + $0x118] sm:$0xff] }
  0x21   :  { %1133 = vmatpush.bf16.msra.mxu3 %v1962_v32  ;;  %1095 = vmatmul.bf16.vlgmr.msra.gmra.mxu0 %v285_v39  ;;  %v289_v53 = vld [vmem:[#allocation1 + $0x24] sm:$0xff]  ;;  %v290_v55 = vld [vmem:[#allocation1 + $0x2d] sm:$0xff]  ;;  %v1981_v59 = vld [vmem:[%s2558_s1 + $0x158] sm:$0xff] }
  0x22   :  { %1139 = vmatpush.bf16.msrb.mxu0 %v1977_v33  ;;  %1108 = vmatmul.bf16.vlgmr.msra.gmra.mxu1 %v286_v42  ;;  %294 = vst [vmem:[#allocation1] ss:$9 sm:$0xff] %v22_v52  ;;  %v1989_v60 = vld [vmem:[%s2558_s1 + $0x198] sm:$0xff]  ;;  %v1972_v62 = vld [vmem:[%s2558_s1 + $0x110] sm:$0xff]  ;;  %v1971_v2 = vld [vmem:[%s2558_s1 + $0x108] sm:$0xff] }
  0x23   :  { %1152 = vmatpush.bf16.msrb.mxu1 %v1985_v34  ;;  %1121 = vmatmul.bf16.vlgmr.msra.gmra.mxu2 %v287_v38  ;;  %v1997_v61 = vld [vmem:[%s2558_s1 + $0x1d8] sm:$0xff]  ;;  %v1980_v63 = vld [vmem:[%s2558_s1 + $0x150] sm:$0xff]  ;;  %v1979_v3 = vld [vmem:[%s2558_s1 + $0x148] sm:$0xff] }
  0x24   :  { %1165 = vmatpush.bf16.msrb.mxu2 %v1993_v35  ;;  %1134 = vmatmul.bf16.vlgmr.msra.gmra.mxu3 %v288_v41  ;;  %v1988_v0 = vld [vmem:[%s2558_s1 + $0x190] sm:$0xff]  ;;  %v1987_v4 = vld [vmem:[%s2558_s1 + $0x188] sm:$0xff]  ;;  %v1970_v6 = vld [vmem:[%s2558_s1 + $0x100] sm:$0xff] }
  0x25   :  { %1178 = vmatpush.bf16.msrb.mxu3 %v2001_v36  ;;  %v1996_v1 = vld [vmem:[%s2558_s1 + $0x1d0] sm:$0xff]  ;;  %v1995_v5 = vld [vmem:[%s2558_s1 + $0x1c8] sm:$0xff]  ;;  %v1978_v7 = vld [vmem:[%s2558_s1 + $0x140] sm:$0xff] }
  0x26   :  { %1140 = vmatpush.bf16.msrb.mxu0 %v1976_v37  ;;  %v1986_v8 = vld [vmem:[%s2558_s1 + $0x180] sm:$0xff]  ;;  %v2009_v10 = vld [vmem:[%s2558_s1 + $0x238] sm:$0xff]  ;;  %v2008_v14 = vld [vmem:[%s2558_s1 + $0x230] sm:$0xff] }
  0x27   :  { %1153 = vmatpush.bf16.msrb.mxu1 %v1984_v40  ;;  %v1994_v9 = vld [vmem:[%s2558_s1 + $0x1c0] sm:$0xff]  ;;  %v2017_v11 = vld [vmem:[%s2558_s1 + $0x278] sm:$0xff]  ;;  %v2016_v15 = vld [vmem:[%s2558_s1 + $0x270] sm:$0xff] }
  0x28   :  { %1166 = vmatpush.bf16.msrb.mxu2 %v1992_v43  ;;  %v2025_v12 = vld [vmem:[%s2558_s1 + $0x2b8] sm:$0xff]  ;;  %v2024_v16 = vld [vmem:[%s2558_s1 + $0x2b0] sm:$0xff]  ;;  %v2007_v18 = vld [vmem:[%s2558_s1 + $0x228] sm:$0xff] }
  0x29   :  { %1179 = vmatpush.bf16.msrb.mxu3 %v2000_v44  ;;  %v2033_v13 = vld [vmem:[%s2558_s1 + $0x2f8] sm:$0xff]  ;;  %v2032_v17 = vld [vmem:[%s2558_s1 + $0x2f0] sm:$0xff]  ;;  %v2015_v19 = vld [vmem:[%s2558_s1 + $0x268] sm:$0xff] }
  0x2a   :  { %1141 = vmatpush.bf16.msrb.mxu0 %v1975_v45  ;;  %v2023_v20 = vld [vmem:[%s2558_s1 + $0x2a8] sm:$0xff]  ;;  %v2006_v22 = vld [vmem:[%s2558_s1 + $0x220] sm:$0xff]  ;;  %v2005_v26 = vld [vmem:[%s2558_s1 + $0x218] sm:$0xff] }
  0x2b   :  { %1154 = vmatpush.bf16.msrb.mxu1 %v1983_v46  ;;  %v2031_v21 = vld [vmem:[%s2558_s1 + $0x2e8] sm:$0xff]  ;;  %v2014_v23 = vld [vmem:[%s2558_s1 + $0x260] sm:$0xff]  ;;  %v2013_v27 = vld [vmem:[%s2558_s1 + $0x258] sm:$0xff] }
  0x2c   :  { %1167 = vmatpush.bf16.msrb.mxu2 %v1991_v47  ;;  %v2022_v24 = vld [vmem:[%s2558_s1 + $0x2a0] sm:$0xff]  ;;  %v2021_v28 = vld [vmem:[%s2558_s1 + $0x298] sm:$0xff]  ;;  %v2004_v30 = vld [vmem:[%s2558_s1 + $0x210] sm:$0xff] }
  0x2d   :  { %1180 = vmatpush.bf16.msrb.mxu3 %v1999_v48  ;;  %v2030_v25 = vld [vmem:[%s2558_s1 + $0x2e0] sm:$0xff]  ;;  %v2029_v29 = vld [vmem:[%s2558_s1 + $0x2d8] sm:$0xff]  ;;  %v2012_v31 = vld [vmem:[%s2558_s1 + $0x250] sm:$0xff] }
  0x2e   :  { %1142 = vmatpush.bf16.msrb.mxu0 %v1974_v49  ;;  %v2020_v32 = vld [vmem:[%s2558_s1 + $0x290] sm:$0xff]  ;;  %v2003_v34 = vld [vmem:[%s2558_s1 + $0x208] sm:$0xff]  ;;  %v2002_v38 = vld [vmem:[%s2558_s1 + $0x200] sm:$0xff] }
  0x2f   :  { %1155 = vmatpush.bf16.msrb.mxu1 %v1982_v50  ;;  %v2028_v33 = vld [vmem:[%s2558_s1 + $0x2d0] sm:$0xff]  ;;  %v2011_v35 = vld [vmem:[%s2558_s1 + $0x248] sm:$0xff]  ;;  %v2010_v39 = vld [vmem:[%s2558_s1 + $0x240] sm:$0xff] }
  0x30   :  { %1168 = vmatpush.bf16.msrb.mxu2 %v1990_v56  ;;  %v2019_v36 = vld [vmem:[%s2558_s1 + $0x288] sm:$0xff]  ;;  %v2018_v40 = vld [vmem:[%s2558_s1 + $0x280] sm:$0xff]  ;;  %v2041_v42 = vld [vmem:[%s2558_s1 + $0x338] sm:$0xff] }
  0x31   :  { %1181 = vmatpush.bf16.msrb.mxu3 %v1998_v57  ;;  %v2027_v37 = vld [vmem:[%s2558_s1 + $0x2c8] sm:$0xff]  ;;  %v2026_v41 = vld [vmem:[%s2558_s1 + $0x2c0] sm:$0xff]  ;;  %v2049_v43 = vld [vmem:[%s2558_s1 + $0x378] sm:$0xff] }
  0x32   :  { %1143 = vmatpush.bf16.msrb.mxu0 %v1973_v58  ;;  %v2057_v44 = vld [vmem:[%s2558_s1 + $0x3b8] sm:$0xff]  ;;  %v295_v46 = vld [vmem:[#allocation1] sm:$0xff]  ;;  %v296_v48 = vld [vmem:[#allocation1 + $0x9] sm:$0xff] }
  0x33   :  { %1156 = vmatpush.bf16.msrb.mxu1 %v1981_v59  ;;  %v2065_v45 = vld [vmem:[%s2558_s1 + $0x3f8] sm:$0xff]  ;;  %v2040_v50 = vld [vmem:[%s2558_s1 + $0x330] sm:$0xff]  ;;  %v2055_v56 = vld [vmem:[%s2558_s1 + $0x3a8] sm:$0xff] }
  0x34   :  { %1169 = vmatpush.bf16.msrb.mxu2 %v1989_v60  ;;  %v297_v47 = vld [vmem:[#allocation1 + $0x12] sm:$0xff]  ;;  %v298_v49 = vld [vmem:[#allocation1 + $0x1b] sm:$0xff]  ;;  %v2063_v57 = vld [vmem:[%s2558_s1 + $0x3e8] sm:$0xff] }
  0x35   :  { %1182 = vmatpush.bf16.msrb.mxu3 %v1997_v61  ;;  %v2056_v52 = vld [vmem:[%s2558_s1 + $0x3b0] sm:$0xff]  ;;  %v2038_v58 = vld [vmem:[%s2558_s1 + $0x320] sm:$0xff] }
  0x36   :  { %1144 = vmatpush.bf16.msrb.mxu0 %v1972_v62  ;;  %v2046_v59 = vld [vmem:[%s2558_s1 + $0x360] sm:$0xff]  ;;  %v2037_v62 = vld [vmem:[%s2558_s1 + $0x318] sm:$0xff] }
  0x37   :  { %1157 = vmatpush.bf16.msrb.mxu1 %v1980_v63  ;;  %v2054_v60 = vld [vmem:[%s2558_s1 + $0x3a0] sm:$0xff]  ;;  %v2045_v63 = vld [vmem:[%s2558_s1 + $0x358] sm:$0xff] }
  0x38   :  { %1170 = vmatpush.bf16.msrb.mxu2 %v1988_v0  ;;  %v2062_v61 = vld [vmem:[%s2558_s1 + $0x3e0] sm:$0xff]  ;;  %v2053_v0 = vld [vmem:[%s2558_s1 + $0x398] sm:$0xff] }
  0x39   :  { %1183 = vmatpush.bf16.msrb.mxu3 %v1996_v1  ;;  %v2061_v1 = vld [vmem:[%s2558_s1 + $0x3d8] sm:$0xff] }
  0x3a   :  { %1145 = vmatpush.bf16.msrb.mxu0 %v1971_v2  ;;  %v2036_v2 = vld [vmem:[%s2558_s1 + $0x310] sm:$0xff] }
  0x3b   :  { %1158 = vmatpush.bf16.msrb.mxu1 %v1979_v3  ;;  %v2044_v3 = vld [vmem:[%s2558_s1 + $0x350] sm:$0xff] }
  0x3c   :  { %1171 = vmatpush.bf16.msrb.mxu2 %v1987_v4  ;;  %v2052_v4 = vld [vmem:[%s2558_s1 + $0x390] sm:$0xff] }
  0x3d   :  { %1184 = vmatpush.bf16.msrb.mxu3 %v1995_v5  ;;  %v2060_v5 = vld [vmem:[%s2558_s1 + $0x3d0] sm:$0xff] }
  0x3e   :  { %1146 = vmatpush.bf16.msrb.mxu0 %v1970_v6  ;;  %v2035_v6 = vld [vmem:[%s2558_s1 + $0x308] sm:$0xff] }
  0x3f   :  { %1159 = vmatpush.bf16.msrb.mxu1 %v1978_v7  ;;  %v2043_v7 = vld [vmem:[%s2558_s1 + $0x348] sm:$0xff] }
  0x40   :  { %1172 = vmatpush.bf16.msrb.mxu2 %v1986_v8  ;;  %v2051_v8 = vld [vmem:[%s2558_s1 + $0x388] sm:$0xff] }
  0x41   :  { %1185 = vmatpush.bf16.msrb.mxu3 %v1994_v9  ;;  %1147 = vmatmul.bf16.vlgmr.msrb.gmra.mxu0 %v289_v53  ;;  %v2064_v53 = vld [vmem:[%s2558_s1 + $0x3f0] sm:$0xff]  ;;  %v2059_v9 = vld [vmem:[%s2558_s1 + $0x3c8] sm:$0xff] }
  0x42   :  { %1191 = vmatpush.bf16.msra.mxu0 %v2009_v10  ;;  %1160 = vmatmul.bf16.vlgmr.msrb.gmra.mxu1 %v290_v55  ;;  %v2047_v55 = vld [vmem:[%s2558_s1 + $0x368] sm:$0xff]  ;;  %v2034_v10 = vld [vmem:[%s2558_s1 + $0x300] sm:$0xff] }
  0x43   :  { %1204 = vmatpush.bf16.msra.mxu1 %v2017_v11  ;;  %1173 = vmatmul.bf16.vlgmr.msrb.gmra.mxu2 %v291_v51  ;;  %v2048_v51 = vld [vmem:[%s2558_s1 + $0x370] sm:$0xff]  ;;  %v2042_v11 = vld [vmem:[%s2558_s1 + $0x340] sm:$0xff] }
  0x44   :  { %1217 = vmatpush.bf16.msra.mxu2 %v2025_v12  ;;  %1186 = vmatmul.bf16.vlgmr.msrb.gmra.mxu3 %v292_v54  ;;  %v2039_v54 = vld [vmem:[%s2558_s1 + $0x328] sm:$0xff]  ;;  %v2050_v12 = vld [vmem:[%s2558_s1 + $0x380] sm:$0xff] }
  0x45   :  { %1230 = vmatpush.bf16.msra.mxu3 %v2033_v13  ;;  %v2058_v13 = vld [vmem:[%s2558_s1 + $0x3c0] sm:$0xff] }
  0x46   :  { %1192 = vmatpush.bf16.msra.mxu0 %v2008_v14  ;;  %v299_v14 = vld [vmem:[#allocation1 + $0x24] sm:$0xff] }
  0x47   :  { %1205 = vmatpush.bf16.msra.mxu1 %v2016_v15  ;;  %v300_v15 = vld [vmem:[#allocation1 + $0x2d] sm:$0xff] }
  0x48   :  { %1218 = vmatpush.bf16.msra.mxu2 %v2024_v16  ;;  %v301_v16 = vld [vmem:[#allocation1 + $0x36] sm:$0xff] }
  0x49   :  { %1231 = vmatpush.bf16.msra.mxu3 %v2032_v17  ;;  %v302_v17 = vld [vmem:[#allocation1 + $0x3f] sm:$0xff] }
  0x4a   :  { %1193 = vmatpush.bf16.msra.mxu0 %v2007_v18  ;;  %v2075_v18 = vld [vmem:[%s2559_s2] ss:$0 sm:$0xff] }
  0x4b   :  { %1206 = vmatpush.bf16.msra.mxu1 %v2015_v19 }
  0x4c   :  { %1219 = vmatpush.bf16.msra.mxu2 %v2023_v20 }
  0x4d   :  { %1232 = vmatpush.bf16.msra.mxu3 %v2031_v21 }
  0x4e   :  { %1194 = vmatpush.bf16.msra.mxu0 %v2006_v22 }
  0x4f   :  { %1207 = vmatpush.bf16.msra.mxu1 %v2014_v23 }
  0x50   :  { %1220 = vmatpush.bf16.msra.mxu2 %v2022_v24 }
  0x51   :  { %1233 = vmatpush.bf16.msra.mxu3 %v2030_v25 }
  0x52   :  { %1195 = vmatpush.bf16.msra.mxu0 %v2005_v26 }
  0x53   :  { %1208 = vmatpush.bf16.msra.mxu1 %v2013_v27 }
  0x54   :  { %1221 = vmatpush.bf16.msra.mxu2 %v2021_v28 }
  0x55   :  { %1234 = vmatpush.bf16.msra.mxu3 %v2029_v29 }
  0x56   :  { %1196 = vmatpush.bf16.msra.mxu0 %v2004_v30 }
  0x57   :  { %1209 = vmatpush.bf16.msra.mxu1 %v2012_v31 }
  0x58   :  { %1222 = vmatpush.bf16.msra.mxu2 %v2020_v32 }
  0x59   :  { %1235 = vmatpush.bf16.msra.mxu3 %v2028_v33 }
  0x5a   :  { %1197 = vmatpush.bf16.msra.mxu0 %v2003_v34 }
  0x5b   :  { %1210 = vmatpush.bf16.msra.mxu1 %v2011_v35  ;;  %v2073_v35 = vld [vmem:[%s2560_s3 + $0x38] sm:$0xff] }
  0x5c   :  { %1223 = vmatpush.bf16.msra.mxu2 %v2019_v36 }
  0x5d   :  { %1236 = vmatpush.bf16.msra.mxu3 %v2027_v37 }
  0x5e   :  { %1198 = vmatpush.bf16.msra.mxu0 %v2002_v38  ;;  %v2072_v38 = vld [vmem:[%s2560_s3 + $0x30] sm:$0xff] }
  0x5f   :  { %1211 = vmatpush.bf16.msra.mxu1 %v2010_v39  ;;  %v2071_v39 = vld [vmem:[%s2560_s3 + $0x28] sm:$0xff] }
  0x60   :  { %1224 = vmatpush.bf16.msra.mxu2 %v2018_v40 }
  0x61   :  { %1237 = vmatpush.bf16.msra.mxu3 %v2026_v41  ;;  %1199 = vmatmul.bf16.vlgmr.msra.gmra.mxu0 %v295_v46 }
  0x62   :  { %1243 = vmatpush.bf16.msrb.mxu0 %v2041_v42  ;;  %1212 = vmatmul.bf16.vlgmr.msra.gmra.mxu1 %v296_v48  ;;  %v2070_v42 = vld [vmem:[%s2560_s3 + $0x20] sm:$0xff] }
  0x63   :  { %1256 = vmatpush.bf16.msrb.mxu1 %v2049_v43  ;;  %1225 = vmatmul.bf16.vlgmr.msra.gmra.mxu2 %v297_v47  ;;  %v2069_v43 = vld [vmem:[%s2560_s3 + $0x18] sm:$0xff]  ;;  %v2067_v47 = vld [vmem:[%s2560_s3 + $0x8] sm:$0xff] }
  0x64   :  { %1269 = vmatpush.bf16.msrb.mxu2 %v2057_v44  ;;  %1238 = vmatmul.bf16.vlgmr.msra.gmra.mxu3 %v298_v49  ;;  %v2068_v44 = vld [vmem:[%s2560_s3 + $0x10] sm:$0xff] }
  0x65   :  { %1282 = vmatpush.bf16.msrb.mxu3 %v2065_v45 }
  0x66   :  { %1244 = vmatpush.bf16.msrb.mxu0 %v2040_v50  ;;  %v2066_v50 = vld [vmem:[%s2560_s3] sm:$0xff] }
  0x67   :  { %1257 = vmatpush.bf16.msrb.mxu1 %v2048_v51 }
  0x68   :  { %1270 = vmatpush.bf16.msrb.mxu2 %v2056_v52 }
  0x69   :  { %1283 = vmatpush.bf16.msrb.mxu3 %v2064_v53 }
  0x6a   :  { %1245 = vmatpush.bf16.msrb.mxu0 %v2039_v54 }
  0x6b   :  { %1258 = vmatpush.bf16.msrb.mxu1 %v2047_v55 }
  0x6c   :  { %1271 = vmatpush.bf16.msrb.mxu2 %v2055_v56 }
  0x6d   :  { %1284 = vmatpush.bf16.msrb.mxu3 %v2063_v57 }
  0x6e   :  { %1246 = vmatpush.bf16.msrb.mxu0 %v2038_v58 }
  0x6f   :  { %1259 = vmatpush.bf16.msrb.mxu1 %v2046_v59 }
  0x70   :  { %1272 = vmatpush.bf16.msrb.mxu2 %v2054_v60 }
  0x71   :  { %1285 = vmatpush.bf16.msrb.mxu3 %v2062_v61 }
  0x72   :  { %1247 = vmatpush.bf16.msrb.mxu0 %v2037_v62 }
  0x73   :  { %1260 = vmatpush.bf16.msrb.mxu1 %v2045_v63 }
  0x74   :  { %1273 = vmatpush.bf16.msrb.mxu2 %v2053_v0 }
  0x75   :  { %1286 = vmatpush.bf16.msrb.mxu3 %v2061_v1 }
  0x76   :  { %1248 = vmatpush.bf16.msrb.mxu0 %v2036_v2 }
  0x77   :  { %1261 = vmatpush.bf16.msrb.mxu1 %v2044_v3 }
  0x78   :  { %1274 = vmatpush.bf16.msrb.mxu2 %v2052_v4 }
  0x79   :  { %1287 = vmatpush.bf16.msrb.mxu3 %v2060_v5 }
  0x7a   :  { %1249 = vmatpush.bf16.msrb.mxu0 %v2035_v6 }
  0x7b   :  { %1262 = vmatpush.bf16.msrb.mxu1 %v2043_v7 }
  0x7c   :  { %1275 = vmatpush.bf16.msrb.mxu2 %v2051_v8 }
  0x7d   :  { %1288 = vmatpush.bf16.msrb.mxu3 %v2059_v9 }
  0x7e   :  { %1250 = vmatpush.bf16.msrb.mxu0 %v2034_v10 }
  0x7f   :  { %1263 = vmatpush.bf16.msrb.mxu1 %v2042_v11 }
  0x80   :  { %1276 = vmatpush.bf16.msrb.mxu2 %v2050_v12  ;;  %v2076_v12 = vld [vmem:[%s2561_s4] ss:$0 sm:$0xff] }
  0x81   :  { %1289 = vmatpush.bf16.msrb.mxu3 %v2058_v13  ;;  %1251 = vmatmul.bf16.vlgmr.msrb.gmra.mxu0 %v299_v14 }
  0x82   :  { %1264 = vmatmul.bf16.vlgmr.msrb.gmra.mxu1 %v300_v15  ;;  %1364 = vmatpush.bf16.msra.mxu0 %v2073_v35 }
  0x83   :  { %1277 = vmatmul.bf16.vlgmr.msrb.gmra.mxu2 %v301_v16 }
  0x84   :  { %1290 = vmatmul.bf16.vlgmr.msrb.gmra.mxu3 %v302_v17 }
  0x86   :  { %1365 = vmatpush.bf16.msra.mxu0 %v2072_v38 }
  0x8a   :  { %1366 = vmatpush.bf16.msra.mxu0 %v2071_v39 }
  0x8e   :  { %1367 = vmatpush.bf16.msra.mxu0 %v2070_v42 }
  0x92   :  { %1368 = vmatpush.bf16.msra.mxu0 %v2069_v43 }
  0x96   :  { %1369 = vmatpush.bf16.msra.mxu0 %v2068_v44 }
  0x9a   :  { %1370 = vmatpush.bf16.msra.mxu0 %v2067_v47 }
  0x9e   :  { %v1096_v19 = vpop.f32.mrf.mxu0  ;;  %1371 = vmatpush.bf16.msra.mxu0 %v2066_v50 }
  0x9f   :  { %v1097_v20 = vadd.f32 %v2075_v18, %v1096_v19  ;;  %v1109_v21 = vpop.f32.mrf.mxu1 }
  0xa1   :  { %v1110_v22 = vadd.f32 %v1109_v21, %v1097_v20 }
  0xa6   :  { %v1122_v23 = vpop.f32.mrf.mxu2  ;;  %v1098_v26 = vpop.f32.mrf.mxu0 }
  0xa7   :  { %v1123_v24 = vadd.f32 %v1122_v23, %v1110_v22  ;;  %v1135_v25 = vpop.f32.mrf.mxu3  ;;  %v1111_v28 = vpop.f32.mrf.mxu1 }
  0xa9   :  { %v1136_v27 = vadd.f32 %v1135_v25, %v1123_v24 }
  0xae   :  { %v1124_v29 = vpop.f32.mrf.mxu2 }
  0xaf   :  { %v1137_v30 = vpop.f32.mrf.mxu3 }
  0xbe   :  { %v1148_v31 = vpop.f32.mrf.mxu0 }
  0xbf   :  { %v1161_v32 = vpop.f32.mrf.mxu1  ;;  %v1149_v48 = vadd.f32 %v1148_v31, %v1136_v27 }
  0xc1   :  { %v1162_v53 = vadd.f32 %v1161_v32, %v1149_v48 }
  0xc6   :  { %v1174_v33 = vpop.f32.mrf.mxu2  ;;  %v1150_v36 = vpop.f32.mrf.mxu0 }
  0xc7   :  { %v1187_v34 = vpop.f32.mrf.mxu3  ;;  %v1163_v37 = vpop.f32.mrf.mxu1  ;;  %v1175_v55 = vadd.f32 %v1174_v33, %v1162_v53 }
  0xc9   :  { %v1188_v58 = vadd.f32 %v1187_v34, %v1175_v55 }
  0xce   :  { %v1176_v40 = vpop.f32.mrf.mxu2 }
  0xcf   :  { %v1189_v41 = vpop.f32.mrf.mxu3 }
  0xde   :  { %v1200_v45 = vpop.f32.mrf.mxu0 }
  0xdf   :  { %v1213_v46 = vpop.f32.mrf.mxu1  ;;  %v1201_v59 = vadd.f32 %v1200_v45, %v1188_v58 }
  0xe1   :  { %v1214_v60 = vadd.f32 %v1213_v46, %v1201_v59 }
  0xe6   :  { %v1226_v49 = vpop.f32.mrf.mxu2  ;;  %v1202_v52 = vpop.f32.mrf.mxu0 }
  0xe7   :  { %v1239_v51 = vpop.f32.mrf.mxu3  ;;  %v1215_v54 = vpop.f32.mrf.mxu1  ;;  %v1227_v61 = vadd.f32 %v1226_v49, %v1214_v60 }
  0xe9   :  { %v1240_v62 = vadd.f32 %v1239_v51, %v1227_v61 }
  0xee   :  { %v1228_v56 = vpop.f32.mrf.mxu2 }
  0xef   :  { %v1241_v57 = vpop.f32.mrf.mxu3 }
  0xfe   :  { %v1252_v63 = vpop.f32.mrf.mxu0 }
  0xff   :  { %v1265_v0 = vpop.f32.mrf.mxu1  ;;  %v1253_v1 = vadd.f32 %v1252_v63, %v1240_v62 }
 0x101   :  { %v1266_v2 = vadd.f32 %v1265_v0, %v1253_v1 }
 0x106   :  { %v1278_v3 = vpop.f32.mrf.mxu2  ;;  %v1254_v6 = vpop.f32.mrf.mxu0 }
 0x107   :  { %v1291_v4 = vpop.f32.mrf.mxu3  ;;  %v1279_v5 = vadd.f32 %v1278_v3, %v1266_v2  ;;  %v1267_v7 = vpop.f32.mrf.mxu1 }
 0x109   :  { %v1292_v8 = vadd.f32 %v1291_v4, %v1279_v5 }
 0x10b   :  { %v1295_v9 = vpack.c.bf16 %v1292_v8, %v1292_v8 }
 0x10d   :  { %1372 = vmatmul.bf16.vlgmr.msra.gmra.mxu0 %v1295_v9 }
 0x10e   :  { %v1280_v10 = vpop.f32.mrf.mxu2 }
 0x10f   :  { %v1293_v11 = vpop.f32.mrf.mxu3 }
 0x18a   :  { %v1373_v13 = vpop.f32.mrf.mxu0 }
 0x18b   :  { %v1374_v14 = vadd.f32 %v2076_v12, %v1373_v13 }
 0x18d   :  { %1377 = vst [vmem:[#allocation2] sm:$0x3] %v1374_v14 }
 0x18e   :  { %1388 = dma.vmem_to_hbm [thread:$0]  %s1384_s14, 32, %s1386_s17, [#allocation3]  }
 0x192   :  { %v1375_v15 = vpop.f32.mrf.mxu0 }
 0x193   :  { %2101 = dma.done.wait [#allocation3], 32  }
 0x194   :  { %2102 = vsyncadd [#allocation3], 4294967264 }
 0x195   :  { %1393 = vsyncpa [#allocation3], 1 }

</bundles_post_ra>
